<compile_context>
chip_gen: v7x
topology: tpu7x:2x2x1
jax: 0.10.0
libtpu: 0.0.40
codegen_flags: <defaults>
</compile_context>

<pallas_src>
import jax
import jax.numpy as jnp
from jax.experimental import pallas as pl
from jax.experimental.pallas import tpu as pltpu

# MXU operand / bulk-activation dtype. bf16 doubles effective MXU throughput and halves
# DMA bytes; accumulation stays f32 (preferred_element_type) and recurrent state stays
# f32.  Set to jnp.float32 for bit-closer parity with the f32 PyTorch reference
# (correctness escape hatch: bf16 rounding accumulates over T recurrent steps).
_MXU_DTYPE = jnp.bfloat16


def _round_up(n, m):
    return (n + m - 1) // m * m


def _lstm_ae_kernel(x_ref,                          # (T, TB, Dp)   time-major input tile (bf16)
                    wih_e_ref, whh_e_ref, b_e_ref,  # encoder LSTM params (padded; W bf16, b f32)
                    wih_d_ref, whh_d_ref, b_d_ref,  # decoder LSTM params (padded; W bf16, b f32)
                    wout_ref, bout_ref,             # output Linear params (padded; W bf16, b f32)
                    dec_ref,                        # (T, TB, Dp)   decoded output tile (f32)
                    z_ref,                          # (TB, Hp)      latent output tile (f32)
                    xg_ref,                         # (T, TB, 4Hp)  scratch: hoisted input gates (bf16)
                    hh_ref):                        # (T, TB, Hp)   scratch: decoder h history (bf16)
    T, TB, Dp = x_ref.shape
    Hp = whh_e_ref.shape[0]

    whh_e = whh_e_ref[...]            # already _MXU_DTYPE: no per-grid-step casts
    whh_d = whh_d_ref[...]
    mxu_dt = whh_e.dtype

    # ---- (1) encoder input projection hoisted out of the recurrence:
    #      one (T*TB, Dp) @ (Dp, 4Hp) MXU matmul instead of T tiny ones; bias added once.
    #      Stored in the scratch dtype (bf16) -- it is only an addend to an f32 MXU result.
    x_flat = x_ref[...].reshape(T * TB, Dp)
    xg = jnp.dot(x_flat, wih_e_ref[...],
                 preferred_element_type=jnp.float32) + b_e_ref[...]
    xg_ref[...] = xg.reshape(T, TB, 4 * Hp).astype(xg_ref.dtype)

    h0 = jnp.zeros((TB, Hp), jnp.float32)
    c0 = jnp.zeros((TB, Hp), jnp.float32)

    def gates_to_hc(gates, c):
        # Hp is a multiple of 128, so each gate slice [i, f, g, o] is lane-aligned
        # (no cross-lane XLU shuffles / masked loads).  Transcendentals go to the EUP.
        i_g = jax.nn.sigmoid(gates[:, 0 * Hp:1 * Hp])
        f_g = jax.nn.sigmoid(gates[:, 1 * Hp:2 * Hp])
        g_g = jnp.tanh(gates[:, 2 * Hp:3 * Hp])
        o_g = jax.nn.sigmoid(gates[:, 3 * Hp:4 * Hp])
        c_new = f_g * c + i_g * g_g
        h_new = o_g * jnp.tanh(c_new)
        return h_new, c_new

    # Cap the unroll: full unroll only for small T, otherwise keep the loop visible to
    # the LLO scheduler without instruction-stream / vreg-pressure blow-up.
    unroll = min(T, 8)

    # ---- encoder recurrence: only h @ W_hh stays inside the loop
    def enc_body(t, carry):
        h, c = carry
        gates = xg_ref[t].astype(jnp.float32) + jnp.dot(
            h.astype(mxu_dt), whh_e, preferred_element_type=jnp.float32)
        return gates_to_hc(gates, c)

    h_enc, _ = jax.lax.fori_loop(0, T, enc_body, (h0, c0), unroll=unroll)
    z_ref[...] = h_enc

    # ---- (2) decoder input contribution is t-invariant (input is z at every step):
    #      compute h_enc @ W_ih_dec + b once, reuse in every step.
    dec_in = jnp.dot(h_enc.astype(mxu_dt), wih_d_ref[...],
                     preferred_element_type=jnp.float32) + b_d_ref[...]

    def dec_body(t, carry):
        h, c = carry
        gates = dec_in + jnp.dot(h.astype(mxu_dt), whh_d,
                                 preferred_element_type=jnp.float32)
        h_new, c_new = gates_to_hc(gates, c)
        hh_ref[t] = h_new.astype(hh_ref.dtype)     # bf16 history: MXU operand only
        return (h_new, c_new)

    jax.lax.fori_loop(0, T, dec_body, (h0, c0), unroll=unroll)

    # ---- (3) output Linear hoisted out of the loop: one big MXU matmul and a single
    #      lane-dense store (Dp multiple of 128 -> unmasked vst).
    h_all = hh_ref[...].reshape(T * TB, Hp)
    dec = jnp.dot(h_all, wout_ref[...],
                  preferred_element_type=jnp.float32) + bout_ref[...]
    dec_ref[...] = dec.reshape(T, TB, Dp)


# ---------------- padding helpers (zero padding keeps the math exact) ----------------
# INVARIANT: padded gate/bias lanes must stay exactly zero.  Then padded gate
# pre-activations are 0 -> i=f=o=0.5, g=0 -> with h0=c0=0 the padded h/c lanes stay
# exactly 0 through both recurrences, and padded output columns are exactly 0.
# This silently breaks if nonzero initial states or nonzero bias padding are introduced.

def _pad_gate_mat(w, rows_p, h, hp):
    """(rows, 4*h) -> (rows_p, 4*hp), padding each [i,f,g,o] gate block separately."""
    rows = w.shape[0]
    w4 = w.reshape(rows, 4, h)
    out = jnp.zeros((rows_p, 4, hp), w.dtype).at[:rows, :, :h].set(w4)
    return out.reshape(rows_p, 4 * hp)


def _pad_gate_bias(b, h, hp):
    b4 = b.reshape(1, 4, h)
    out = jnp.zeros((1, 4, hp), b.dtype).at[:, :, :h].set(b4)
    return out.reshape(1, 4 * hp)


def _pad2(a, shape_p):
    out = jnp.zeros(shape_p, a.dtype)
    return out.at[tuple(slice(0, s) for s in a.shape)].set(a)


@jax.jit
def lstm_autoencoder_forward(x, params):
    """x: (B, T, D) float32, batch_first (like the PyTorch module).
    Returns (decoded (B, T, D) float32, z (B, H) float32)."""
    B, T, D = x.shape
    H = params["whh_enc"].shape[0]

    # Kernel-facing padded sizes: lane dims -> multiples of 128, batch sublanes -> >= 8.
    Dp = _round_up(D, 128)
    Hp = _round_up(H, 128)
    mxu_sz = jnp.dtype(_MXU_DTYPE).itemsize

    # ---- VMEM budget model (bytes) for a given batch tile TB --------------------------
    # x tile (double-buffered, _MXU_DTYPE) + decoded/z out tiles (double-buffered f32)
    # + single-buffered weights (pl.Buffered(1)) + f32 biases + the two scratches.
    def _vmem_bytes(tb):
        x_tile = T * tb * Dp * mxu_sz * 2
        dec_tile = T * tb * Dp * 4 * 2
        z_tile = tb * Hp * 4 * 2
        weights = (Dp * 4 * Hp + 2 * Hp * 4 * Hp + Hp * Dp) * mxu_sz
        biases = (2 * 4 * Hp + Dp) * 4
        scratch = (T * tb * 4 * Hp + T * tb * Hp) * mxu_sz
        return x_tile + dec_tile + z_tile + weights + biases + scratch

    # Target budget fits v7x (64 MiB physical VMEM per TC) with headroom; v5e/v6e have
    # 128 MiB.  Prefer large TB: fills the 256-row MXU in the recurrent matmul and
    # amortizes the fixed per-grid-step overhead (~0.35 us) and the hoisted matmuls.
    _BUDGET = 44 * 1024 * 1024
    TB = 8
    for cand in (256, 128, 64, 32, 16, 8):
        if _vmem_bytes(cand) <= _BUDGET:
            TB = cand
            break

    Bp = max(_round_up(B, 8), 8)
    if Bp <= TB:
        if Bp >= 16:
            # Small batch: split into (at least) two tiles so the single "parallel" grid
            # axis gives work to both v7x TensorCores instead of leaving one idle.
            TB = _round_up((Bp + 1) // 2, 8)
            Bp = _round_up(Bp, TB)
        else:
            TB = Bp                      # <=8 padded rows: nothing useful to split
    else:
        Bp = _round_up(Bp, TB)
    n_btiles = Bp // TB

    # Scoped-VMEM limit from the actual buffer budget (defaults are only 16/32 MiB).
    # Capped at v7x's 64 MiB physical ceiling.
    # TODO(synk): for configs that exceed this even at TB=8, chunk the time dimension.
    vmem_limit = int(min(max(_vmem_bytes(TB) + (4 << 20), 32 << 20), 64 << 20))

    # Pad + cast + go time-major in a single fused XLA copy (padding is required anyway
    # for unaligned D/B, so the transpose/cast add no extra HBM round trip; bf16 halves
    # the bytes of this copy and of the kernel's input DMA).
    x_pad = jnp.zeros((T, Bp, Dp), _MXU_DTYPE).at[:, :B, :D].set(
        jnp.transpose(x, (1, 0, 2)).astype(_MXU_DTYPE))

    # Zero-padded weights/biases, weights pre-cast to the MXU dtype on the host so the
    # kernel never re-casts them and their DMA/VMEM footprint is halved.  Biases stay
    # f32 (added to f32 MXU results).
    # TODO(synk): for production, pad + cast params once at init instead of per forward.
    wih_e = _pad_gate_mat(params["wih_enc"], Dp, H, Hp).astype(_MXU_DTYPE)
    whh_e = _pad_gate_mat(params["whh_enc"], Hp, H, Hp).astype(_MXU_DTYPE)
    b_e = _pad_gate_bias(params["b_enc"], H, Hp)
    wih_d = _pad_gate_mat(params["wih_dec"], Hp, H, Hp).astype(_MXU_DTYPE)
    whh_d = _pad_gate_mat(params["whh_dec"], Hp, H, Hp).astype(_MXU_DTYPE)
    b_d = _pad_gate_bias(params["b_dec"], H, Hp)
    wout = _pad2(params["wout"], (Hp, Dp)).astype(_MXU_DTYPE)
    bout = _pad2(params["bout"], (1, Dp))

    def fixed(shape):
        # Grid-invariant block (weights/biases): single-buffered -- the second pipeline
        # buffer would be pure VMEM waste since the block index never changes.
        return pl.BlockSpec(shape, lambda b, _n=len(shape): (0,) * _n,
                            pipeline_mode=pl.Buffered(1))

    grid_spec = pltpu.PrefetchScalarGridSpec(
        num_scalar_prefetch=0,
        grid=(n_btiles,),                       # batch is embarrassingly parallel
        in_specs=[
            pl.BlockSpec((T, TB, Dp), lambda b: (0, b, 0)),                  # x tile
            fixed((Dp, 4 * Hp)), fixed((Hp, 4 * Hp)), fixed((1, 4 * Hp)),    # encoder
            fixed((Hp, 4 * Hp)), fixed((Hp, 4 * Hp)), fixed((1, 4 * Hp)),    # decoder
            fixed((Hp, Dp)), fixed((1, Dp)),                                 # out linear
        ],
        out_specs=(
            pl.BlockSpec((T, TB, Dp), lambda b: (0, b, 0)),   # decoded tile
            pl.BlockSpec((TB, Hp), lambda b: (b, 0)),         # latent tile
        ),
        scratch_shapes=[
            pltpu.VMEM((T, TB, 4 * Hp), _MXU_DTYPE),          # hoisted input gates (bf16)
            pltpu.VMEM((T, TB, Hp), _MXU_DTYPE),              # decoder h history   (bf16)
        ],
    )

    dec_pad, z_pad = pl.pallas_call(
        _lstm_ae_kernel,
        out_shape=(
            # TODO(synk): emit decoded in bf16 if the downstream consumer tolerates it
            # (halves writeback bytes; matters most on v5e's ~820 GB/s HBM).
            jax.ShapeDtypeStruct((T, Bp, Dp), jnp.float32),
            jax.ShapeDtypeStruct((Bp, Hp), jnp.float32),
        ),
        grid_spec=grid_spec,
        compiler_params=pltpu.CompilerParams(
            dimension_semantics=("parallel",),                # megacore / 2-TC sharding on v7x
            vmem_limit_bytes=vmem_limit),
    )(x_pad, wih_e, whh_e, b_e, wih_d, whh_d, b_d, wout, bout)

    decoded = jnp.transpose(dec_pad[:, :B, :D], (1, 0, 2))    # back to (B, T, D), drop padding
    z = z_pad[:B, :H]
    return decoded, z


def init_params(key, input_size, hidden_size):
    """Deterministic params matching PyTorch nn.LSTM / nn.Linear shapes.

    PyTorch stores weight_ih as (4H, D) and weight_hh as (4H, H) with gate
    order [i, f, g, o]; we pre-transpose to (D, 4H) / (H, 4H) for x @ W, and
    fold bias_ih + bias_hh into a single (1, 4H) bias.
    """
    D, H = input_size, hidden_size
    k = 1.0 / jnp.sqrt(jnp.float32(H))
    keys = jax.random.split(key, 10)

    def u(subkey, shape):
        return jax.random.uniform(subkey, shape, jnp.float32, -k, k)

    params = {
        # encoder LSTM: input D -> hidden H
        "wih_enc": u(keys[0], (D, 4 * H)),
        "whh_enc": u(keys[1], (H, 4 * H)),
        "b_enc":   u(keys[2], (1, 4 * H)) + u(keys[3], (1, 4 * H)),  # b_ih + b_hh
        # decoder LSTM: input H -> hidden H
        "wih_dec": u(keys[4], (H, 4 * H)),
        "whh_dec": u(keys[5], (H, 4 * H)),
        "b_dec":   u(keys[6], (1, 4 * H)) + u(keys[7], (1, 4 * H)),
        # output Linear: H -> D
        "wout":    u(keys[8], (H, D)),
        "bout":    u(keys[9], (1, D)),
    }
    return params


if __name__ == "__main__":
    B, T, D, H = 2, 8, 16, 32
    key = jax.random.PRNGKey(0)
    kx, kp = jax.random.split(key)

    x = jax.random.normal(kx, (B, T, D), jnp.float32)
    params = init_params(kp, input_size=D, hidden_size=H)

    decoded, z = lstm_autoencoder_forward(x, params)
    jax.block_until_ready((decoded, z))

    assert decoded.shape == (B, T, D), decoded.shape
    assert z.shape == (B, H), z.shape
    assert bool(jnp.all(jnp.isfinite(decoded))) and bool(jnp.all(jnp.isfinite(z)))
    print("KERNEL_OK")
</pallas_src>

<mosaic_0001>
module attributes {stable_mosaic.version = 11 : i64} {
  func.func @_lstm_ae_kernel(%arg0: i32, %arg1: memref<8x8x128xbf16, #tpu.memory_space<vmem>>, %arg2: memref<128x512xbf16, #tpu.memory_space<vmem>>, %arg3: memref<128x512xbf16, #tpu.memory_space<vmem>>, %arg4: memref<1x512xf32, #tpu.memory_space<vmem>>, %arg5: memref<128x512xbf16, #tpu.memory_space<vmem>>, %arg6: memref<128x512xbf16, #tpu.memory_space<vmem>>, %arg7: memref<1x512xf32, #tpu.memory_space<vmem>>, %arg8: memref<128x128xbf16, #tpu.memory_space<vmem>>, %arg9: memref<1x128xf32, #tpu.memory_space<vmem>>, %arg10: memref<8x8x128xf32, #tpu.memory_space<vmem>>, %arg11: memref<8x128xf32, #tpu.memory_space<vmem>>, %arg12: memref<8x8x512xbf16, #tpu.memory_space<vmem>>, %arg13: memref<8x8x128xbf16, #tpu.memory_space<vmem>>) attributes {dimension_semantics = [#tpu.dimension_semantics<parallel>], iteration_bounds = array<i64: 1>, scalar_prefetch = 0 : i64, scratch_operands = 2 : i64, tpu.core_type = #tpu.core_type<tc>, window_params = [{transform_indices = @transform_0, window_bounds = array<i64: 8, 8, 128>}, {pipeline_mode = #tpu.pipeline_mode<synchronous>, transform_indices = @transform_1, window_bounds = array<i64: 128, 512>}, {pipeline_mode = #tpu.pipeline_mode<synchronous>, transform_indices = @transform_2, window_bounds = array<i64: 128, 512>}, {pipeline_mode = #tpu.pipeline_mode<synchronous>, transform_indices = @transform_3, window_bounds = array<i64: 1, 512>}, {pipeline_mode = #tpu.pipeline_mode<synchronous>, transform_indices = @transform_4, window_bounds = array<i64: 128, 512>}, {pipeline_mode = #tpu.pipeline_mode<synchronous>, transform_indices = @transform_5, window_bounds = array<i64: 128, 512>}, {pipeline_mode = #tpu.pipeline_mode<synchronous>, transform_indices = @transform_6, window_bounds = array<i64: 1, 512>}, {pipeline_mode = #tpu.pipeline_mode<synchronous>, transform_indices = @transform_7, window_bounds = array<i64: 128, 128>}, {pipeline_mode = #tpu.pipeline_mode<synchronous>, transform_indices = @transform_8, window_bounds = array<i64: 1, 128>}, {transform_indices = @transform_9, window_bounds = array<i64: 8, 8, 128>}, {transform_indices = @transform_10, window_bounds = array<i64: 8, 128>}]} {
    %c0 = arith.constant 0 : index
    %c0_0 = arith.constant 0 : index
    %0 = vector.load %arg3[%c0, %c0_0] : memref<128x512xbf16, #tpu.memory_space<vmem>>, vector<128x512xbf16>
    %c0_1 = arith.constant 0 : index
    %c0_2 = arith.constant 0 : index
    %1 = vector.load %arg6[%c0_1, %c0_2] : memref<128x512xbf16, #tpu.memory_space<vmem>>, vector<128x512xbf16>
    %c0_3 = arith.constant 0 : index
    %c0_4 = arith.constant 0 : index
    %c0_5 = arith.constant 0 : index
    %2 = vector.load %arg1[%c0_3, %c0_4, %c0_5] : memref<8x8x128xbf16, #tpu.memory_space<vmem>>, vector<8x8x128xbf16>
    %3 = vector.shape_cast %2 : vector<8x8x128xbf16> to vector<64x128xbf16>
    %c0_6 = arith.constant 0 : index
    %c0_7 = arith.constant 0 : index
    %4 = vector.load %arg2[%c0_6, %c0_7] : memref<128x512xbf16, #tpu.memory_space<vmem>>, vector<128x512xbf16>
    %cst = arith.constant dense<0.000000e+00> : vector<64x512xf32>
    %5 = tpu.matmul %3, %4, %cst {dimension_numbers = #tpu.dot_dimension_numbers<[1], [0], [0], [1], [0, 0, 1, 1], [], []>} : vector<64x128xbf16>, vector<128x512xbf16>, vector<64x512xf32> -> vector<64x512xf32>
    %c0_8 = arith.constant 0 : index
    %c0_9 = arith.constant 0 : index
    %6 = vector.load %arg4[%c0_8, %c0_9] : memref<1x512xf32, #tpu.memory_space<vmem>>, vector<1x512xf32>
    %7 = vector.broadcast %6 : vector<1x512xf32> to vector<64x512xf32>
    %8 = arith.addf %5, %7 : vector<64x512xf32>
    %9 = vector.shape_cast %8 : vector<64x512xf32> to vector<8x8x512xf32>
    %10 = arith.truncf %9 : vector<8x8x512xf32> to vector<8x8x512xbf16>
    %c0_10 = arith.constant 0 : index
    %c0_11 = arith.constant 0 : index
    %c0_12 = arith.constant 0 : index
    %11 = vector.load %arg12[%c0_10, %c0_11, %c0_12] : memref<8x8x512xbf16, #tpu.memory_space<vmem>>, vector<8x8x512xbf16>
    tpu.vector_store %arg12[%c0_10, %c0_11, %c0_12], %10 {strides = array<i32>} : memref<8x8x512xbf16, #tpu.memory_space<vmem>>, vector<8x8x512xbf16>,
    %cst_13 = arith.constant 0.000000e+00 : f32
    %12 = vector.broadcast %cst_13 : f32 to vector<8x128xf32>
    %cst_14 = arith.constant 0.000000e+00 : f32
    %13 = vector.broadcast %cst_14 : f32 to vector<8x128xf32>
    %c0_i32 = arith.constant 0 : i32
    %14 = arith.index_cast %c0_i32 : i32 to index
    %c0_15 = arith.constant 0 : index
    %c0_16 = arith.constant 0 : index
    %15 = vector.load %arg12[%14, %c0_15, %c0_16] : memref<8x8x512xbf16, #tpu.memory_space<vmem>>, vector<1x8x512xbf16>
    %16 = vector.shape_cast %15 : vector<1x8x512xbf16> to vector<8x512xbf16>
    %17 = arith.extf %16 : vector<8x512xbf16> to vector<8x512xf32>
    %18 = arith.truncf %12 : vector<8x128xf32> to vector<8x128xbf16>
    %cst_17 = arith.constant dense<0.000000e+00> : vector<8x512xf32>
    %19 = tpu.matmul %18, %0, %cst_17 {dimension_numbers = #tpu.dot_dimension_numbers<[1], [0], [0], [1], [0, 0, 1, 1], [], []>} : vector<8x128xbf16>, vector<128x512xbf16>, vector<8x512xf32> -> vector<8x512xf32>
    %20 = arith.addf %17, %19 : vector<8x512xf32>
    %21 = vector.extract_strided_slice %20 {offsets = [0, 0], sizes = [8, 128], strides = [1, 1]} : vector<8x512xf32> to vector<8x128xf32>
    %22 = arith.negf %21 : vector<8x128xf32>
    %23 = math.exp %22 : vector<8x128xf32>
    %cst_18 = arith.constant 1.000000e+00 : f32
    %24 = vector.broadcast %cst_18 : f32 to vector<8x128xf32>
    %25 = arith.addf %24, %23 : vector<8x128xf32>
    %26 = arith.divf %24, %25 : vector<8x128xf32>
    %27 = vector.extract_strided_slice %20 {offsets = [0, 128], sizes = [8, 128], strides = [1, 1]} : vector<8x512xf32> to vector<8x128xf32>
    %28 = arith.negf %27 : vector<8x128xf32>
    %29 = math.exp %28 : vector<8x128xf32>
    %cst_19 = arith.constant 1.000000e+00 : f32
    %30 = vector.broadcast %cst_19 : f32 to vector<8x128xf32>
    %31 = arith.addf %30, %29 : vector<8x128xf32>
    %32 = arith.divf %30, %31 : vector<8x128xf32>
    %33 = vector.extract_strided_slice %20 {offsets = [0, 256], sizes = [8, 128], strides = [1, 1]} : vector<8x512xf32> to vector<8x128xf32>
    %34 = math.tanh %33 : vector<8x128xf32>
    %35 = vector.extract_strided_slice %20 {offsets = [0, 384], sizes = [8, 128], strides = [1, 1]} : vector<8x512xf32> to vector<8x128xf32>
    %36 = arith.negf %35 : vector<8x128xf32>
    %37 = math.exp %36 : vector<8x128xf32>
    %cst_20 = arith.constant 1.000000e+00 : f32
    %38 = vector.broadcast %cst_20 : f32 to vector<8x128xf32>
    %39 = arith.addf %38, %37 : vector<8x128xf32>
    %40 = arith.divf %38, %39 : vector<8x128xf32>
    %41 = arith.mulf %32, %13 : vector<8x128xf32>
    %42 = arith.mulf %26, %34 : vector<8x128xf32>
    %43 = arith.addf %41, %42 : vector<8x128xf32>
    %44 = math.tanh %43 : vector<8x128xf32>
    %45 = arith.mulf %40, %44 : vector<8x128xf32>
    %c1_i32 = arith.constant 1 : i32
    %46 = arith.index_cast %c1_i32 : i32 to index
    %c0_21 = arith.constant 0 : index
    %c0_22 = arith.constant 0 : index
    %47 = vector.load %arg12[%46, %c0_21, %c0_22] : memref<8x8x512xbf16, #tpu.memory_space<vmem>>, vector<1x8x512xbf16>
    %48 = vector.shape_cast %47 : vector<1x8x512xbf16> to vector<8x512xbf16>
    %49 = arith.extf %48 : vector<8x512xbf16> to vector<8x512xf32>
    %50 = arith.truncf %45 : vector<8x128xf32> to vector<8x128xbf16>
    %cst_23 = arith.constant dense<0.000000e+00> : vector<8x512xf32>
    %51 = tpu.matmul %50, %0, %cst_23 {dimension_numbers = #tpu.dot_dimension_numbers<[1], [0], [0], [1], [0, 0, 1, 1], [], []>} : vector<8x128xbf16>, vector<128x512xbf16>, vector<8x512xf32> -> vector<8x512xf32>
    %52 = arith.addf %49, %51 : vector<8x512xf32>
    %53 = vector.extract_strided_slice %52 {offsets = [0, 0], sizes = [8, 128], strides = [1, 1]} : vector<8x512xf32> to vector<8x128xf32>
    %54 = arith.negf %53 : vector<8x128xf32>
    %55 = math.exp %54 : vector<8x128xf32>
    %cst_24 = arith.constant 1.000000e+00 : f32
    %56 = vector.broadcast %cst_24 : f32 to vector<8x128xf32>
    %57 = arith.addf %56, %55 : vector<8x128xf32>
    %58 = arith.divf %56, %57 : vector<8x128xf32>
    %59 = vector.extract_strided_slice %52 {offsets = [0, 128], sizes = [8, 128], strides = [1, 1]} : vector<8x512xf32> to vector<8x128xf32>
    %60 = arith.negf %59 : vector<8x128xf32>
    %61 = math.exp %60 : vector<8x128xf32>
    %cst_25 = arith.constant 1.000000e+00 : f32
    %62 = vector.broadcast %cst_25 : f32 to vector<8x128xf32>
    %63 = arith.addf %62, %61 : vector<8x128xf32>
    %64 = arith.divf %62, %63 : vector<8x128xf32>
    %65 = vector.extract_strided_slice %52 {offsets = [0, 256], sizes = [8, 128], strides = [1, 1]} : vector<8x512xf32> to vector<8x128xf32>
    %66 = math.tanh %65 : vector<8x128xf32>
    %67 = vector.extract_strided_slice %52 {offsets = [0, 384], sizes = [8, 128], strides = [1, 1]} : vector<8x512xf32> to vector<8x128xf32>
    %68 = arith.negf %67 : vector<8x128xf32>
    %69 = math.exp %68 : vector<8x128xf32>
    %cst_26 = arith.constant 1.000000e+00 : f32
    %70 = vector.broadcast %cst_26 : f32 to vector<8x128xf32>
    %71 = arith.addf %70, %69 : vector<8x128xf32>
    %72 = arith.divf %70, %71 : vector<8x128xf32>
    %73 = arith.mulf %64, %43 : vector<8x128xf32>
    %74 = arith.mulf %58, %66 : vector<8x128xf32>
    %75 = arith.addf %73, %74 : vector<8x128xf32>
    %76 = math.tanh %75 : vector<8x128xf32>
    %77 = arith.mulf %72, %76 : vector<8x128xf32>
    %c2_i32 = arith.constant 2 : i32
    %78 = arith.index_cast %c2_i32 : i32 to index
    %c0_27 = arith.constant 0 : index
    %c0_28 = arith.constant 0 : index
    %79 = vector.load %arg12[%78, %c0_27, %c0_28] : memref<8x8x512xbf16, #tpu.memory_space<vmem>>, vector<1x8x512xbf16>
    %80 = vector.shape_cast %79 : vector<1x8x512xbf16> to vector<8x512xbf16>
    %81 = arith.extf %80 : vector<8x512xbf16> to vector<8x512xf32>
    %82 = arith.truncf %77 : vector<8x128xf32> to vector<8x128xbf16>
    %cst_29 = arith.constant dense<0.000000e+00> : vector<8x512xf32>
    %83 = tpu.matmul %82, %0, %cst_29 {dimension_numbers = #tpu.dot_dimension_numbers<[1], [0], [0], [1], [0, 0, 1, 1], [], []>} : vector<8x128xbf16>, vector<128x512xbf16>, vector<8x512xf32> -> vector<8x512xf32>
    %84 = arith.addf %81, %83 : vector<8x512xf32>
    %85 = vector.extract_strided_slice %84 {offsets = [0, 0], sizes = [8, 128], strides = [1, 1]} : vector<8x512xf32> to vector<8x128xf32>
    %86 = arith.negf %85 : vector<8x128xf32>
    %87 = math.exp %86 : vector<8x128xf32>
    %cst_30 = arith.constant 1.000000e+00 : f32
    %88 = vector.broadcast %cst_30 : f32 to vector<8x128xf32>
    %89 = arith.addf %88, %87 : vector<8x128xf32>
    %90 = arith.divf %88, %89 : vector<8x128xf32>
    %91 = vector.extract_strided_slice %84 {offsets = [0, 128], sizes = [8, 128], strides = [1, 1]} : vector<8x512xf32> to vector<8x128xf32>
    %92 = arith.negf %91 : vector<8x128xf32>
    %93 = math.exp %92 : vector<8x128xf32>
    %cst_31 = arith.constant 1.000000e+00 : f32
    %94 = vector.broadcast %cst_31 : f32 to vector<8x128xf32>
    %95 = arith.addf %94, %93 : vector<8x128xf32>
    %96 = arith.divf %94, %95 : vector<8x128xf32>
    %97 = vector.extract_strided_slice %84 {offsets = [0, 256], sizes = [8, 128], strides = [1, 1]} : vector<8x512xf32> to vector<8x128xf32>
    %98 = math.tanh %97 : vector<8x128xf32>
    %99 = vector.extract_strided_slice %84 {offsets = [0, 384], sizes = [8, 128], strides = [1, 1]} : vector<8x512xf32> to vector<8x128xf32>
    %100 = arith.negf %99 : vector<8x128xf32>
    %101 = math.exp %100 : vector<8x128xf32>
    %cst_32 = arith.constant 1.000000e+00 : f32
    %102 = vector.broadcast %cst_32 : f32 to vector<8x128xf32>
    %103 = arith.addf %102, %101 : vector<8x128xf32>
    %104 = arith.divf %102, %103 : vector<8x128xf32>
    %105 = arith.mulf %96, %75 : vector<8x128xf32>
    %106 = arith.mulf %90, %98 : vector<8x128xf32>
    %107 = arith.addf %105, %106 : vector<8x128xf32>
    %108 = math.tanh %107 : vector<8x128xf32>
    %109 = arith.mulf %104, %108 : vector<8x128xf32>
    %c3_i32 = arith.constant 3 : i32
    %110 = arith.index_cast %c3_i32 : i32 to index
    %c0_33 = arith.constant 0 : index
    %c0_34 = arith.constant 0 : index
    %111 = vector.load %arg12[%110, %c0_33, %c0_34] : memref<8x8x512xbf16, #tpu.memory_space<vmem>>, vector<1x8x512xbf16>
    %112 = vector.shape_cast %111 : vector<1x8x512xbf16> to vector<8x512xbf16>
    %113 = arith.extf %112 : vector<8x512xbf16> to vector<8x512xf32>
    %114 = arith.truncf %109 : vector<8x128xf32> to vector<8x128xbf16>
    %cst_35 = arith.constant dense<0.000000e+00> : vector<8x512xf32>
    %115 = tpu.matmul %114, %0, %cst_35 {dimension_numbers = #tpu.dot_dimension_numbers<[1], [0], [0], [1], [0, 0, 1, 1], [], []>} : vector<8x128xbf16>, vector<128x512xbf16>, vector<8x512xf32> -> vector<8x512xf32>
    %116 = arith.addf %113, %115 : vector<8x512xf32>
    %117 = vector.extract_strided_slice %116 {offsets = [0, 0], sizes = [8, 128], strides = [1, 1]} : vector<8x512xf32> to vector<8x128xf32>
    %118 = arith.negf %117 : vector<8x128xf32>
    %119 = math.exp %118 : vector<8x128xf32>
    %cst_36 = arith.constant 1.000000e+00 : f32
    %120 = vector.broadcast %cst_36 : f32 to vector<8x128xf32>
    %121 = arith.addf %120, %119 : vector<8x128xf32>
    %122 = arith.divf %120, %121 : vector<8x128xf32>
    %123 = vector.extract_strided_slice %116 {offsets = [0, 128], sizes = [8, 128], strides = [1, 1]} : vector<8x512xf32> to vector<8x128xf32>
    %124 = arith.negf %123 : vector<8x128xf32>
    %125 = math.exp %124 : vector<8x128xf32>
    %cst_37 = arith.constant 1.000000e+00 : f32
    %126 = vector.broadcast %cst_37 : f32 to vector<8x128xf32>
    %127 = arith.addf %126, %125 : vector<8x128xf32>
    %128 = arith.divf %126, %127 : vector<8x128xf32>
    %129 = vector.extract_strided_slice %116 {offsets = [0, 256], sizes = [8, 128], strides = [1, 1]} : vector<8x512xf32> to vector<8x128xf32>
    %130 = math.tanh %129 : vector<8x128xf32>
    %131 = vector.extract_strided_slice %116 {offsets = [0, 384], sizes = [8, 128], strides = [1, 1]} : vector<8x512xf32> to vector<8x128xf32>
    %132 = arith.negf %131 : vector<8x128xf32>
    %133 = math.exp %132 : vector<8x128xf32>
    %cst_38 = arith.constant 1.000000e+00 : f32
    %134 = vector.broadcast %cst_38 : f32 to vector<8x128xf32>
    %135 = arith.addf %134, %133 : vector<8x128xf32>
    %136 = arith.divf %134, %135 : vector<8x128xf32>
    %137 = arith.mulf %128, %107 : vector<8x128xf32>
    %138 = arith.mulf %122, %130 : vector<8x128xf32>
    %139 = arith.addf %137, %138 : vector<8x128xf32>
    %140 = math.tanh %139 : vector<8x128xf32>
    %141 = arith.mulf %136, %140 : vector<8x128xf32>
    %c4_i32 = arith.constant 4 : i32
    %142 = arith.index_cast %c4_i32 : i32 to index
    %c0_39 = arith.constant 0 : index
    %c0_40 = arith.constant 0 : index
    %143 = vector.load %arg12[%142, %c0_39, %c0_40] : memref<8x8x512xbf16, #tpu.memory_space<vmem>>, vector<1x8x512xbf16>
    %144 = vector.shape_cast %143 : vector<1x8x512xbf16> to vector<8x512xbf16>
    %145 = arith.extf %144 : vector<8x512xbf16> to vector<8x512xf32>
    %146 = arith.truncf %141 : vector<8x128xf32> to vector<8x128xbf16>
    %cst_41 = arith.constant dense<0.000000e+00> : vector<8x512xf32>
    %147 = tpu.matmul %146, %0, %cst_41 {dimension_numbers = #tpu.dot_dimension_numbers<[1], [0], [0], [1], [0, 0, 1, 1], [], []>} : vector<8x128xbf16>, vector<128x512xbf16>, vector<8x512xf32> -> vector<8x512xf32>
    %148 = arith.addf %145, %147 : vector<8x512xf32>
    %149 = vector.extract_strided_slice %148 {offsets = [0, 0], sizes = [8, 128], strides = [1, 1]} : vector<8x512xf32> to vector<8x128xf32>
    %150 = arith.negf %149 : vector<8x128xf32>
    %151 = math.exp %150 : vector<8x128xf32>
    %cst_42 = arith.constant 1.000000e+00 : f32
    %152 = vector.broadcast %cst_42 : f32 to vector<8x128xf32>
    %153 = arith.addf %152, %151 : vector<8x128xf32>
    %154 = arith.divf %152, %153 : vector<8x128xf32>
    %155 = vector.extract_strided_slice %148 {offsets = [0, 128], sizes = [8, 128], strides = [1, 1]} : vector<8x512xf32> to vector<8x128xf32>
    %156 = arith.negf %155 : vector<8x128xf32>
    %157 = math.exp %156 : vector<8x128xf32>
    %cst_43 = arith.constant 1.000000e+00 : f32
    %158 = vector.broadcast %cst_43 : f32 to vector<8x128xf32>
    %159 = arith.addf %158, %157 : vector<8x128xf32>
    %160 = arith.divf %158, %159 : vector<8x128xf32>
    %161 = vector.extract_strided_slice %148 {offsets = [0, 256], sizes = [8, 128], strides = [1, 1]} : vector<8x512xf32> to vector<8x128xf32>
    %162 = math.tanh %161 : vector<8x128xf32>
    %163 = vector.extract_strided_slice %148 {offsets = [0, 384], sizes = [8, 128], strides = [1, 1]} : vector<8x512xf32> to vector<8x128xf32>
    %164 = arith.negf %163 : vector<8x128xf32>
    %165 = math.exp %164 : vector<8x128xf32>
    %cst_44 = arith.constant 1.000000e+00 : f32
    %166 = vector.broadcast %cst_44 : f32 to vector<8x128xf32>
    %167 = arith.addf %166, %165 : vector<8x128xf32>
    %168 = arith.divf %166, %167 : vector<8x128xf32>
    %169 = arith.mulf %160, %139 : vector<8x128xf32>
    %170 = arith.mulf %154, %162 : vector<8x128xf32>
    %171 = arith.addf %169, %170 : vector<8x128xf32>
    %172 = math.tanh %171 : vector<8x128xf32>
    %173 = arith.mulf %168, %172 : vector<8x128xf32>
    %c5_i32 = arith.constant 5 : i32
    %174 = arith.index_cast %c5_i32 : i32 to index
    %c0_45 = arith.constant 0 : index
    %c0_46 = arith.constant 0 : index
    %175 = vector.load %arg12[%174, %c0_45, %c0_46] : memref<8x8x512xbf16, #tpu.memory_space<vmem>>, vector<1x8x512xbf16>
    %176 = vector.shape_cast %175 : vector<1x8x512xbf16> to vector<8x512xbf16>
    %177 = arith.extf %176 : vector<8x512xbf16> to vector<8x512xf32>
    %178 = arith.truncf %173 : vector<8x128xf32> to vector<8x128xbf16>
    %cst_47 = arith.constant dense<0.000000e+00> : vector<8x512xf32>
    %179 = tpu.matmul %178, %0, %cst_47 {dimension_numbers = #tpu.dot_dimension_numbers<[1], [0], [0], [1], [0, 0, 1, 1], [], []>} : vector<8x128xbf16>, vector<128x512xbf16>, vector<8x512xf32> -> vector<8x512xf32>
    %180 = arith.addf %177, %179 : vector<8x512xf32>
    %181 = vector.extract_strided_slice %180 {offsets = [0, 0], sizes = [8, 128], strides = [1, 1]} : vector<8x512xf32> to vector<8x128xf32>
    %182 = arith.negf %181 : vector<8x128xf32>
    %183 = math.exp %182 : vector<8x128xf32>
    %cst_48 = arith.constant 1.000000e+00 : f32
    %184 = vector.broadcast %cst_48 : f32 to vector<8x128xf32>
    %185 = arith.addf %184, %183 : vector<8x128xf32>
    %186 = arith.divf %184, %185 : vector<8x128xf32>
    %187 = vector.extract_strided_slice %180 {offsets = [0, 128], sizes = [8, 128], strides = [1, 1]} : vector<8x512xf32> to vector<8x128xf32>
    %188 = arith.negf %187 : vector<8x128xf32>
    %189 = math.exp %188 : vector<8x128xf32>
    %cst_49 = arith.constant 1.000000e+00 : f32
    %190 = vector.broadcast %cst_49 : f32 to vector<8x128xf32>
    %191 = arith.addf %190, %189 : vector<8x128xf32>
    %192 = arith.divf %190, %191 : vector<8x128xf32>
    %193 = vector.extract_strided_slice %180 {offsets = [0, 256], sizes = [8, 128], strides = [1, 1]} : vector<8x512xf32> to vector<8x128xf32>
    %194 = math.tanh %193 : vector<8x128xf32>
    %195 = vector.extract_strided_slice %180 {offsets = [0, 384], sizes = [8, 128], strides = [1, 1]} : vector<8x512xf32> to vector<8x128xf32>
    %196 = arith.negf %195 : vector<8x128xf32>
    %197 = math.exp %196 : vector<8x128xf32>
    %cst_50 = arith.constant 1.000000e+00 : f32
    %198 = vector.broadcast %cst_50 : f32 to vector<8x128xf32>
    %199 = arith.addf %198, %197 : vector<8x128xf32>
    %200 = arith.divf %198, %199 : vector<8x128xf32>
    %201 = arith.mulf %192, %171 : vector<8x128xf32>
    %202 = arith.mulf %186, %194 : vector<8x128xf32>
    %203 = arith.addf %201, %202 : vector<8x128xf32>
    %204 = math.tanh %203 : vector<8x128xf32>
    %205 = arith.mulf %200, %204 : vector<8x128xf32>
    %c6_i32 = arith.constant 6 : i32
    %206 = arith.index_cast %c6_i32 : i32 to index
    %c0_51 = arith.constant 0 : index
    %c0_52 = arith.constant 0 : index
    %207 = vector.load %arg12[%206, %c0_51, %c0_52] : memref<8x8x512xbf16, #tpu.memory_space<vmem>>, vector<1x8x512xbf16>
    %208 = vector.shape_cast %207 : vector<1x8x512xbf16> to vector<8x512xbf16>
    %209 = arith.extf %208 : vector<8x512xbf16> to vector<8x512xf32>
    %210 = arith.truncf %205 : vector<8x128xf32> to vector<8x128xbf16>
    %cst_53 = arith.constant dense<0.000000e+00> : vector<8x512xf32>
    %211 = tpu.matmul %210, %0, %cst_53 {dimension_numbers = #tpu.dot_dimension_numbers<[1], [0], [0], [1], [0, 0, 1, 1], [], []>} : vector<8x128xbf16>, vector<128x512xbf16>, vector<8x512xf32> -> vector<8x512xf32>
    %212 = arith.addf %209, %211 : vector<8x512xf32>
    %213 = vector.extract_strided_slice %212 {offsets = [0, 0], sizes = [8, 128], strides = [1, 1]} : vector<8x512xf32> to vector<8x128xf32>
    %214 = arith.negf %213 : vector<8x128xf32>
    %215 = math.exp %214 : vector<8x128xf32>
    %cst_54 = arith.constant 1.000000e+00 : f32
    %216 = vector.broadcast %cst_54 : f32 to vector<8x128xf32>
    %217 = arith.addf %216, %215 : vector<8x128xf32>
    %218 = arith.divf %216, %217 : vector<8x128xf32>
    %219 = vector.extract_strided_slice %212 {offsets = [0, 128], sizes = [8, 128], strides = [1, 1]} : vector<8x512xf32> to vector<8x128xf32>
    %220 = arith.negf %219 : vector<8x128xf32>
    %221 = math.exp %220 : vector<8x128xf32>
    %cst_55 = arith.constant 1.000000e+00 : f32
    %222 = vector.broadcast %cst_55 : f32 to vector<8x128xf32>
    %223 = arith.addf %222, %221 : vector<8x128xf32>
    %224 = arith.divf %222, %223 : vector<8x128xf32>
    %225 = vector.extract_strided_slice %212 {offsets = [0, 256], sizes = [8, 128], strides = [1, 1]} : vector<8x512xf32> to vector<8x128xf32>
    %226 = math.tanh %225 : vector<8x128xf32>
    %227 = vector.extract_strided_slice %212 {offsets = [0, 384], sizes = [8, 128], strides = [1, 1]} : vector<8x512xf32> to vector<8x128xf32>
    %228 = arith.negf %227 : vector<8x128xf32>
    %229 = math.exp %228 : vector<8x128xf32>
    %cst_56 = arith.constant 1.000000e+00 : f32
    %230 = vector.broadcast %cst_56 : f32 to vector<8x128xf32>
    %231 = arith.addf %230, %229 : vector<8x128xf32>
    %232 = arith.divf %230, %231 : vector<8x128xf32>
    %233 = arith.mulf %224, %203 : vector<8x128xf32>
    %234 = arith.mulf %218, %226 : vector<8x128xf32>
    %235 = arith.addf %233, %234 : vector<8x128xf32>
    %236 = math.tanh %235 : vector<8x128xf32>
    %237 = arith.mulf %232, %236 : vector<8x128xf32>
    %c7_i32 = arith.constant 7 : i32
    %238 = arith.index_cast %c7_i32 : i32 to index
    %c0_57 = arith.constant 0 : index
    %c0_58 = arith.constant 0 : index
    %239 = vector.load %arg12[%238, %c0_57, %c0_58] : memref<8x8x512xbf16, #tpu.memory_space<vmem>>, vector<1x8x512xbf16>
    %240 = vector.shape_cast %239 : vector<1x8x512xbf16> to vector<8x512xbf16>
    %241 = arith.extf %240 : vector<8x512xbf16> to vector<8x512xf32>
    %242 = arith.truncf %237 : vector<8x128xf32> to vector<8x128xbf16>
    %cst_59 = arith.constant dense<0.000000e+00> : vector<8x512xf32>
    %243 = tpu.matmul %242, %0, %cst_59 {dimension_numbers = #tpu.dot_dimension_numbers<[1], [0], [0], [1], [0, 0, 1, 1], [], []>} : vector<8x128xbf16>, vector<128x512xbf16>, vector<8x512xf32> -> vector<8x512xf32>
    %244 = arith.addf %241, %243 : vector<8x512xf32>
    %245 = vector.extract_strided_slice %244 {offsets = [0, 0], sizes = [8, 128], strides = [1, 1]} : vector<8x512xf32> to vector<8x128xf32>
    %246 = arith.negf %245 : vector<8x128xf32>
    %247 = math.exp %246 : vector<8x128xf32>
    %cst_60 = arith.constant 1.000000e+00 : f32
    %248 = vector.broadcast %cst_60 : f32 to vector<8x128xf32>
    %249 = arith.addf %248, %247 : vector<8x128xf32>
    %250 = arith.divf %248, %249 : vector<8x128xf32>
    %251 = vector.extract_strided_slice %244 {offsets = [0, 128], sizes = [8, 128], strides = [1, 1]} : vector<8x512xf32> to vector<8x128xf32>
    %252 = arith.negf %251 : vector<8x128xf32>
    %253 = math.exp %252 : vector<8x128xf32>
    %cst_61 = arith.constant 1.000000e+00 : f32
    %254 = vector.broadcast %cst_61 : f32 to vector<8x128xf32>
    %255 = arith.addf %254, %253 : vector<8x128xf32>
    %256 = arith.divf %254, %255 : vector<8x128xf32>
    %257 = vector.extract_strided_slice %244 {offsets = [0, 256], sizes = [8, 128], strides = [1, 1]} : vector<8x512xf32> to vector<8x128xf32>
    %258 = math.tanh %257 : vector<8x128xf32>
    %259 = vector.extract_strided_slice %244 {offsets = [0, 384], sizes = [8, 128], strides = [1, 1]} : vector<8x512xf32> to vector<8x128xf32>
    %260 = arith.negf %259 : vector<8x128xf32>
    %261 = math.exp %260 : vector<8x128xf32>
    %cst_62 = arith.constant 1.000000e+00 : f32
    %262 = vector.broadcast %cst_62 : f32 to vector<8x128xf32>
    %263 = arith.addf %262, %261 : vector<8x128xf32>
    %264 = arith.divf %262, %263 : vector<8x128xf32>
    %265 = arith.mulf %256, %235 : vector<8x128xf32>
    %266 = arith.mulf %250, %258 : vector<8x128xf32>
    %267 = arith.addf %265, %266 : vector<8x128xf32>
    %268 = math.tanh %267 : vector<8x128xf32>
    %269 = arith.mulf %264, %268 : vector<8x128xf32>
    %c8_i32 = arith.constant 8 : i32
    %c0_63 = arith.constant 0 : index
    %c0_64 = arith.constant 0 : index
    %270 = vector.load %arg11[%c0_63, %c0_64] : memref<8x128xf32, #tpu.memory_space<vmem>>, vector<8x128xf32>
    tpu.vector_store %arg11[%c0_63, %c0_64], %269 {strides = array<i32>} : memref<8x128xf32, #tpu.memory_space<vmem>>, vector<8x128xf32>,
    %271 = arith.truncf %269 : vector<8x128xf32> to vector<8x128xbf16>
    %c0_65 = arith.constant 0 : index
    %c0_66 = arith.constant 0 : index
    %272 = vector.load %arg5[%c0_65, %c0_66] : memref<128x512xbf16, #tpu.memory_space<vmem>>, vector<128x512xbf16>
    %cst_67 = arith.constant dense<0.000000e+00> : vector<8x512xf32>
    %273 = tpu.matmul %271, %272, %cst_67 {dimension_numbers = #tpu.dot_dimension_numbers<[1], [0], [0], [1], [0, 0, 1, 1], [], []>} : vector<8x128xbf16>, vector<128x512xbf16>, vector<8x512xf32> -> vector<8x512xf32>
    %c0_68 = arith.constant 0 : index
    %c0_69 = arith.constant 0 : index
    %274 = vector.load %arg7[%c0_68, %c0_69] : memref<1x512xf32, #tpu.memory_space<vmem>>, vector<1x512xf32>
    %275 = vector.broadcast %274 : vector<1x512xf32> to vector<8x512xf32>
    %276 = arith.addf %273, %275 : vector<8x512xf32>
    %c0_i32_70 = arith.constant 0 : i32
    %277 = arith.truncf %12 : vector<8x128xf32> to vector<8x128xbf16>
    %cst_71 = arith.constant dense<0.000000e+00> : vector<8x512xf32>
    %278 = tpu.matmul %277, %1, %cst_71 {dimension_numbers = #tpu.dot_dimension_numbers<[1], [0], [0], [1], [0, 0, 1, 1], [], []>} : vector<8x128xbf16>, vector<128x512xbf16>, vector<8x512xf32> -> vector<8x512xf32>
    %279 = arith.addf %276, %278 : vector<8x512xf32>
    %280 = vector.extract_strided_slice %279 {offsets = [0, 0], sizes = [8, 128], strides = [1, 1]} : vector<8x512xf32> to vector<8x128xf32>
    %281 = arith.negf %280 : vector<8x128xf32>
    %282 = math.exp %281 : vector<8x128xf32>
    %cst_72 = arith.constant 1.000000e+00 : f32
    %283 = vector.broadcast %cst_72 : f32 to vector<8x128xf32>
    %284 = arith.addf %283, %282 : vector<8x128xf32>
    %285 = arith.divf %283, %284 : vector<8x128xf32>
    %286 = vector.extract_strided_slice %279 {offsets = [0, 128], sizes = [8, 128], strides = [1, 1]} : vector<8x512xf32> to vector<8x128xf32>
    %287 = arith.negf %286 : vector<8x128xf32>
    %288 = math.exp %287 : vector<8x128xf32>
    %cst_73 = arith.constant 1.000000e+00 : f32
    %289 = vector.broadcast %cst_73 : f32 to vector<8x128xf32>
    %290 = arith.addf %289, %288 : vector<8x128xf32>
    %291 = arith.divf %289, %290 : vector<8x128xf32>
    %292 = vector.extract_strided_slice %279 {offsets = [0, 256], sizes = [8, 128], strides = [1, 1]} : vector<8x512xf32> to vector<8x128xf32>
    %293 = math.tanh %292 : vector<8x128xf32>
    %294 = vector.extract_strided_slice %279 {offsets = [0, 384], sizes = [8, 128], strides = [1, 1]} : vector<8x512xf32> to vector<8x128xf32>
    %295 = arith.negf %294 : vector<8x128xf32>
    %296 = math.exp %295 : vector<8x128xf32>
    %cst_74 = arith.constant 1.000000e+00 : f32
    %297 = vector.broadcast %cst_74 : f32 to vector<8x128xf32>
    %298 = arith.addf %297, %296 : vector<8x128xf32>
    %299 = arith.divf %297, %298 : vector<8x128xf32>
    %300 = arith.mulf %291, %13 : vector<8x128xf32>
    %301 = arith.mulf %285, %293 : vector<8x128xf32>
    %302 = arith.addf %300, %301 : vector<8x128xf32>
    %303 = math.tanh %302 : vector<8x128xf32>
    %304 = arith.mulf %299, %303 : vector<8x128xf32>
    %305 = arith.truncf %304 : vector<8x128xf32> to vector<8x128xbf16>
    %306 = arith.index_cast %c0_i32_70 : i32 to index
    %c0_75 = arith.constant 0 : index
    %c0_76 = arith.constant 0 : index
    %307 = vector.load %arg13[%306, %c0_75, %c0_76] : memref<8x8x128xbf16, #tpu.memory_space<vmem>>, vector<1x8x128xbf16>
    %308 = vector.shape_cast %307 : vector<1x8x128xbf16> to vector<8x128xbf16>
    %309 = vector.shape_cast %305 : vector<8x128xbf16> to vector<1x8x128xbf16>
    tpu.vector_store %arg13[%306, %c0_75, %c0_76], %309 {strides = array<i32>} : memref<8x8x128xbf16, #tpu.memory_space<vmem>>, vector<1x8x128xbf16>,
    %c1_i32_77 = arith.constant 1 : i32
    %310 = arith.truncf %304 : vector<8x128xf32> to vector<8x128xbf16>
    %cst_78 = arith.constant dense<0.000000e+00> : vector<8x512xf32>
    %311 = tpu.matmul %310, %1, %cst_78 {dimension_numbers = #tpu.dot_dimension_numbers<[1], [0], [0], [1], [0, 0, 1, 1], [], []>} : vector<8x128xbf16>, vector<128x512xbf16>, vector<8x512xf32> -> vector<8x512xf32>
    %312 = arith.addf %276, %311 : vector<8x512xf32>
    %313 = vector.extract_strided_slice %312 {offsets = [0, 0], sizes = [8, 128], strides = [1, 1]} : vector<8x512xf32> to vector<8x128xf32>
    %314 = arith.negf %313 : vector<8x128xf32>
    %315 = math.exp %314 : vector<8x128xf32>
    %cst_79 = arith.constant 1.000000e+00 : f32
    %316 = vector.broadcast %cst_79 : f32 to vector<8x128xf32>
    %317 = arith.addf %316, %315 : vector<8x128xf32>
    %318 = arith.divf %316, %317 : vector<8x128xf32>
    %319 = vector.extract_strided_slice %312 {offsets = [0, 128], sizes = [8, 128], strides = [1, 1]} : vector<8x512xf32> to vector<8x128xf32>
    %320 = arith.negf %319 : vector<8x128xf32>
    %321 = math.exp %320 : vector<8x128xf32>
    %cst_80 = arith.constant 1.000000e+00 : f32
    %322 = vector.broadcast %cst_80 : f32 to vector<8x128xf32>
    %323 = arith.addf %322, %321 : vector<8x128xf32>
    %324 = arith.divf %322, %323 : vector<8x128xf32>
    %325 = vector.extract_strided_slice %312 {offsets = [0, 256], sizes = [8, 128], strides = [1, 1]} : vector<8x512xf32> to vector<8x128xf32>
    %326 = math.tanh %325 : vector<8x128xf32>
    %327 = vector.extract_strided_slice %312 {offsets = [0, 384], sizes = [8, 128], strides = [1, 1]} : vector<8x512xf32> to vector<8x128xf32>
    %328 = arith.negf %327 : vector<8x128xf32>
    %329 = math.exp %328 : vector<8x128xf32>
    %cst_81 = arith.constant 1.000000e+00 : f32
    %330 = vector.broadcast %cst_81 : f32 to vector<8x128xf32>
    %331 = arith.addf %330, %329 : vector<8x128xf32>
    %332 = arith.divf %330, %331 : vector<8x128xf32>
    %333 = arith.mulf %324, %302 : vector<8x128xf32>
    %334 = arith.mulf %318, %326 : vector<8x128xf32>
    %335 = arith.addf %333, %334 : vector<8x128xf32>
    %336 = math.tanh %335 : vector<8x128xf32>
    %337 = arith.mulf %332, %336 : vector<8x128xf32>
    %338 = arith.truncf %337 : vector<8x128xf32> to vector<8x128xbf16>
    %339 = arith.index_cast %c1_i32_77 : i32 to index
    %c0_82 = arith.constant 0 : index
    %c0_83 = arith.constant 0 : index
    %340 = vector.load %arg13[%339, %c0_82, %c0_83] : memref<8x8x128xbf16, #tpu.memory_space<vmem>>, vector<1x8x128xbf16>
    %341 = vector.shape_cast %340 : vector<1x8x128xbf16> to vector<8x128xbf16>
    %342 = vector.shape_cast %338 : vector<8x128xbf16> to vector<1x8x128xbf16>
    tpu.vector_store %arg13[%339, %c0_82, %c0_83], %342 {strides = array<i32>} : memref<8x8x128xbf16, #tpu.memory_space<vmem>>, vector<1x8x128xbf16>,
    %c2_i32_84 = arith.constant 2 : i32
    %343 = arith.truncf %337 : vector<8x128xf32> to vector<8x128xbf16>
    %cst_85 = arith.constant dense<0.000000e+00> : vector<8x512xf32>
    %344 = tpu.matmul %343, %1, %cst_85 {dimension_numbers = #tpu.dot_dimension_numbers<[1], [0], [0], [1], [0, 0, 1, 1], [], []>} : vector<8x128xbf16>, vector<128x512xbf16>, vector<8x512xf32> -> vector<8x512xf32>
    %345 = arith.addf %276, %344 : vector<8x512xf32>
    %346 = vector.extract_strided_slice %345 {offsets = [0, 0], sizes = [8, 128], strides = [1, 1]} : vector<8x512xf32> to vector<8x128xf32>
    %347 = arith.negf %346 : vector<8x128xf32>
    %348 = math.exp %347 : vector<8x128xf32>
    %cst_86 = arith.constant 1.000000e+00 : f32
    %349 = vector.broadcast %cst_86 : f32 to vector<8x128xf32>
    %350 = arith.addf %349, %348 : vector<8x128xf32>
    %351 = arith.divf %349, %350 : vector<8x128xf32>
    %352 = vector.extract_strided_slice %345 {offsets = [0, 128], sizes = [8, 128], strides = [1, 1]} : vector<8x512xf32> to vector<8x128xf32>
    %353 = arith.negf %352 : vector<8x128xf32>
    %354 = math.exp %353 : vector<8x128xf32>
    %cst_87 = arith.constant 1.000000e+00 : f32
    %355 = vector.broadcast %cst_87 : f32 to vector<8x128xf32>
    %356 = arith.addf %355, %354 : vector<8x128xf32>
    %357 = arith.divf %355, %356 : vector<8x128xf32>
    %358 = vector.extract_strided_slice %345 {offsets = [0, 256], sizes = [8, 128], strides = [1, 1]} : vector<8x512xf32> to vector<8x128xf32>
    %359 = math.tanh %358 : vector<8x128xf32>
    %360 = vector.extract_strided_slice %345 {offsets = [0, 384], sizes = [8, 128], strides = [1, 1]} : vector<8x512xf32> to vector<8x128xf32>
    %361 = arith.negf %360 : vector<8x128xf32>
    %362 = math.exp %361 : vector<8x128xf32>
    %cst_88 = arith.constant 1.000000e+00 : f32
    %363 = vector.broadcast %cst_88 : f32 to vector<8x128xf32>
    %364 = arith.addf %363, %362 : vector<8x128xf32>
    %365 = arith.divf %363, %364 : vector<8x128xf32>
    %366 = arith.mulf %357, %335 : vector<8x128xf32>
    %367 = arith.mulf %351, %359 : vector<8x128xf32>
    %368 = arith.addf %366, %367 : vector<8x128xf32>
    %369 = math.tanh %368 : vector<8x128xf32>
    %370 = arith.mulf %365, %369 : vector<8x128xf32>
    %371 = arith.truncf %370 : vector<8x128xf32> to vector<8x128xbf16>
    %372 = arith.index_cast %c2_i32_84 : i32 to index
    %c0_89 = arith.constant 0 : index
    %c0_90 = arith.constant 0 : index
    %373 = vector.load %arg13[%372, %c0_89, %c0_90] : memref<8x8x128xbf16, #tpu.memory_space<vmem>>, vector<1x8x128xbf16>
    %374 = vector.shape_cast %373 : vector<1x8x128xbf16> to vector<8x128xbf16>
    %375 = vector.shape_cast %371 : vector<8x128xbf16> to vector<1x8x128xbf16>
    tpu.vector_store %arg13[%372, %c0_89, %c0_90], %375 {strides = array<i32>} : memref<8x8x128xbf16, #tpu.memory_space<vmem>>, vector<1x8x128xbf16>,
    %c3_i32_91 = arith.constant 3 : i32
    %376 = arith.truncf %370 : vector<8x128xf32> to vector<8x128xbf16>
    %cst_92 = arith.constant dense<0.000000e+00> : vector<8x512xf32>
    %377 = tpu.matmul %376, %1, %cst_92 {dimension_numbers = #tpu.dot_dimension_numbers<[1], [0], [0], [1], [0, 0, 1, 1], [], []>} : vector<8x128xbf16>, vector<128x512xbf16>, vector<8x512xf32> -> vector<8x512xf32>
    %378 = arith.addf %276, %377 : vector<8x512xf32>
    %379 = vector.extract_strided_slice %378 {offsets = [0, 0], sizes = [8, 128], strides = [1, 1]} : vector<8x512xf32> to vector<8x128xf32>
    %380 = arith.negf %379 : vector<8x128xf32>
    %381 = math.exp %380 : vector<8x128xf32>
    %cst_93 = arith.constant 1.000000e+00 : f32
    %382 = vector.broadcast %cst_93 : f32 to vector<8x128xf32>
    %383 = arith.addf %382, %381 : vector<8x128xf32>
    %384 = arith.divf %382, %383 : vector<8x128xf32>
    %385 = vector.extract_strided_slice %378 {offsets = [0, 128], sizes = [8, 128], strides = [1, 1]} : vector<8x512xf32> to vector<8x128xf32>
    %386 = arith.negf %385 : vector<8x128xf32>
    %387 = math.exp %386 : vector<8x128xf32>
    %cst_94 = arith.constant 1.000000e+00 : f32
    %388 = vector.broadcast %cst_94 : f32 to vector<8x128xf32>
    %389 = arith.addf %388, %387 : vector<8x128xf32>
    %390 = arith.divf %388, %389 : vector<8x128xf32>
    %391 = vector.extract_strided_slice %378 {offsets = [0, 256], sizes = [8, 128], strides = [1, 1]} : vector<8x512xf32> to vector<8x128xf32>
    %392 = math.tanh %391 : vector<8x128xf32>
    %393 = vector.extract_strided_slice %378 {offsets = [0, 384], sizes = [8, 128], strides = [1, 1]} : vector<8x512xf32> to vector<8x128xf32>
    %394 = arith.negf %393 : vector<8x128xf32>
    %395 = math.exp %394 : vector<8x128xf32>
    %cst_95 = arith.constant 1.000000e+00 : f32
    %396 = vector.broadcast %cst_95 : f32 to vector<8x128xf32>
    %397 = arith.addf %396, %395 : vector<8x128xf32>
    %398 = arith.divf %396, %397 : vector<8x128xf32>
    %399 = arith.mulf %390, %368 : vector<8x128xf32>
    %400 = arith.mulf %384, %392 : vector<8x128xf32>
    %401 = arith.addf %399, %400 : vector<8x128xf32>
    %402 = math.tanh %401 : vector<8x128xf32>
    %403 = arith.mulf %398, %402 : vector<8x128xf32>
    %404 = arith.truncf %403 : vector<8x128xf32> to vector<8x128xbf16>
    %405 = arith.index_cast %c3_i32_91 : i32 to index
    %c0_96 = arith.constant 0 : index
    %c0_97 = arith.constant 0 : index
    %406 = vector.load %arg13[%405, %c0_96, %c0_97] : memref<8x8x128xbf16, #tpu.memory_space<vmem>>, vector<1x8x128xbf16>
    %407 = vector.shape_cast %406 : vector<1x8x128xbf16> to vector<8x128xbf16>
    %408 = vector.shape_cast %404 : vector<8x128xbf16> to vector<1x8x128xbf16>
    tpu.vector_store %arg13[%405, %c0_96, %c0_97], %408 {strides = array<i32>} : memref<8x8x128xbf16, #tpu.memory_space<vmem>>, vector<1x8x128xbf16>,
    %c4_i32_98 = arith.constant 4 : i32
    %409 = arith.truncf %403 : vector<8x128xf32> to vector<8x128xbf16>
    %cst_99 = arith.constant dense<0.000000e+00> : vector<8x512xf32>
    %410 = tpu.matmul %409, %1, %cst_99 {dimension_numbers = #tpu.dot_dimension_numbers<[1], [0], [0], [1], [0, 0, 1, 1], [], []>} : vector<8x128xbf16>, vector<128x512xbf16>, vector<8x512xf32> -> vector<8x512xf32>
    %411 = arith.addf %276, %410 : vector<8x512xf32>
    %412 = vector.extract_strided_slice %411 {offsets = [0, 0], sizes = [8, 128], strides = [1, 1]} : vector<8x512xf32> to vector<8x128xf32>
    %413 = arith.negf %412 : vector<8x128xf32>
    %414 = math.exp %413 : vector<8x128xf32>
    %cst_100 = arith.constant 1.000000e+00 : f32
    %415 = vector.broadcast %cst_100 : f32 to vector<8x128xf32>
    %416 = arith.addf %415, %414 : vector<8x128xf32>
    %417 = arith.divf %415, %416 : vector<8x128xf32>
    %418 = vector.extract_strided_slice %411 {offsets = [0, 128], sizes = [8, 128], strides = [1, 1]} : vector<8x512xf32> to vector<8x128xf32>
    %419 = arith.negf %418 : vector<8x128xf32>
    %420 = math.exp %419 : vector<8x128xf32>
    %cst_101 = arith.constant 1.000000e+00 : f32
    %421 = vector.broadcast %cst_101 : f32 to vector<8x128xf32>
    %422 = arith.addf %421, %420 : vector<8x128xf32>
    %423 = arith.divf %421, %422 : vector<8x128xf32>
    %424 = vector.extract_strided_slice %411 {offsets = [0, 256], sizes = [8, 128], strides = [1, 1]} : vector<8x512xf32> to vector<8x128xf32>
    %425 = math.tanh %424 : vector<8x128xf32>
    %426 = vector.extract_strided_slice %411 {offsets = [0, 384], sizes = [8, 128], strides = [1, 1]} : vector<8x512xf32> to vector<8x128xf32>
    %427 = arith.negf %426 : vector<8x128xf32>
    %428 = math.exp %427 : vector<8x128xf32>
    %cst_102 = arith.constant 1.000000e+00 : f32
    %429 = vector.broadcast %cst_102 : f32 to vector<8x128xf32>
    %430 = arith.addf %429, %428 : vector<8x128xf32>
    %431 = arith.divf %429, %430 : vector<8x128xf32>
    %432 = arith.mulf %423, %401 : vector<8x128xf32>
    %433 = arith.mulf %417, %425 : vector<8x128xf32>
    %434 = arith.addf %432, %433 : vector<8x128xf32>
    %435 = math.tanh %434 : vector<8x128xf32>
    %436 = arith.mulf %431, %435 : vector<8x128xf32>
    %437 = arith.truncf %436 : vector<8x128xf32> to vector<8x128xbf16>
    %438 = arith.index_cast %c4_i32_98 : i32 to index
    %c0_103 = arith.constant 0 : index
    %c0_104 = arith.constant 0 : index
    %439 = vector.load %arg13[%438, %c0_103, %c0_104] : memref<8x8x128xbf16, #tpu.memory_space<vmem>>, vector<1x8x128xbf16>
    %440 = vector.shape_cast %439 : vector<1x8x128xbf16> to vector<8x128xbf16>
    %441 = vector.shape_cast %437 : vector<8x128xbf16> to vector<1x8x128xbf16>
    tpu.vector_store %arg13[%438, %c0_103, %c0_104], %441 {strides = array<i32>} : memref<8x8x128xbf16, #tpu.memory_space<vmem>>, vector<1x8x128xbf16>,
    %c5_i32_105 = arith.constant 5 : i32
    %442 = arith.truncf %436 : vector<8x128xf32> to vector<8x128xbf16>
    %cst_106 = arith.constant dense<0.000000e+00> : vector<8x512xf32>
    %443 = tpu.matmul %442, %1, %cst_106 {dimension_numbers = #tpu.dot_dimension_numbers<[1], [0], [0], [1], [0, 0, 1, 1], [], []>} : vector<8x128xbf16>, vector<128x512xbf16>, vector<8x512xf32> -> vector<8x512xf32>
    %444 = arith.addf %276, %443 : vector<8x512xf32>
    %445 = vector.extract_strided_slice %444 {offsets = [0, 0], sizes = [8, 128], strides = [1, 1]} : vector<8x512xf32> to vector<8x128xf32>
    %446 = arith.negf %445 : vector<8x128xf32>
    %447 = math.exp %446 : vector<8x128xf32>
    %cst_107 = arith.constant 1.000000e+00 : f32
    %448 = vector.broadcast %cst_107 : f32 to vector<8x128xf32>
    %449 = arith.addf %448, %447 : vector<8x128xf32>
    %450 = arith.divf %448, %449 : vector<8x128xf32>
    %451 = vector.extract_strided_slice %444 {offsets = [0, 128], sizes = [8, 128], strides = [1, 1]} : vector<8x512xf32> to vector<8x128xf32>
    %452 = arith.negf %451 : vector<8x128xf32>
    %453 = math.exp %452 : vector<8x128xf32>
    %cst_108 = arith.constant 1.000000e+00 : f32
    %454 = vector.broadcast %cst_108 : f32 to vector<8x128xf32>
    %455 = arith.addf %454, %453 : vector<8x128xf32>
    %456 = arith.divf %454, %455 : vector<8x128xf32>
    %457 = vector.extract_strided_slice %444 {offsets = [0, 256], sizes = [8, 128], strides = [1, 1]} : vector<8x512xf32> to vector<8x128xf32>
    %458 = math.tanh %457 : vector<8x128xf32>
    %459 = vector.extract_strided_slice %444 {offsets = [0, 384], sizes = [8, 128], strides = [1, 1]} : vector<8x512xf32> to vector<8x128xf32>
    %460 = arith.negf %459 : vector<8x128xf32>
    %461 = math.exp %460 : vector<8x128xf32>
    %cst_109 = arith.constant 1.000000e+00 : f32
    %462 = vector.broadcast %cst_109 : f32 to vector<8x128xf32>
    %463 = arith.addf %462, %461 : vector<8x128xf32>
    %464 = arith.divf %462, %463 : vector<8x128xf32>
    %465 = arith.mulf %456, %434 : vector<8x128xf32>
    %466 = arith.mulf %450, %458 : vector<8x128xf32>
    %467 = arith.addf %465, %466 : vector<8x128xf32>
    %468 = math.tanh %467 : vector<8x128xf32>
    %469 = arith.mulf %464, %468 : vector<8x128xf32>
    %470 = arith.truncf %469 : vector<8x128xf32> to vector<8x128xbf16>
    %471 = arith.index_cast %c5_i32_105 : i32 to index
    %c0_110 = arith.constant 0 : index
    %c0_111 = arith.constant 0 : index
    %472 = vector.load %arg13[%471, %c0_110, %c0_111] : memref<8x8x128xbf16, #tpu.memory_space<vmem>>, vector<1x8x128xbf16>
    %473 = vector.shape_cast %472 : vector<1x8x128xbf16> to vector<8x128xbf16>
    %474 = vector.shape_cast %470 : vector<8x128xbf16> to vector<1x8x128xbf16>
    tpu.vector_store %arg13[%471, %c0_110, %c0_111], %474 {strides = array<i32>} : memref<8x8x128xbf16, #tpu.memory_space<vmem>>, vector<1x8x128xbf16>,
    %c6_i32_112 = arith.constant 6 : i32
    %475 = arith.truncf %469 : vector<8x128xf32> to vector<8x128xbf16>
    %cst_113 = arith.constant dense<0.000000e+00> : vector<8x512xf32>
    %476 = tpu.matmul %475, %1, %cst_113 {dimension_numbers = #tpu.dot_dimension_numbers<[1], [0], [0], [1], [0, 0, 1, 1], [], []>} : vector<8x128xbf16>, vector<128x512xbf16>, vector<8x512xf32> -> vector<8x512xf32>
    %477 = arith.addf %276, %476 : vector<8x512xf32>
    %478 = vector.extract_strided_slice %477 {offsets = [0, 0], sizes = [8, 128], strides = [1, 1]} : vector<8x512xf32> to vector<8x128xf32>
    %479 = arith.negf %478 : vector<8x128xf32>
    %480 = math.exp %479 : vector<8x128xf32>
    %cst_114 = arith.constant 1.000000e+00 : f32
    %481 = vector.broadcast %cst_114 : f32 to vector<8x128xf32>
    %482 = arith.addf %481, %480 : vector<8x128xf32>
    %483 = arith.divf %481, %482 : vector<8x128xf32>
    %484 = vector.extract_strided_slice %477 {offsets = [0, 128], sizes = [8, 128], strides = [1, 1]} : vector<8x512xf32> to vector<8x128xf32>
    %485 = arith.negf %484 : vector<8x128xf32>
    %486 = math.exp %485 : vector<8x128xf32>
    %cst_115 = arith.constant 1.000000e+00 : f32
    %487 = vector.broadcast %cst_115 : f32 to vector<8x128xf32>
    %488 = arith.addf %487, %486 : vector<8x128xf32>
    %489 = arith.divf %487, %488 : vector<8x128xf32>
    %490 = vector.extract_strided_slice %477 {offsets = [0, 256], sizes = [8, 128], strides = [1, 1]} : vector<8x512xf32> to vector<8x128xf32>
    %491 = math.tanh %490 : vector<8x128xf32>
    %492 = vector.extract_strided_slice %477 {offsets = [0, 384], sizes = [8, 128], strides = [1, 1]} : vector<8x512xf32> to vector<8x128xf32>
    %493 = arith.negf %492 : vector<8x128xf32>
    %494 = math.exp %493 : vector<8x128xf32>
    %cst_116 = arith.constant 1.000000e+00 : f32
    %495 = vector.broadcast %cst_116 : f32 to vector<8x128xf32>
    %496 = arith.addf %495, %494 : vector<8x128xf32>
    %497 = arith.divf %495, %496 : vector<8x128xf32>
    %498 = arith.mulf %489, %467 : vector<8x128xf32>
    %499 = arith.mulf %483, %491 : vector<8x128xf32>
    %500 = arith.addf %498, %499 : vector<8x128xf32>
    %501 = math.tanh %500 : vector<8x128xf32>
    %502 = arith.mulf %497, %501 : vector<8x128xf32>
    %503 = arith.truncf %502 : vector<8x128xf32> to vector<8x128xbf16>
    %504 = arith.index_cast %c6_i32_112 : i32 to index
    %c0_117 = arith.constant 0 : index
    %c0_118 = arith.constant 0 : index
    %505 = vector.load %arg13[%504, %c0_117, %c0_118] : memref<8x8x128xbf16, #tpu.memory_space<vmem>>, vector<1x8x128xbf16>
    %506 = vector.shape_cast %505 : vector<1x8x128xbf16> to vector<8x128xbf16>
    %507 = vector.shape_cast %503 : vector<8x128xbf16> to vector<1x8x128xbf16>
    tpu.vector_store %arg13[%504, %c0_117, %c0_118], %507 {strides = array<i32>} : memref<8x8x128xbf16, #tpu.memory_space<vmem>>, vector<1x8x128xbf16>,
    %c7_i32_119 = arith.constant 7 : i32
    %508 = arith.truncf %502 : vector<8x128xf32> to vector<8x128xbf16>
    %cst_120 = arith.constant dense<0.000000e+00> : vector<8x512xf32>
    %509 = tpu.matmul %508, %1, %cst_120 {dimension_numbers = #tpu.dot_dimension_numbers<[1], [0], [0], [1], [0, 0, 1, 1], [], []>} : vector<8x128xbf16>, vector<128x512xbf16>, vector<8x512xf32> -> vector<8x512xf32>
    %510 = arith.addf %276, %509 : vector<8x512xf32>
    %511 = vector.extract_strided_slice %510 {offsets = [0, 0], sizes = [8, 128], strides = [1, 1]} : vector<8x512xf32> to vector<8x128xf32>
    %512 = arith.negf %511 : vector<8x128xf32>
    %513 = math.exp %512 : vector<8x128xf32>
    %cst_121 = arith.constant 1.000000e+00 : f32
    %514 = vector.broadcast %cst_121 : f32 to vector<8x128xf32>
    %515 = arith.addf %514, %513 : vector<8x128xf32>
    %516 = arith.divf %514, %515 : vector<8x128xf32>
    %517 = vector.extract_strided_slice %510 {offsets = [0, 128], sizes = [8, 128], strides = [1, 1]} : vector<8x512xf32> to vector<8x128xf32>
    %518 = arith.negf %517 : vector<8x128xf32>
    %519 = math.exp %518 : vector<8x128xf32>
    %cst_122 = arith.constant 1.000000e+00 : f32
    %520 = vector.broadcast %cst_122 : f32 to vector<8x128xf32>
    %521 = arith.addf %520, %519 : vector<8x128xf32>
    %522 = arith.divf %520, %521 : vector<8x128xf32>
    %523 = vector.extract_strided_slice %510 {offsets = [0, 256], sizes = [8, 128], strides = [1, 1]} : vector<8x512xf32> to vector<8x128xf32>
    %524 = math.tanh %523 : vector<8x128xf32>
    %525 = vector.extract_strided_slice %510 {offsets = [0, 384], sizes = [8, 128], strides = [1, 1]} : vector<8x512xf32> to vector<8x128xf32>
    %526 = arith.negf %525 : vector<8x128xf32>
    %527 = math.exp %526 : vector<8x128xf32>
    %cst_123 = arith.constant 1.000000e+00 : f32
    %528 = vector.broadcast %cst_123 : f32 to vector<8x128xf32>
    %529 = arith.addf %528, %527 : vector<8x128xf32>
    %530 = arith.divf %528, %529 : vector<8x128xf32>
    %531 = arith.mulf %522, %500 : vector<8x128xf32>
    %532 = arith.mulf %516, %524 : vector<8x128xf32>
    %533 = arith.addf %531, %532 : vector<8x128xf32>
    %534 = math.tanh %533 : vector<8x128xf32>
    %535 = arith.mulf %530, %534 : vector<8x128xf32>
    %536 = arith.truncf %535 : vector<8x128xf32> to vector<8x128xbf16>
    %537 = arith.index_cast %c7_i32_119 : i32 to index
    %c0_124 = arith.constant 0 : index
    %c0_125 = arith.constant 0 : index
    %538 = vector.load %arg13[%537, %c0_124, %c0_125] : memref<8x8x128xbf16, #tpu.memory_space<vmem>>, vector<1x8x128xbf16>
    %539 = vector.shape_cast %538 : vector<1x8x128xbf16> to vector<8x128xbf16>
    %540 = vector.shape_cast %536 : vector<8x128xbf16> to vector<1x8x128xbf16>
    tpu.vector_store %arg13[%537, %c0_124, %c0_125], %540 {strides = array<i32>} : memref<8x8x128xbf16, #tpu.memory_space<vmem>>, vector<1x8x128xbf16>,
    %c8_i32_126 = arith.constant 8 : i32
    %c0_127 = arith.constant 0 : index
    %c0_128 = arith.constant 0 : index
    %c0_129 = arith.constant 0 : index
    %541 = vector.load %arg13[%c0_127, %c0_128, %c0_129] : memref<8x8x128xbf16, #tpu.memory_space<vmem>>, vector<8x8x128xbf16>
    %542 = vector.shape_cast %541 : vector<8x8x128xbf16> to vector<64x128xbf16>
    %c0_130 = arith.constant 0 : index
    %c0_131 = arith.constant 0 : index
    %543 = vector.load %arg8[%c0_130, %c0_131] : memref<128x128xbf16, #tpu.memory_space<vmem>>, vector<128x128xbf16>
    %cst_132 = arith.constant dense<0.000000e+00> : vector<64x128xf32>
    %544 = tpu.matmul %542, %543, %cst_132 {dimension_numbers = #tpu.dot_dimension_numbers<[1], [0], [0], [1], [0, 0, 1, 1], [], []>} : vector<64x128xbf16>, vector<128x128xbf16>, vector<64x128xf32> -> vector<64x128xf32>
    %c0_133 = arith.constant 0 : index
    %c0_134 = arith.constant 0 : index
    %545 = vector.load %arg9[%c0_133, %c0_134] : memref<1x128xf32, #tpu.memory_space<vmem>>, vector<1x128xf32>
    %546 = vector.broadcast %545 : vector<1x128xf32> to vector<64x128xf32>
    %547 = arith.addf %544, %546 : vector<64x128xf32>
    %548 = vector.shape_cast %547 : vector<64x128xf32> to vector<8x8x128xf32>
    %c0_135 = arith.constant 0 : index
    %c0_136 = arith.constant 0 : index
    %c0_137 = arith.constant 0 : index
    %549 = vector.load %arg10[%c0_135, %c0_136, %c0_137] : memref<8x8x128xf32, #tpu.memory_space<vmem>>, vector<8x8x128xf32>
    tpu.vector_store %arg10[%c0_135, %c0_136, %c0_137], %548 {strides = array<i32>} : memref<8x8x128xf32, #tpu.memory_space<vmem>>, vector<8x8x128xf32>,
    return
  }
  func.func @transform_0(%arg0: i32) -> (i32, i32, i32) {
    %c0_i32 = arith.constant 0 : i32
    %c0_i32_0 = arith.constant 0 : i32
    %c0_i32_1 = arith.constant 0 : i32
    return %c0_i32, %arg0, %c0_i32_0 : i32, i32, i32
  }
  func.func @transform_1(%arg0: i32) -> (i32, i32) {
    %c0_i32 = arith.constant 0 : i32
    %c0_i32_0 = arith.constant 0 : i32
    %c0_i32_1 = arith.constant 0 : i32
    return %c0_i32, %c0_i32_0 : i32, i32
  }
  func.func @transform_2(%arg0: i32) -> (i32, i32) {
    %c0_i32 = arith.constant 0 : i32
    %c0_i32_0 = arith.constant 0 : i32
    %c0_i32_1 = arith.constant 0 : i32
    return %c0_i32, %c0_i32_0 : i32, i32
  }
  func.func @transform_3(%arg0: i32) -> (i32, i32) {
    %c0_i32 = arith.constant 0 : i32
    %c0_i32_0 = arith.constant 0 : i32
    %c0_i32_1 = arith.constant 0 : i32
    return %c0_i32, %c0_i32_0 : i32, i32
  }
  func.func @transform_4(%arg0: i32) -> (i32, i32) {
    %c0_i32 = arith.constant 0 : i32
    %c0_i32_0 = arith.constant 0 : i32
    %c0_i32_1 = arith.constant 0 : i32
    return %c0_i32, %c0_i32_0 : i32, i32
  }
  func.func @transform_5(%arg0: i32) -> (i32, i32) {
    %c0_i32 = arith.constant 0 : i32
    %c0_i32_0 = arith.constant 0 : i32
    %c0_i32_1 = arith.constant 0 : i32
    return %c0_i32, %c0_i32_0 : i32, i32
  }
  func.func @transform_6(%arg0: i32) -> (i32, i32) {
    %c0_i32 = arith.constant 0 : i32
    %c0_i32_0 = arith.constant 0 : i32
    %c0_i32_1 = arith.constant 0 : i32
    return %c0_i32, %c0_i32_0 : i32, i32
  }
  func.func @transform_7(%arg0: i32) -> (i32, i32) {
    %c0_i32 = arith.constant 0 : i32
    %c0_i32_0 = arith.constant 0 : i32
    %c0_i32_1 = arith.constant 0 : i32
    return %c0_i32, %c0_i32_0 : i32, i32
  }
  func.func @transform_8(%arg0: i32) -> (i32, i32) {
    %c0_i32 = arith.constant 0 : i32
    %c0_i32_0 = arith.constant 0 : i32
    %c0_i32_1 = arith.constant 0 : i32
    return %c0_i32, %c0_i32_0 : i32, i32
  }
  func.func @transform_9(%arg0: i32) -> (i32, i32, i32) {
    %c0_i32 = arith.constant 0 : i32
    %c0_i32_0 = arith.constant 0 : i32
    %c0_i32_1 = arith.constant 0 : i32
    return %c0_i32, %arg0, %c0_i32_0 : i32, i32, i32
  }
  func.func @transform_10(%arg0: i32) -> (i32, i32) {
    %c0_i32 = arith.constant 0 : i32
    %c0_i32_0 = arith.constant 0 : i32
    return %arg0, %c0_i32 : i32, i32
  }
}

</mosaic_0001>

<bundles_post_ra>
// kernel: lstm_autoencoder_forward.1
= control target key start
LH: loop header
LB: loop body
LE: loop exit
PB: predicated region body
PF: predicated region fallthrough
CT: control target
= control target key end

     0   :  { %v5660_v1 = vmov 0   ;;  %s5646_s1 = inlined_call_operand.vmem [shape: bf16[128,512], index: 1, kind: input, shape index: {}]   ;;  %s5647_s2 = inlined_call_operand.vmem [shape: bf16[128,512], index: 2, kind: input, shape index: {}]   ;;  %s5648_s0 = inlined_call_operand.vmem [shape: bf16[8,8,128], index: 0, kind: input, shape index: {}]   ;;  %s5649_s3 = inlined_call_operand.vmem [shape: f32[1,512], index: 3, kind: input, shape index: {}]   ;;  %s5650_s4 = inlined_call_operand.vmem [shape: bf16[128,512], index: 4, kind: input, shape index: {}]   ;;  %s5651_s5 = inlined_call_operand.vmem [shape: bf16[128,512], index: 5, kind: input, shape index: {}]   ;;  %s5652_s10 = inlined_call_operand.vmem [shape: f32[8,128], index: 10, kind: output, shape index: {1}]   ;;  %s5653_s6 = inlined_call_operand.vmem [shape: f32[1,512], index: 6, kind: input, shape index: {}]   ;;  %s5654_s7 = inlined_call_operand.vmem [shape: bf16[128,128], index: 7, kind: input, shape index: {}]   ;;  %s5655_s8 = inlined_call_operand.vmem [shape: f32[1,128], index: 8, kind: input, shape index: {}]   ;;  %s5656_s9 = inlined_call_operand.vmem [shape: f32[8,8,128], index: 9, kind: output, shape index: {0}]  }
   0x1   :  { %v3544_v0 = vld [vmem:[%s5646_s1 + $0x4] ss:$16 sps:$4 sm:$0xff]   ;;  %377 = vmatprep.mubr.bf16.mxu1 %v5660_v1  ;;  %833 = vmatprep.mubr.bf16.mxu0 %v5660_v1  ;;  %v3546_v2 = vld [vmem:[%s5646_s1] ss:$16 sps:$4 sm:$0xff]   ;;  %v3592_v32 = vld [vmem:[%s5646_s1 + $0xc] ss:$16 sps:$4 sm:$0xff]  }
   0x2   :  { %345 = vmatprep.subr.bf16.mxu1 %v3544_v0  ;;  %v3547_v3 = vld [vmem:[%s5646_s1 + $0x24] ss:$16 sps:$4 sm:$0xff]   ;;  %v3549_v4 = vld [vmem:[%s5646_s1 + $0x20] ss:$16 sps:$4 sm:$0xff]   ;;  %v3590_v35 = vld [vmem:[%s5646_s1 + $0x8] ss:$16 sps:$4 sm:$0xff]  }
   0x3   :  { %346 = vmatpush1.bf16.msra.mxu1 %v3546_v2  ;;  %v4145_v5 = vld [vmem:[%s5647_s2 + $0x4] ss:$16 sps:$4 sm:$0xff]   ;;  %v4150_v6 = vld [vmem:[%s5647_s2] ss:$16 sps:$4 sm:$0xff]   ;;  %v3598_v36 = vld [vmem:[%s5646_s1 + $0x2c] ss:$16 sps:$4 sm:$0xff]  }
   0x4   :  { %347 = vmatprep.subr.bf16.mxu1 %v3547_v3  ;;  %v3553_v7 = vld [vmem:[%s5646_s1 + $0x44] ss:$16 sps:$4 sm:$0xff]   ;;  %801 = vmatprep.subr.bf16.mxu0 %v4145_v5  ;;  %v4165_v9 = vld [vmem:[%s5647_s2 + $0x20] ss:$16 sps:$4 sm:$0xff]   ;;  %v3596_v37 = vld [vmem:[%s5646_s1 + $0x28] ss:$16 sps:$4 sm:$0xff]  }
   0x5   :  { %802 = vmatpush1.bf16.msra.mxu0 %v4150_v6  ;;  %v4160_v8 = vld [vmem:[%s5647_s2 + $0x24] ss:$16 sps:$4 sm:$0xff]   ;;  %v3555_v10 = vld [vmem:[%s5646_s1 + $0x40] ss:$16 sps:$4 sm:$0xff]   ;;  %v3602_v38 = vld [vmem:[%s5646_s1 + $0x4c] ss:$16 sps:$4 sm:$0xff]  }
   0x6   :  { %v3559_v11 = vld [vmem:[%s5646_s1 + $0x64] ss:$16 sps:$4 sm:$0xff]   ;;  %803 = vmatprep.subr.bf16.mxu0 %v4160_v8  ;;  %v4183_v13 = vld [vmem:[%s5647_s2 + $0x40] ss:$16 sps:$4 sm:$0xff]   ;;  %v4301_v39 = vld [vmem:[%s5648_s0 + $0x8] sm:$0xff]  }
   0x7   :  { %348 = vmatpush1.bf16.msra.mxu1 %v3549_v4  ;;  %v4177_v12 = vld [vmem:[%s5647_s2 + $0x44] ss:$16 sps:$4 sm:$0xff]   ;;  %v3561_v14 = vld [vmem:[%s5646_s1 + $0x60] ss:$16 sps:$4 sm:$0xff]   ;;  %v3600_v40 = vld [vmem:[%s5646_s1 + $0x48] ss:$16 sps:$4 sm:$0xff]  }
   0x8   :  { %349 = vmatprep.subr.bf16.mxu1 %v3553_v7  ;;  %v4192_v15 = vld [vmem:[%s5647_s2 + $0x64] ss:$16 sps:$4 sm:$0xff]   ;;  %v4201_v17 = vld [vmem:[%s5647_s2 + $0x60] ss:$16 sps:$4 sm:$0xff]   ;;  %v3605_v41 = vld [vmem:[%s5646_s1 + $0x6c] ss:$16 sps:$4 sm:$0xff]  }
   0x9   :  { %804 = vmatpush1.bf16.msra.mxu0 %v4165_v9  ;;  %v3565_v16 = vld [vmem:[%s5646_s1 + $0x84] ss:$16 sps:$4 sm:$0xff]   ;;  %v3567_v18 = vld [vmem:[%s5646_s1 + $0x80] ss:$16 sps:$4 sm:$0xff]   ;;  %v3603_v42 = vld [vmem:[%s5646_s1 + $0x68] ss:$16 sps:$4 sm:$0xff]  }
   0xa   :  { %805 = vmatprep.subr.bf16.mxu0 %v4177_v12  ;;  %v4210_v19 = vld [vmem:[%s5647_s2 + $0x84] ss:$16 sps:$4 sm:$0xff]   ;;  %v4219_v21 = vld [vmem:[%s5647_s2 + $0x80] ss:$16 sps:$4 sm:$0xff]   ;;  %v3609_v43 = vld [vmem:[%s5646_s1 + $0x8c] ss:$16 sps:$4 sm:$0xff]  }
   0xb   :  { %350 = vmatpush1.bf16.msra.mxu1 %v3555_v10  ;;  %v3571_v20 = vld [vmem:[%s5646_s1 + $0xa4] ss:$16 sps:$4 sm:$0xff]   ;;  %v3573_v22 = vld [vmem:[%s5646_s1 + $0xa0] ss:$16 sps:$4 sm:$0xff]   ;;  %v3607_v45 = vld [vmem:[%s5646_s1 + $0x88] ss:$16 sps:$4 sm:$0xff]   ;;  %v141_v10 = vlaneseq }
   0xc   :  { %351 = vmatprep.subr.bf16.mxu1 %v3559_v11  ;;  %v4228_v23 = vld [vmem:[%s5647_s2 + $0xa4] ss:$16 sps:$4 sm:$0xff]   ;;  %v4237_v25 = vld [vmem:[%s5647_s2 + $0xa0] ss:$16 sps:$4 sm:$0xff]   ;;  %v3612_v46 = vld [vmem:[%s5646_s1 + $0xac] ss:$16 sps:$4 sm:$0xff]  }
   0xd   :  { %806 = vmatpush1.bf16.msra.mxu0 %v4183_v13  ;;  %v3577_v24 = vld [vmem:[%s5646_s1 + $0xc4] ss:$16 sps:$4 sm:$0xff]   ;;  %v3579_v26 = vld [vmem:[%s5646_s1 + $0xc0] ss:$16 sps:$4 sm:$0xff]   ;;  %v3610_v47 = vld [vmem:[%s5646_s1 + $0xa8] ss:$16 sps:$4 sm:$0xff]  }
   0xe   :  { %807 = vmatprep.subr.bf16.mxu0 %v4192_v15  ;;  %v4246_v27 = vld [vmem:[%s5647_s2 + $0xc4] ss:$16 sps:$4 sm:$0xff]   ;;  %v3585_v29 = vld [vmem:[%s5646_s1 + $0xe0] ss:$16 sps:$4 sm:$0xff]   ;;  %v3616_v48 = vld [vmem:[%s5646_s1 + $0xcc] ss:$16 sps:$4 sm:$0xff]  }
   0xf   :  { %352 = vmatpush1.bf16.msra.mxu1 %v3561_v14  ;;  %v3583_v28 = vld [vmem:[%s5646_s1 + $0xe4] ss:$16 sps:$4 sm:$0xff]   ;;  %v4258_v30 = vld [vmem:[%s5647_s2 + $0xc0] ss:$16 sps:$4 sm:$0xff]   ;;  %v3613_v49 = vld [vmem:[%s5648_s0 + $0x18] sm:$0xff]   ;;  %v4484_v11 = vshrl.u32 %v141_v10, 7 }
  0x10   :  { %353 = vmatprep.subr.bf16.mxu1 %v3565_v16  ;;  %v4264_v31 = vld [vmem:[%s5647_s2 + $0xe4] ss:$16 sps:$4 sm:$0xff]   ;;  %v4278_v34 = vld [vmem:[%s5647_s2 + $0xe0] ss:$16 sps:$4 sm:$0xff]   ;;  %v3614_v50 = vld [vmem:[%s5646_s1 + $0xc8] ss:$16 sps:$4 sm:$0xff]  }
  0x11   :  { %808 = vmatpush1.bf16.msra.mxu0 %v4201_v17  ;;  %v4273_v33 = vld [vmem:[%s5648_s0] sm:$0xff]   ;;  %v3606_v44 = vld [vmem:[%s5648_s0 + $0x10] sm:$0xff]   ;;  %v3619_v51 = vld [vmem:[%s5646_s1 + $0xec] ss:$16 sps:$4 sm:$0xff]   ;;  %5670 = vst [vmem:[#allocation4_spill] sm:$0xff] %v4484_v11  ;;  %v5659_v14 = vsub.s32 0, %v4484_v11 }
  0x12   :  { %809 = vmatprep.subr.bf16.mxu0 %v4210_v19  ;;  %v3617_v52 = vld [vmem:[%s5646_s1 + $0xe8] ss:$16 sps:$4 sm:$0xff]   ;;  %v4361_v53 = vld [vmem:[%s5647_s2 + $0xc] ss:$16 sps:$4 sm:$0xff]   ;;  %v139_v16 = vld [vmem:[%s5649_s3] sm:$0xf] }
  0x13   :  { %354 = vmatpush1.bf16.msra.mxu1 %v3567_v18  ;;  %v4368_v54 = vld [vmem:[%s5647_s2 + $0x8] ss:$16 sps:$4 sm:$0xff]   ;;  %v4375_v55 = vld [vmem:[%s5647_s2 + $0x2c] ss:$16 sps:$4 sm:$0xff]   ;;  %v5657_v18 = vsub.s32 1, %v4484_v11 }
  0x14   :  { %355 = vmatprep.subr.bf16.mxu1 %v3571_v20  ;;  %v4383_v56 = vld [vmem:[%s5647_s2 + $0x28] ss:$16 sps:$4 sm:$0xff]   ;;  %v4390_v57 = vld [vmem:[%s5647_s2 + $0x4c] ss:$16 sps:$4 sm:$0xff]   ;;  %v144_v20 = vrot.slane %v139_v16, %v5659_v14 }
  0x15   :  { %810 = vmatpush1.bf16.msra.mxu0 %v4219_v21  ;;  %v4397_v58 = vld [vmem:[%s5647_s2 + $0x48] ss:$16 sps:$4 sm:$0xff]   ;;  %v4403_v59 = vld [vmem:[%s5647_s2 + $0x6c] ss:$16 sps:$4 sm:$0xff]  }
  0x16   :  { %811 = vmatprep.subr.bf16.mxu0 %v4228_v23  ;;  %v4410_v60 = vld [vmem:[%s5647_s2 + $0x68] ss:$16 sps:$4 sm:$0xff]   ;;  %v4417_v61 = vld [vmem:[%s5647_s2 + $0x8c] ss:$16 sps:$4 sm:$0xff]  }
  0x17   :  { %356 = vmatpush1.bf16.msra.mxu1 %v3573_v22  ;;  %v4423_v62 = vld [vmem:[%s5647_s2 + $0x88] ss:$16 sps:$4 sm:$0xff]   ;;  %v4429_v63 = vld [vmem:[%s5647_s2 + $0xac] ss:$16 sps:$4 sm:$0xff]   ;;  %v148_v22 = vrot.slane %v139_v16, %v5657_v18 }
  0x18   :  { %357 = vmatprep.subr.bf16.mxu1 %v3577_v24  ;;  %v4435_v0 = vld [vmem:[%s5647_s2 + $0xa8] ss:$16 sps:$4 sm:$0xff]   ;;  %v4442_v2 = vld [vmem:[%s5647_s2 + $0xcc] ss:$16 sps:$4 sm:$0xff]  }
  0x19   :  { %812 = vmatpush1.bf16.msra.mxu0 %v4237_v25  ;;  %v4448_v3 = vld [vmem:[%s5647_s2 + $0xc8] ss:$16 sps:$4 sm:$0xff]   ;;  %v4454_v4 = vld [vmem:[%s5647_s2 + $0xec] ss:$16 sps:$4 sm:$0xff]  }
  0x1a   :  { %813 = vmatprep.subr.bf16.mxu0 %v4246_v27  ;;  %v4460_v7 = vld [vmem:[%s5647_s2 + $0xe8] ss:$16 sps:$4 sm:$0xff]  }
  0x1b   :  { %358 = vmatpush1.bf16.msra.mxu1 %v3579_v26 }
  0x1c   :  { %359 = vmatprep.subr.bf16.mxu1 %v3583_v28 }
  0x1d   :  { %814 = vmatpush1.bf16.msra.mxu0 %v4258_v30 }
  0x1e   :  { %815 = vmatprep.subr.bf16.mxu0 %v4264_v31 }
  0x1f   :  { %360 = vmatpush1.bf16.msra.mxu1 %v3585_v29 }
  0x20   :  { %418 = vmatprep.subr.bf16.mxu1 %v3592_v32 }
  0x21   :  { %816 = vmatpush1.bf16.msra.mxu0 %v4278_v34 }
  0x22   :  { %378 = vmatmul.mubr.bf16.vlgmr.msra.gmra.mrb[0].mxu1 %v4273_v33  ;;  %919 = vmatprep.subr.bf16.mxu0 %v4145_v5 }
  0x23   :  { %419 = vmatpush1.bf16.msra.mxu1 %v3590_v35  ;;  %387 = vmatprep.mubr.bf16.mxu1 %v5660_v1 }
  0x24   :  { %420 = vmatprep.subr.bf16.mxu1 %v3598_v36  ;;  %834 = vmatmul.mubr.bf16.vlgmr.msra.gmra.mrb[0].mxu0 %v5660_v1 }
  0x25   :  { %920 = vmatpush1.bf16.msra.mxu0 %v4150_v6  ;;  %951 = vmatprep.mubr.bf16.mxu0 %v5660_v1 }
  0x26   :  { %921 = vmatprep.subr.bf16.mxu0 %v4160_v8 }
  0x27   :  { %421 = vmatpush1.bf16.msra.mxu1 %v3596_v37 }
  0x28   :  { %422 = vmatprep.subr.bf16.mxu1 %v3602_v38 }
  0x29   :  { %922 = vmatpush1.bf16.msra.mxu0 %v4165_v9 }
  0x2a   :  { %388 = vmatmul.mubr.bf16.gmra.mrb[4].mxu1 %v4301_v39  ;;  %923 = vmatprep.subr.bf16.mxu0 %v4177_v12 }
  0x2b   :  { %423 = vmatpush1.bf16.msra.mxu1 %v3600_v40  ;;  %397 = vmatprep.mubr.bf16.mxu1 %v5660_v1 }
  0x2c   :  { %424 = vmatprep.subr.bf16.mxu1 %v3605_v41 }
  0x2d   :  { %924 = vmatpush1.bf16.msra.mxu0 %v4183_v13 }
  0x2e   :  { %925 = vmatprep.subr.bf16.mxu0 %v4192_v15 }
  0x2f   :  { %425 = vmatpush1.bf16.msra.mxu1 %v3603_v42 }
  0x30   :  { %426 = vmatprep.subr.bf16.mxu1 %v3609_v43 }
  0x31   :  { %926 = vmatpush1.bf16.msra.mxu0 %v4201_v17 }
  0x32   :  { %398 = vmatmul.mubr.bf16.gmra.mrb[8].mxu1 %v3606_v44  ;;  %927 = vmatprep.subr.bf16.mxu0 %v4210_v19 }
  0x33   :  { %427 = vmatpush1.bf16.msra.mxu1 %v3607_v45  ;;  %407 = vmatprep.mubr.bf16.mxu1 %v5660_v1 }
  0x34   :  { %428 = vmatprep.subr.bf16.mxu1 %v3612_v46 }
  0x35   :  { %928 = vmatpush1.bf16.msra.mxu0 %v4219_v21 }
  0x36   :  { %929 = vmatprep.subr.bf16.mxu0 %v4228_v23 }
  0x37   :  { %429 = vmatpush1.bf16.msra.mxu1 %v3610_v47 }
  0x38   :  { %430 = vmatprep.subr.bf16.mxu1 %v3616_v48 }
  0x39   :  { %930 = vmatpush1.bf16.msra.mxu0 %v4237_v25 }
  0x3a   :  { %408 = vmatmul.mubr.bf16.gmra.mrb[12].mxu1 %v3613_v49  ;;  %931 = vmatprep.subr.bf16.mxu0 %v4246_v27 }
  0x3b   :  { %431 = vmatpush1.bf16.msra.mxu1 %v3614_v50  ;;  %450 = vmatprep.mubr.bf16.mxu1 %v5660_v1 }
  0x3c   :  { %432 = vmatprep.subr.bf16.mxu1 %v3619_v51 }
  0x3d   :  { %932 = vmatpush1.bf16.msra.mxu0 %v4258_v30 }
  0x3e   :  { %933 = vmatprep.subr.bf16.mxu0 %v4264_v31 }
  0x3f   :  { %433 = vmatpush1.bf16.msra.mxu1 %v3617_v52 }
  0x40   :  { %842 = vmatprep.subr.bf16.mxu1 %v4361_v53 }
  0x41   :  { %934 = vmatpush1.bf16.msra.mxu0 %v4278_v34 }
  0x42   :  { %451 = vmatmul.mubr.bf16.vlgmr.msra.gmra.mrb[16].mxu1 %v4273_v33  ;;  %1037 = vmatprep.subr.bf16.mxu0 %v4145_v5 }
  0x43   :  { %843 = vmatpush1.bf16.msra.mxu1 %v4368_v54  ;;  %460 = vmatprep.mubr.bf16.mxu1 %v5660_v1 }
  0x44   :  { %844 = vmatprep.subr.bf16.mxu1 %v4375_v55 }
  0x47   :  { %845 = vmatpush1.bf16.msra.mxu1 %v4383_v56 }
  0x48   :  { %846 = vmatprep.subr.bf16.mxu1 %v4390_v57 }
  0x4a   :  { %461 = vmatmul.mubr.bf16.gmra.mrb[20].mxu1 %v4301_v39 }
  0x4b   :  { %847 = vmatpush1.bf16.msra.mxu1 %v4397_v58  ;;  %470 = vmatprep.mubr.bf16.mxu1 %v5660_v1 }
  0x4c   :  { %848 = vmatprep.subr.bf16.mxu1 %v4403_v59 }
  0x4f   :  { %849 = vmatpush1.bf16.msra.mxu1 %v4410_v60 }
  0x50   :  { %850 = vmatprep.subr.bf16.mxu1 %v4417_v61 }
  0x52   :  { %471 = vmatmul.mubr.bf16.gmra.mrb[24].mxu1 %v3606_v44 }
  0x53   :  { %851 = vmatpush1.bf16.msra.mxu1 %v4423_v62  ;;  %480 = vmatprep.mubr.bf16.mxu1 %v5660_v1 }
  0x54   :  { %852 = vmatprep.subr.bf16.mxu1 %v4429_v63 }
  0x57   :  { %853 = vmatpush1.bf16.msra.mxu1 %v4435_v0 }
  0x58   :  { %854 = vmatprep.subr.bf16.mxu1 %v4442_v2 }
  0x5a   :  { %481 = vmatmul.mubr.bf16.gmra.mrb[28].mxu1 %v3613_v49 }
  0x5b   :  { %855 = vmatpush1.bf16.msra.mxu1 %v4448_v3  ;;  %874 = vmatprep.mubr.bf16.mxu1 %v5660_v1 }
  0x5c   :  { %856 = vmatprep.subr.bf16.mxu1 %v4454_v4 }
  0x5f   :  { %857 = vmatpush1.bf16.msra.mxu1 %v4460_v7 }
  0x60   :  { %960 = vmatprep.subr.bf16.mxu1 %v4361_v53 }
  0x62   :  { %875 = vmatmul.mubr.bf16.vlgmr.msra.gmra.mrb[32].mxu1 %v5660_v1 }
  0x63   :  { %961 = vmatpush1.bf16.msra.mxu1 %v4368_v54  ;;  %992 = vmatprep.mubr.bf16.mxu1 %v5660_v1 }
  0x64   :  { %962 = vmatprep.subr.bf16.mxu1 %v4375_v55 }
  0x67   :  { %963 = vmatpush1.bf16.msra.mxu1 %v4383_v56 }
  0x68   :  { %964 = vmatprep.subr.bf16.mxu1 %v4390_v57 }
  0x6b   :  { %965 = vmatpush1.bf16.msra.mxu1 %v4397_v58 }
  0x6c   :  { %966 = vmatprep.subr.bf16.mxu1 %v4403_v59 }
  0x6f   :  { %967 = vmatpush1.bf16.msra.mxu1 %v4410_v60 }
  0x70   :  { %968 = vmatprep.subr.bf16.mxu1 %v4417_v61 }
  0x73   :  { %969 = vmatpush1.bf16.msra.mxu1 %v4423_v62 }
  0x74   :  { %970 = vmatprep.subr.bf16.mxu1 %v4429_v63 }
  0x77   :  { %971 = vmatpush1.bf16.msra.mxu1 %v4435_v0 }
  0x78   :  { %972 = vmatprep.subr.bf16.mxu1 %v4442_v2 }
  0x7b   :  { %973 = vmatpush1.bf16.msra.mxu1 %v4448_v3 }
  0x7c   :  { %974 = vmatprep.subr.bf16.mxu1 %v4454_v4 }
  0x7f   :  { %975 = vmatpush1.bf16.msra.mxu1 %v4460_v7 }
  0x80   :  { %1078 = vmatprep.subr.bf16.mxu1 %v4361_v53 }
  0xf5   :  { %v379_v24 = vpop.f32.mrb[0].mxu1 }
  0xf6   :  { %v380_v26 = vadd.f32 %v379_v24, %v144_v20  ;;  %v381_v28 = vpop.f32.mrb[1].mxu1 }
  0xf7   :  { %v382_v29 = vadd.f32 %v381_v28, %v148_v22  ;;  %v383_v32 = vpop.f32.mrb[2].mxu1  ;;  %v835_v36 = vpop.f32.mrb[0].mxu0 }
  0xf8   :  { %v384_v33 = vadd.f32 %v383_v32, %v144_v20  ;;  %v385_v35 = vpop.f32.mrb[3].mxu1  ;;  %v837_v39 = vpop.f32.mrb[1].mxu0 }
  0xf9   :  { %v3491_v37 = vpack.c.bf16 %v382_v29, %v380_v26  ;;  %v386_v38 = vadd.f32 %v385_v35, %v148_v22  ;;  %v839_v40 = vpop.f32.mrb[2].mxu0 }
  0xfa   :  { %v840_v44 = vpop.f32.mrb[3].mxu0 }
  0xfb   :  { %v4495_v41 = vpack.c.bf16 %v386_v38, %v384_v33  ;;  %v637_v42 = vunpack.c.l.bf16 %v3491_v37  ;;  %v638_v43 = vunpack.c.h.bf16 %v3491_v37 }
  0xfd   :  { %v883_v45 = vadd.f32 %v835_v36, %v637_v42  ;;  %v884_v46 = vadd.f32 %v837_v39, %v638_v43  ;;  %v389_v47 = vpop.f32.mrb[4].mxu1 }
  0xfe   :  { %v390_v48 = vadd.f32 %v389_v47, %v144_v20  ;;  %v391_v49 = vpop.f32.mrb[5].mxu1 }
  0xff   :  { %v392_v50 = vadd.f32 %v391_v49, %v148_v22  ;;  %v393_v51 = vpop.f32.mrb[6].mxu1  ;;  %v3367_v1 = vmul.f32 -1.442695, %v884_v46 }
 0x100   :  { %v394_v52 = vadd.f32 %v393_v51, %v144_v20  ;;  %v395_v10 = vpop.f32.mrb[7].mxu1  ;;  %v5662_v51 = vsub.s32 3, %v4484_v11 }
 0x101   :  { %v4497_v24 = vpack.c.bf16 %v392_v50, %v390_v48  ;;  %v396_v26 = vadd.f32 %v395_v10, %v148_v22  ;;  %v5658_v48 = vsub.s32 2, %v4484_v11  ;;  %3752 = vpow2.f32 %v3367_v1 }
 0x103   :  { %v4499_v28 = vpack.c.bf16 %v396_v26, %v394_v52 }
 0x105   :  { %v399_v29 = vpop.f32.mrb[8].mxu1 }
 0x106   :  { %v400_v32 = vadd.f32 %v399_v29, %v144_v20  ;;  %v401_v33 = vpop.f32.mrb[9].mxu1 }
 0x107   :  { %v402_v35 = vadd.f32 %v401_v33, %v148_v22  ;;  %v403_v37 = vpop.f32.mrb[10].mxu1 }
 0x108   :  { %v404_v38 = vadd.f32 %v403_v37, %v144_v20  ;;  %v405_v36 = vpop.f32.mrb[11].mxu1 }
 0x109   :  { %v4501_v39 = vpack.c.bf16 %v402_v35, %v400_v32  ;;  %v406_v40 = vadd.f32 %v405_v36, %v148_v22  ;;  %v152_v32 = vrot.slane %v139_v16, %v5658_v48  ;;  %v156_v35 = vrot.slane %v139_v16, %v5662_v51 }
 0x10a   :  { %v3366_v51 = vmul.f32 -1.442695, %v883_v45 }
 0x10b   :  { %v4503_v42 = vpack.c.bf16 %v406_v40, %v404_v38  ;;  %v3753_v45 = vpop.eup %3752 }
 0x10c   :  { %3754 = vpow2.f32 %v3366_v51 }
 0x10d   :  { %v409_v43 = vpop.f32.mrb[12].mxu1 }
 0x10e   :  { %v410_v44 = vadd.f32 %v409_v43, %v144_v20  ;;  %v411_v47 = vpop.f32.mrb[13].mxu1 }
 0x10f   :  { %v412_v49 = vadd.f32 %v411_v47, %v148_v22  ;;  %v413_v50 = vpop.f32.mrb[14].mxu1 }
 0x110   :  { %v414_v52 = vadd.f32 %v413_v50, %v144_v20  ;;  %v415_v10 = vpop.f32.mrb[15].mxu1 }
 0x111   :  { %v4507_v26 = vpack.c.bf16 %v412_v49, %v410_v44  ;;  %v416_v29 = vadd.f32 %v415_v10, %v148_v22 }
 0x113   :  { %5671 = vst [vmem:[#allocation5_spill] sm:$0xff] %v4507_v26  ;;  %v4511_v33 = vpack.c.bf16 %v416_v29, %v414_v52 }
 0x115   :  { %5672 = vst [vmem:[#allocation6_spill] sm:$0xff] %v4511_v33  ;;  %v452_v37 = vpop.f32.mrb[16].mxu1  ;;  %v896_v33 = vadd.f32 1.0, %v3753_v45 }
 0x116   :  { %v453_v38 = vadd.f32 %v452_v37, %v152_v32  ;;  %v454_v36 = vpop.f32.mrb[17].mxu1  ;;  %v3755_v1 = vpop.eup %3754 }
 0x117   :  { %v455_v40 = vadd.f32 %v454_v36, %v156_v35  ;;  %v456_v43 = vpop.f32.mrb[18].mxu1  ;;  %3756 = vrcp.f32 %v896_v33 }
 0x118   :  { %v457_v47 = vadd.f32 %v456_v43, %v152_v32  ;;  %v458_v18 = vpop.f32.mrb[19].mxu1 }
 0x119   :  { %v3492_v20 = vpack.c.bf16 %v455_v40, %v453_v38  ;;  %v459_v50 = vadd.f32 %v458_v18, %v156_v35 }
 0x11b   :  { %v4515_v44 = vpack.c.bf16 %v459_v50, %v457_v47 }
 0x11d   :  { %v462_v22 = vpop.f32.mrb[20].mxu1 }
 0x11e   :  { %v463_v49 = vadd.f32 %v462_v22, %v152_v32  ;;  %v464_v10 = vpop.f32.mrb[21].mxu1 }
 0x11f   :  { %v465_v48 = vadd.f32 %v464_v10, %v156_v35  ;;  %v466_v52 = vpop.f32.mrb[22].mxu1 }
 0x120   :  { %v467_v29 = vadd.f32 %v466_v52, %v152_v32  ;;  %v468_v14 = vpop.f32.mrb[23].mxu1 }
 0x121   :  { %v4517_v16 = vpack.c.bf16 %v465_v48, %v463_v49  ;;  %v469_v37 = vadd.f32 %v468_v14, %v156_v35 }
 0x123   :  { %v4519_v36 = vpack.c.bf16 %v469_v37, %v467_v29 }
 0x125   :  { %v472_v43 = vpop.f32.mrb[24].mxu1 }
 0x126   :  { %v473_v18 = vadd.f32 %v472_v43, %v152_v32  ;;  %v474_v38 = vpop.f32.mrb[25].mxu1 }
 0x127   :  { %v475_v40 = vadd.f32 %v474_v38, %v156_v35  ;;  %v476_v47 = vpop.f32.mrb[26].mxu1 }
 0x128   :  { %v477_v50 = vadd.f32 %v476_v47, %v152_v32  ;;  %v478_v22 = vpop.f32.mrb[27].mxu1  ;;  %v890_v47 = vadd.f32 1.0, %v3755_v1 }
 0x129   :  { %v4521_v10 = vpack.c.bf16 %v475_v40, %v473_v18  ;;  %v479_v52 = vadd.f32 %v478_v22, %v156_v35  ;;  %v639_v18 = vunpack.c.l.bf16 %v3492_v20 }
 0x12a   :  { %3758 = vrcp.f32 %v890_v47 }
 0x12b   :  { %v4523_v11 = vpack.c.bf16 %v479_v52, %v477_v50  ;;  %v640_v50 = vunpack.c.h.bf16 %v3492_v20 }
 0x12d   :  { %5673 = vst [vmem:[#allocation7_spill] sm:$0xff] %v4523_v11  ;;  %v482_v46 = vpop.f32.mrb[28].mxu1 }
 0x12e   :  { %v483_v48 = vadd.f32 %v482_v46, %v152_v32  ;;  %v484_v14 = vpop.f32.mrb[29].mxu1 }
 0x12f   :  { %v485_v49 = vadd.f32 %v484_v14, %v156_v35  ;;  %v486_v29 = vpop.f32.mrb[30].mxu1 }
 0x130   :  { %v487_v37 = vadd.f32 %v486_v29, %v152_v32  ;;  %v488_v51 = vpop.f32.mrb[31].mxu1 }
 0x131   :  { %v4525_v43 = vpack.c.bf16 %v485_v49, %v483_v48  ;;  %v489_v38 = vadd.f32 %v488_v51, %v156_v35  ;;  %v3757_v48 = vpop.eup %3756 }
 0x132   :  { %v906_v45 = vmul.f32 0.0, %v3757_v48 }
 0x133   :  { %5674 = vst [vmem:[#allocation8_spill] sm:$0xff] %v4525_v43  ;;  %v4527_v26 = vpack.c.bf16 %v489_v38, %v487_v37 }
 0x134   :  { %v3759_v49 = vpop.eup %3758 }
 0x135   :  { %5675 = vst [vmem:[#allocation9_spill] sm:$0xff] %v4527_v26  ;;  %v876_v40 = vpop.f32.mrb[32].mxu1 }
 0x136   :  { %v885_v22 = vadd.f32 %v876_v40, %v639_v18  ;;  %v878_v52 = vpop.f32.mrb[33].mxu1  ;;  %v914_v18 = vunpack.c.l.bf16 %v4495_v41  ;;  %v916_v40 = vunpack.c.l.bf16 %v4515_v44 }
 0x137   :  { %v886_v46 = vadd.f32 %v878_v52, %v640_v50  ;;  %v880_v14 = vpop.f32.mrb[34].mxu1  ;;  %v915_v52 = vunpack.c.h.bf16 %v4495_v41 }
 0x138   :  { %3760 = vtanh.f32 %v885_v22  ;;  %v881_v11 = vpop.f32.mrb[35].mxu1 }
 0x139   :  { %v3368_v32 = vmul.f32 -1.442695, %v886_v46  ;;  %v5676_v11 = vmov 0   ;;  %v917_v46 = vunpack.c.h.bf16 %v4515_v44 }
 0x13b   :  { %3762 = vpow2.f32 %v3368_v32 }
 0x142   :  { %v3761_v35 = vpop.eup %3760 }
 0x143   :  { %v907_v29 = vmul.f32 %v3761_v35, %v3759_v49 }
 0x145   :  { %v3763_v1 = vpop.eup %3762  ;;  %v4529_v37 = vadd.f32 %v907_v29, %v906_v45 }
 0x146   :  { %v903_v51 = vadd.f32 1.0, %v3763_v1 }
 0x147   :  { %3764 = vtanh.f32 %v4529_v37 }
 0x148   :  { %3766 = vrcp.f32 %v903_v51 }
 0x151   :  { %v3765_v33 = vpop.eup %3764 }
 0x152   :  { %v3767_v20 = vpop.eup %3766 }
 0x153   :  { %v910_v38 = vmul.f32 %v3767_v20, %v3765_v33 }
 0x155   :  { %v918_v47 = vpack.c.bf16 %v910_v38, %v910_v38 }
 0x157   :  { %952 = vmatmul.mubr.bf16.vlgmr.msra.gmra.mrb[4].mxu0 %v918_v47  ;;  %993 = vmatmul.mubr.bf16.vlgmr.msra.gmra.mrb[36].mxu1 %v918_v47 }
 0x158   :  { %1038 = vmatpush1.bf16.msra.mxu0 %v4150_v6  ;;  %1079 = vmatpush1.bf16.msra.mxu1 %v4368_v54 }
 0x159   :  { %1039 = vmatprep.subr.bf16.mxu0 %v4160_v8  ;;  %1080 = vmatprep.subr.bf16.mxu1 %v4375_v55 }
 0x15a   :  { %1069 = vmatprep.mubr.bf16.mxu0 %v5676_v11  ;;  %1110 = vmatprep.mubr.bf16.mxu1 %v5676_v11 }
 0x15c   :  { %1040 = vmatpush1.bf16.msra.mxu0 %v4165_v9  ;;  %1081 = vmatpush1.bf16.msra.mxu1 %v4383_v56 }
 0x15d   :  { %1041 = vmatprep.subr.bf16.mxu0 %v4177_v12  ;;  %1082 = vmatprep.subr.bf16.mxu1 %v4390_v57 }
 0x160   :  { %1042 = vmatpush1.bf16.msra.mxu0 %v4183_v13  ;;  %1083 = vmatpush1.bf16.msra.mxu1 %v4397_v58 }
 0x161   :  { %1043 = vmatprep.subr.bf16.mxu0 %v4192_v15  ;;  %1084 = vmatprep.subr.bf16.mxu1 %v4403_v59 }
 0x164   :  { %1044 = vmatpush1.bf16.msra.mxu0 %v4201_v17  ;;  %1085 = vmatpush1.bf16.msra.mxu1 %v4410_v60 }
 0x165   :  { %1045 = vmatprep.subr.bf16.mxu0 %v4210_v19  ;;  %1086 = vmatprep.subr.bf16.mxu1 %v4417_v61 }
 0x168   :  { %1046 = vmatpush1.bf16.msra.mxu0 %v4219_v21  ;;  %1087 = vmatpush1.bf16.msra.mxu1 %v4423_v62 }
 0x169   :  { %1047 = vmatprep.subr.bf16.mxu0 %v4228_v23  ;;  %1088 = vmatprep.subr.bf16.mxu1 %v4429_v63 }
 0x16c   :  { %1048 = vmatpush1.bf16.msra.mxu0 %v4237_v25  ;;  %1089 = vmatpush1.bf16.msra.mxu1 %v4435_v0 }
 0x16d   :  { %1049 = vmatprep.subr.bf16.mxu0 %v4246_v27  ;;  %1090 = vmatprep.subr.bf16.mxu1 %v4442_v2 }
 0x170   :  { %1050 = vmatpush1.bf16.msra.mxu0 %v4258_v30  ;;  %1091 = vmatpush1.bf16.msra.mxu1 %v4448_v3 }
 0x171   :  { %1051 = vmatprep.subr.bf16.mxu0 %v4264_v31  ;;  %1092 = vmatprep.subr.bf16.mxu1 %v4454_v4 }
 0x174   :  { %1052 = vmatpush1.bf16.msra.mxu0 %v4278_v34  ;;  %1093 = vmatpush1.bf16.msra.mxu1 %v4460_v7 }
 0x175   :  { %1155 = vmatprep.subr.bf16.mxu0 %v4145_v5  ;;  %1196 = vmatprep.subr.bf16.mxu1 %v4361_v53 }
 0x22a   :  { %v953_v50 = vpop.f32.mrb[4].mxu0  ;;  %v994_v22 = vpop.f32.mrb[36].mxu1 }
 0x22b   :  { %v1001_v14 = vadd.f32 %v953_v50, %v914_v18  ;;  %v1003_v32 = vadd.f32 %v994_v22, %v916_v40  ;;  %v955_v48 = vpop.f32.mrb[5].mxu0  ;;  %v996_v49 = vpop.f32.mrb[37].mxu1 }
 0x22c   :  { %v1002_v35 = vadd.f32 %v955_v48, %v915_v52  ;;  %v1004_v45 = vadd.f32 %v996_v49, %v917_v46  ;;  %v957_v29 = vpop.f32.mrb[6].mxu0  ;;  %v998_v1 = vpop.f32.mrb[38].mxu1 }
 0x22d   :  { %v3369_v51 = vmul.f32 -1.442695, %v1001_v14  ;;  %v958_v33 = vpop.f32.mrb[7].mxu0  ;;  %v999_v20 = vpop.f32.mrb[39].mxu1 }
 0x22e   :  { %v3370_v38 = vmul.f32 -1.442695, %v1002_v35  ;;  %v3371_v47 = vmul.f32 -1.442695, %v1004_v45 }
 0x22f   :  { %3768 = vpow2.f32 %v3369_v51 }
 0x230   :  { %3770 = vpow2.f32 %v3370_v38 }
 0x231   :  { %3772 = vpow2.f32 %v3371_v47 }
 0x232   :  { %3774 = vtanh.f32 %v1003_v32 }
 0x239   :  { %v3769_v26 = vpop.eup %3768 }
 0x23a   :  { %v3771_v43 = vpop.eup %3770  ;;  %v1008_v41 = vadd.f32 1.0, %v3769_v26 }
 0x23b   :  { %v1014_v44 = vadd.f32 1.0, %v3771_v43  ;;  %v3773_v18 = vpop.eup %3772 }
 0x23c   :  { %3776 = vrcp.f32 %v1008_v41  ;;  %v3775_v40 = vpop.eup %3774  ;;  %v1021_v46 = vadd.f32 1.0, %v3773_v18 }
 0x23d   :  { %3778 = vrcp.f32 %v1014_v44 }
 0x23e   :  { %3780 = vrcp.f32 %v1021_v46 }
 0x246   :  { %v3777_v50 = vpop.eup %3776 }
 0x247   :  { %v3779_v22 = vpop.eup %3778  ;;  %v1025_v52 = vmul.f32 %v3777_v50, %v3775_v40 }
 0x248   :  { %v1024_v14 = vmul.f32 %v3779_v22, %v4529_v37  ;;  %v3781_v49 = vpop.eup %3780 }
 0x24a   :  { %v4571_v48 = vadd.f32 %v1025_v52, %v1024_v14 }
 0x24c   :  { %3782 = vtanh.f32 %v4571_v48 }
 0x256   :  { %v3783_v26 = vpop.eup %3782 }
 0x257   :  { %v1028_v35 = vmul.f32 %v3783_v26, %v3781_v49 }
 0x259   :  { %v1036_v32 = vpack.c.bf16 %v1028_v35, %v1028_v35 }
 0x25b   :  { %1070 = vmatmul.mubr.bf16.vlgmr.msra.gmra.mrb[8].mxu0 %v1036_v32  ;;  %1111 = vmatmul.mubr.bf16.vlgmr.msra.gmra.mrb[40].mxu1 %v1036_v32 }
 0x25c   :  { %1156 = vmatpush1.bf16.msra.mxu0 %v4150_v6  ;;  %1197 = vmatpush1.bf16.msra.mxu1 %v4368_v54  ;;  %v1032_v6 = vunpack.c.l.bf16 %v4497_v24 }
 0x25d   :  { %1157 = vmatprep.subr.bf16.mxu0 %v4160_v8  ;;  %1198 = vmatprep.subr.bf16.mxu1 %v4375_v55  ;;  %v1034_v8 = vunpack.c.l.bf16 %v4517_v16 }
 0x25e   :  { %1187 = vmatprep.mubr.bf16.mxu0 %v5676_v11  ;;  %1228 = vmatprep.mubr.bf16.mxu1 %v5676_v11 }
 0x260   :  { %1158 = vmatpush1.bf16.msra.mxu0 %v4165_v9  ;;  %1199 = vmatpush1.bf16.msra.mxu1 %v4383_v56 }
 0x261   :  { %1159 = vmatprep.subr.bf16.mxu0 %v4177_v12  ;;  %1200 = vmatprep.subr.bf16.mxu1 %v4390_v57 }
 0x264   :  { %1160 = vmatpush1.bf16.msra.mxu0 %v4183_v13  ;;  %1201 = vmatpush1.bf16.msra.mxu1 %v4397_v58  ;;  %v1033_v13 = vunpack.c.h.bf16 %v4497_v24 }
 0x265   :  { %1161 = vmatprep.subr.bf16.mxu0 %v4192_v15  ;;  %1202 = vmatprep.subr.bf16.mxu1 %v4403_v59  ;;  %v1035_v15 = vunpack.c.h.bf16 %v4517_v16 }
 0x268   :  { %1162 = vmatpush1.bf16.msra.mxu0 %v4201_v17  ;;  %1203 = vmatpush1.bf16.msra.mxu1 %v4410_v60 }
 0x269   :  { %1163 = vmatprep.subr.bf16.mxu0 %v4210_v19  ;;  %1204 = vmatprep.subr.bf16.mxu1 %v4417_v61 }
 0x26c   :  { %1164 = vmatpush1.bf16.msra.mxu0 %v4219_v21  ;;  %1205 = vmatpush1.bf16.msra.mxu1 %v4423_v62 }
 0x26d   :  { %1165 = vmatprep.subr.bf16.mxu0 %v4228_v23  ;;  %1206 = vmatprep.subr.bf16.mxu1 %v4429_v63 }
 0x270   :  { %1166 = vmatpush1.bf16.msra.mxu0 %v4237_v25  ;;  %1207 = vmatpush1.bf16.msra.mxu1 %v4435_v0 }
 0x271   :  { %1167 = vmatprep.subr.bf16.mxu0 %v4246_v27  ;;  %1208 = vmatprep.subr.bf16.mxu1 %v4442_v2 }
 0x274   :  { %1168 = vmatpush1.bf16.msra.mxu0 %v4258_v30  ;;  %1209 = vmatpush1.bf16.msra.mxu1 %v4448_v3 }
 0x275   :  { %1169 = vmatprep.subr.bf16.mxu0 %v4264_v31  ;;  %1210 = vmatprep.subr.bf16.mxu1 %v4454_v4 }
 0x278   :  { %1170 = vmatpush1.bf16.msra.mxu0 %v4278_v34  ;;  %1211 = vmatpush1.bf16.msra.mxu1 %v4460_v7 }
 0x279   :  { %1273 = vmatprep.subr.bf16.mxu0 %v4145_v5  ;;  %1314 = vmatprep.subr.bf16.mxu1 %v4361_v53 }
 0x32e   :  { %v1071_v9 = vpop.f32.mrb[8].mxu0  ;;  %v1112_v12 = vpop.f32.mrb[40].mxu1 }
 0x32f   :  { %v1119_v17 = vadd.f32 %v1071_v9, %v1032_v6  ;;  %v1121_v19 = vadd.f32 %v1112_v12, %v1034_v8  ;;  %v1073_v43 = vpop.f32.mrb[9].mxu0  ;;  %v1114_v37 = vpop.f32.mrb[41].mxu1  ;;  %v4619_v8 = vld [vmem:[%s5647_s2] ss:$16 sps:$4 sm:$0xff]   ;;  %v4642_v12 = vld [vmem:[%s5647_s2 + $0x44] ss:$16 sps:$4 sm:$0xff]  }
 0x330   :  { %v1120_v45 = vadd.f32 %v1073_v43, %v1033_v13  ;;  %v1122_v29 = vadd.f32 %v1114_v37, %v1035_v15  ;;  %v1075_v1 = vpop.f32.mrb[10].mxu0  ;;  %v1116_v5 = vpop.f32.mrb[42].mxu1  ;;  %v4635_v9 = vld [vmem:[%s5647_s2 + $0x20] ss:$16 sps:$4 sm:$0xff]   ;;  %v4656_v15 = vld [vmem:[%s5647_s2 + $0x64] ss:$16 sps:$4 sm:$0xff]  }
 0x331   :  { %v3372_v51 = vmul.f32 -1.442695, %v1119_v17  ;;  %v1076_v33 = vpop.f32.mrb[11].mxu0  ;;  %v1117_v20 = vpop.f32.mrb[43].mxu1  ;;  %v4649_v13 = vld [vmem:[%s5647_s2 + $0x40] ss:$16 sps:$4 sm:$0xff]  }
 0x332   :  { %v3373_v38 = vmul.f32 -1.442695, %v1120_v45  ;;  %v3374_v47 = vmul.f32 -1.442695, %v1122_v29  ;;  %v4663_v17 = vld [vmem:[%s5647_s2 + $0x60] ss:$16 sps:$4 sm:$0xff]  }
 0x333   :  { %3784 = vpow2.f32 %v3372_v51 }
 0x334   :  { %3786 = vpow2.f32 %v3373_v38 }
 0x335   :  { %3788 = vpow2.f32 %v3374_v47 }
 0x336   :  { %3790 = vtanh.f32 %v1121_v19  ;;  %v4670_v19 = vld [vmem:[%s5647_s2 + $0x84] ss:$16 sps:$4 sm:$0xff]  }
 0x33d   :  { %v3785_v41 = vpop.eup %3784 }
 0x33e   :  { %v3787_v44 = vpop.eup %3786  ;;  %v1126_v24 = vadd.f32 1.0, %v3785_v41 }
 0x33f   :  { %v1132_v16 = vadd.f32 1.0, %v3787_v44  ;;  %v3789_v18 = vpop.eup %3788 }
 0x340   :  { %3792 = vrcp.f32 %v1126_v24  ;;  %v3791_v40 = vpop.eup %3790  ;;  %v1139_v46 = vadd.f32 1.0, %v3789_v18 }
 0x341   :  { %3794 = vrcp.f32 %v1132_v16 }
 0x342   :  { %3796 = vrcp.f32 %v1139_v46 }
 0x34a   :  { %v3793_v50 = vpop.eup %3792 }
 0x34b   :  { %v3795_v22 = vpop.eup %3794  ;;  %v1143_v52 = vmul.f32 %v3793_v50, %v3791_v40 }
 0x34c   :  { %v1142_v14 = vmul.f32 %v3795_v22, %v4571_v48  ;;  %v3797_v26 = vpop.eup %3796  ;;  %v4626_v48 = vld [vmem:[%s5647_s2 + $0x24] ss:$16 sps:$4 sm:$0xff]  }
 0x34e   :  { %v4613_v49 = vadd.f32 %v1143_v52, %v1142_v14 }
 0x350   :  { %3798 = vtanh.f32 %v4613_v49 }
 0x35a   :  { %v3799_v35 = vpop.eup %3798 }
 0x35b   :  { %v1146_v32 = vmul.f32 %v3799_v35, %v3797_v26 }
 0x35d   :  { %v1154_v6 = vpack.c.bf16 %v1146_v32, %v1146_v32 }
 0x35f   :  { %1188 = vmatmul.mubr.bf16.vlgmr.msra.gmra.mrb[12].mxu0 %v1154_v6  ;;  %1229 = vmatmul.mubr.bf16.vlgmr.msra.gmra.mrb[44].mxu1 %v1154_v6 }
 0x360   :  { %1274 = vmatpush1.bf16.msra.mxu0 %v4619_v8  ;;  %1315 = vmatpush1.bf16.msra.mxu1 %v4368_v54 }
 0x361   :  { %1275 = vmatprep.subr.bf16.mxu0 %v4626_v48  ;;  %1316 = vmatprep.subr.bf16.mxu1 %v4375_v55 }
 0x362   :  { %1305 = vmatprep.mubr.bf16.mxu0 %v5676_v11  ;;  %1346 = vmatprep.mubr.bf16.mxu1 %v5676_v11 }
 0x364   :  { %1276 = vmatpush1.bf16.msra.mxu0 %v4635_v9  ;;  %1317 = vmatpush1.bf16.msra.mxu1 %v4383_v56 }
 0x365   :  { %1277 = vmatprep.subr.bf16.mxu0 %v4642_v12  ;;  %1318 = vmatprep.subr.bf16.mxu1 %v4390_v57 }
 0x368   :  { %1278 = vmatpush1.bf16.msra.mxu0 %v4649_v13  ;;  %1319 = vmatpush1.bf16.msra.mxu1 %v4397_v58 }
 0x369   :  { %1279 = vmatprep.subr.bf16.mxu0 %v4656_v15  ;;  %1320 = vmatprep.subr.bf16.mxu1 %v4403_v59 }
 0x36c   :  { %1280 = vmatpush1.bf16.msra.mxu0 %v4663_v17  ;;  %1321 = vmatpush1.bf16.msra.mxu1 %v4410_v60 }
 0x36d   :  { %1281 = vmatprep.subr.bf16.mxu0 %v4670_v19  ;;  %1322 = vmatprep.subr.bf16.mxu1 %v4417_v61 }
 0x370   :  { %1282 = vmatpush1.bf16.msra.mxu0 %v4219_v21  ;;  %1323 = vmatpush1.bf16.msra.mxu1 %v4423_v62  ;;  %v4691_v21 = vld [vmem:[%s5647_s2 + $0x4] ss:$16 sps:$4 sm:$0xff]  }
 0x371   :  { %1283 = vmatprep.subr.bf16.mxu0 %v4228_v23  ;;  %1324 = vmatprep.subr.bf16.mxu1 %v4429_v63  ;;  %v1150_v23 = vunpack.c.l.bf16 %v4499_v28 }
 0x374   :  { %1284 = vmatpush1.bf16.msra.mxu0 %v4237_v25  ;;  %1325 = vmatpush1.bf16.msra.mxu1 %v4435_v0  ;;  %v1152_v25 = vunpack.c.l.bf16 %v4519_v36 }
 0x375   :  { %1285 = vmatprep.subr.bf16.mxu0 %v4246_v27  ;;  %1326 = vmatprep.subr.bf16.mxu1 %v4442_v2 }
 0x378   :  { %1286 = vmatpush1.bf16.msra.mxu0 %v4258_v30  ;;  %1327 = vmatpush1.bf16.msra.mxu1 %v4448_v3 }
 0x379   :  { %1287 = vmatprep.subr.bf16.mxu0 %v4264_v31  ;;  %1328 = vmatprep.subr.bf16.mxu1 %v4454_v4  ;;  %v1151_v31 = vunpack.c.h.bf16 %v4499_v28 }
 0x37c   :  { %1288 = vmatpush1.bf16.msra.mxu0 %v4278_v34  ;;  %1329 = vmatpush1.bf16.msra.mxu1 %v4460_v7  ;;  %v1153_v34 = vunpack.c.h.bf16 %v4519_v36 }
 0x37d   :  { %1391 = vmatprep.subr.bf16.mxu0 %v4691_v21  ;;  %1432 = vmatprep.subr.bf16.mxu1 %v4361_v53 }
 0x432   :  { %v1189_v27 = vpop.f32.mrb[12].mxu0  ;;  %v1230_v30 = vpop.f32.mrb[44].mxu1 }
 0x433   :  { %v1237_v43 = vadd.f32 %v1189_v27, %v1150_v23  ;;  %v1239_v37 = vadd.f32 %v1230_v30, %v1152_v25  ;;  %v1191_v45 = vpop.f32.mrb[13].mxu0  ;;  %v1232_v29 = vpop.f32.mrb[45].mxu1  ;;  %v1268_v25 = vunpack.c.l.bf16 %v4501_v39  ;;  %v1270_v27 = vunpack.c.l.bf16 %v4521_v10 }
 0x434   :  { %v1238_v1 = vadd.f32 %v1191_v45, %v1151_v31  ;;  %v1240_v5 = vadd.f32 %v1232_v29, %v1153_v34  ;;  %v1193_v51 = vpop.f32.mrb[14].mxu0  ;;  %v1234_v33 = vpop.f32.mrb[46].mxu1  ;;  %v1269_v34 = vunpack.c.h.bf16 %v4501_v39 }
 0x435   :  { %v3375_v20 = vmul.f32 -1.442695, %v1237_v43  ;;  %v1194_v38 = vpop.f32.mrb[15].mxu0  ;;  %v1235_v47 = vpop.f32.mrb[47].mxu1  ;;  %v1271_v43 = vunpack.c.h.bf16 %v4521_v10 }
 0x436   :  { %v3376_v41 = vmul.f32 -1.442695, %v1238_v1  ;;  %v3377_v44 = vmul.f32 -1.442695, %v1240_v5 }
 0x437   :  { %3800 = vpow2.f32 %v3375_v20 }
 0x438   :  { %3802 = vpow2.f32 %v3376_v41 }
 0x439   :  { %3804 = vpow2.f32 %v3377_v44 }
 0x43a   :  { %3806 = vtanh.f32 %v1239_v37 }
 0x441   :  { %v3801_v24 = vpop.eup %3800 }
 0x442   :  { %v3803_v16 = vpop.eup %3802  ;;  %v1244_v28 = vadd.f32 1.0, %v3801_v24 }
 0x443   :  { %v1250_v36 = vadd.f32 1.0, %v3803_v16  ;;  %v3805_v18 = vpop.eup %3804 }
 0x444   :  { %3808 = vrcp.f32 %v1244_v28  ;;  %v3807_v40 = vpop.eup %3806  ;;  %v1257_v46 = vadd.f32 1.0, %v3805_v18 }
 0x445   :  { %3810 = vrcp.f32 %v1250_v36 }
 0x446   :  { %3812 = vrcp.f32 %v1257_v46 }
 0x44e   :  { %v3809_v50 = vpop.eup %3808 }
 0x44f   :  { %v3811_v22 = vpop.eup %3810  ;;  %v1261_v52 = vmul.f32 %v3809_v50, %v3807_v40 }
 0x450   :  { %v1260_v14 = vmul.f32 %v3811_v22, %v4613_v49  ;;  %v3813_v35 = vpop.eup %3812  ;;  %v4766_v49 = vld [vmem:[%s5647_s2 + $0xe0] ss:$16 sps:$4 sm:$0xff]  }
 0x452   :  { %v4700_v26 = vadd.f32 %v1261_v52, %v1260_v14 }
 0x454   :  { %3814 = vtanh.f32 %v4700_v26 }
 0x45e   :  { %v3815_v32 = vpop.eup %3814 }
 0x45f   :  { %v1264_v6 = vmul.f32 %v3815_v32, %v3813_v35 }
 0x461   :  { %v1272_v23 = vpack.c.bf16 %v1264_v6, %v1264_v6 }
 0x463   :  { %1306 = vmatmul.mubr.bf16.vlgmr.msra.gmra.mrb[16].mxu0 %v1272_v23  ;;  %1347 = vmatmul.mubr.bf16.vlgmr.msra.gmra.mrb[48].mxu1 %v1272_v23  ;;  %v4784_v23 = vld [vmem:[%s5647_s2 + $0x8] ss:$16 sps:$4 sm:$0xff]  }
 0x464   :  { %1392 = vmatpush1.bf16.msra.mxu0 %v4619_v8  ;;  %1433 = vmatpush1.bf16.msra.mxu1 %v4368_v54  ;;  %v4724_v54 = vld [vmem:[%s5647_s2 + $0x80] ss:$16 sps:$4 sm:$0xff]  }
 0x465   :  { %1393 = vmatprep.subr.bf16.mxu0 %v4626_v48  ;;  %1434 = vmatprep.subr.bf16.mxu1 %v4375_v55  ;;  %v4731_v55 = vld [vmem:[%s5647_s2 + $0xa4] ss:$16 sps:$4 sm:$0xff]  }
 0x466   :  { %1423 = vmatprep.mubr.bf16.mxu0 %v5676_v11  ;;  %1464 = vmatprep.mubr.bf16.mxu1 %v5676_v11 }
 0x468   :  { %1394 = vmatpush1.bf16.msra.mxu0 %v4635_v9  ;;  %1435 = vmatpush1.bf16.msra.mxu1 %v4383_v56  ;;  %v4738_v56 = vld [vmem:[%s5647_s2 + $0xa0] ss:$16 sps:$4 sm:$0xff]  }
 0x469   :  { %1395 = vmatprep.subr.bf16.mxu0 %v4642_v12  ;;  %1436 = vmatprep.subr.bf16.mxu1 %v4390_v57  ;;  %v4745_v57 = vld [vmem:[%s5647_s2 + $0xc4] ss:$16 sps:$4 sm:$0xff]  }
 0x46c   :  { %1396 = vmatpush1.bf16.msra.mxu0 %v4649_v13  ;;  %1437 = vmatpush1.bf16.msra.mxu1 %v4397_v58  ;;  %v4752_v58 = vld [vmem:[%s5647_s2 + $0xc0] ss:$16 sps:$4 sm:$0xff]  }
 0x46d   :  { %1397 = vmatprep.subr.bf16.mxu0 %v4656_v15  ;;  %1438 = vmatprep.subr.bf16.mxu1 %v4403_v59  ;;  %v4759_v59 = vld [vmem:[%s5647_s2 + $0xe4] ss:$16 sps:$4 sm:$0xff]  }
 0x470   :  { %1398 = vmatpush1.bf16.msra.mxu0 %v4663_v17  ;;  %1439 = vmatpush1.bf16.msra.mxu1 %v4410_v60 }
 0x471   :  { %1399 = vmatprep.subr.bf16.mxu0 %v4670_v19  ;;  %1440 = vmatprep.subr.bf16.mxu1 %v4417_v61 }
 0x474   :  { %1400 = vmatpush1.bf16.msra.mxu0 %v4724_v54  ;;  %1441 = vmatpush1.bf16.msra.mxu1 %v4423_v62 }
 0x475   :  { %1401 = vmatprep.subr.bf16.mxu0 %v4731_v55  ;;  %1442 = vmatprep.subr.bf16.mxu1 %v4429_v63 }
 0x478   :  { %1402 = vmatpush1.bf16.msra.mxu0 %v4738_v56  ;;  %1443 = vmatpush1.bf16.msra.mxu1 %v4435_v0 }
 0x479   :  { %1403 = vmatprep.subr.bf16.mxu0 %v4745_v57  ;;  %1444 = vmatprep.subr.bf16.mxu1 %v4442_v2 }
 0x47c   :  { %1404 = vmatpush1.bf16.msra.mxu0 %v4752_v58  ;;  %1445 = vmatpush1.bf16.msra.mxu1 %v4448_v3 }
 0x47d   :  { %1405 = vmatprep.subr.bf16.mxu0 %v4759_v59  ;;  %1446 = vmatprep.subr.bf16.mxu1 %v4454_v4 }
 0x480   :  { %1406 = vmatpush1.bf16.msra.mxu0 %v4766_v49  ;;  %1447 = vmatpush1.bf16.msra.mxu1 %v4460_v7 }
 0x481   :  { %1509 = vmatprep.subr.bf16.mxu0 %v4691_v21  ;;  %1550 = vmatprep.subr.bf16.mxu1 %v4361_v53 }
 0x536   :  { %v1307_v30 = vpop.f32.mrb[16].mxu0  ;;  %v1348_v31 = vpop.f32.mrb[48].mxu1 }
 0x537   :  { %v1355_v37 = vadd.f32 %v1307_v30, %v1268_v25  ;;  %v1357_v45 = vadd.f32 %v1348_v31, %v1270_v27  ;;  %v1309_v29 = vpop.f32.mrb[17].mxu0  ;;  %v1350_v1 = vpop.f32.mrb[49].mxu1  ;;  %v4800_v25 = vld [vmem:[%s5647_s2 + $0x28] ss:$16 sps:$4 sm:$0xff]   ;;  %v4807_v27 = vld [vmem:[%s5647_s2 + $0x4c] ss:$16 sps:$4 sm:$0xff]  }
 0x538   :  { %v1356_v5 = vadd.f32 %v1309_v29, %v1269_v34  ;;  %v1358_v51 = vadd.f32 %v1350_v1, %v1271_v43  ;;  %v1311_v33 = vpop.f32.mrb[18].mxu0  ;;  %v1352_v20 = vpop.f32.mrb[50].mxu1  ;;  %v4814_v30 = vld [vmem:[%s5647_s2 + $0x48] ss:$16 sps:$4 sm:$0xff]   ;;  %v4821_v31 = vld [vmem:[%s5647_s2 + $0x6c] ss:$16 sps:$4 sm:$0xff]  }
 0x539   :  { %v3378_v38 = vmul.f32 -1.442695, %v1355_v37  ;;  %v1312_v53 = vpop.f32.mrb[19].mxu0  ;;  %v1353_v47 = vpop.f32.mrb[51].mxu1 }
 0x53a   :  { %v3379_v41 = vmul.f32 -1.442695, %v1356_v5  ;;  %v3380_v44 = vmul.f32 -1.442695, %v1358_v51 }
 0x53b   :  { %3816 = vpow2.f32 %v3378_v38 }
 0x53c   :  { %3818 = vpow2.f32 %v3379_v41 }
 0x53d   :  { %3820 = vpow2.f32 %v3380_v44 }
 0x53e   :  { %3822 = vtanh.f32 %v1357_v45 }
 0x545   :  { %v3817_v24 = vpop.eup %3816 }
 0x546   :  { %v3819_v16 = vpop.eup %3818  ;;  %v1362_v39 = vadd.f32 1.0, %v3817_v24 }
 0x547   :  { %v1368_v10 = vadd.f32 1.0, %v3819_v16  ;;  %v3821_v28 = vpop.eup %3820 }
 0x548   :  { %3824 = vrcp.f32 %v1362_v39  ;;  %v3823_v36 = vpop.eup %3822  ;;  %v1375_v22 = vadd.f32 1.0, %v3821_v28 }
 0x549   :  { %3826 = vrcp.f32 %v1368_v10 }
 0x54a   :  { %3828 = vrcp.f32 %v1375_v22 }
 0x552   :  { %v3825_v18 = vpop.eup %3824 }
 0x553   :  { %v3827_v40 = vpop.eup %3826  ;;  %v1379_v50 = vmul.f32 %v3825_v18, %v3823_v36 }
 0x554   :  { %v1378_v52 = vmul.f32 %v3827_v40, %v4700_v26  ;;  %v3829_v14 = vpop.eup %3828  ;;  %v4791_v26 = vld [vmem:[%s5647_s2 + $0x2c] ss:$16 sps:$4 sm:$0xff]  }
 0x556   :  { %v4777_v46 = vadd.f32 %v1379_v50, %v1378_v52 }
 0x558   :  { %3830 = vtanh.f32 %v4777_v46 }
 0x562   :  { %v3831_v35 = vpop.eup %3830 }
 0x563   :  { %v1382_v32 = vmul.f32 %v3831_v35, %v3829_v14 }
 0x565   :  { %v1390_v6 = vpack.c.bf16 %v1382_v32, %v1382_v32 }
 0x567   :  { %1424 = vmatmul.mubr.bf16.vlgmr.msra.gmra.mrb[20].mxu0 %v1390_v6  ;;  %1465 = vmatmul.mubr.bf16.vlgmr.msra.gmra.mrb[52].mxu1 %v1390_v6 }
 0x568   :  { %1510 = vmatpush1.bf16.msra.mxu0 %v4619_v8  ;;  %1551 = vmatpush1.bf16.msra.mxu1 %v4784_v23 }
 0x569   :  { %1511 = vmatprep.subr.bf16.mxu0 %v4626_v48  ;;  %1552 = vmatprep.subr.bf16.mxu1 %v4791_v26 }
 0x56a   :  { %1541 = vmatprep.mubr.bf16.mxu0 %v5676_v11  ;;  %1582 = vmatprep.mubr.bf16.mxu1 %v5676_v11 }
 0x56c   :  { %1512 = vmatpush1.bf16.msra.mxu0 %v4635_v9  ;;  %1553 = vmatpush1.bf16.msra.mxu1 %v4800_v25 }
 0x56d   :  { %1513 = vmatprep.subr.bf16.mxu0 %v4642_v12  ;;  %1554 = vmatprep.subr.bf16.mxu1 %v4807_v27 }
 0x570   :  { %1514 = vmatpush1.bf16.msra.mxu0 %v4649_v13  ;;  %1555 = vmatpush1.bf16.msra.mxu1 %v4814_v30 }
 0x571   :  { %1515 = vmatprep.subr.bf16.mxu0 %v4656_v15  ;;  %1556 = vmatprep.subr.bf16.mxu1 %v4821_v31 }
 0x574   :  { %1516 = vmatpush1.bf16.msra.mxu0 %v4663_v17  ;;  %1557 = vmatpush1.bf16.msra.mxu1 %v4410_v60  ;;  %v4030_v60 = vld [vmem:[%s5647_s2 + $0xc] ss:$16 sps:$4 sm:$0xff]  }
 0x575   :  { %1517 = vmatprep.subr.bf16.mxu0 %v4670_v19  ;;  %1558 = vmatprep.subr.bf16.mxu1 %v4417_v61  ;;  %v1386_v61 = vunpack.c.l.bf16 %v4503_v42 }
 0x578   :  { %1518 = vmatpush1.bf16.msra.mxu0 %v4724_v54  ;;  %1559 = vmatpush1.bf16.msra.mxu1 %v4423_v62  ;;  %v5677_v62 = vld [vmem:[#allocation7_spill] sm:$0xff] }
 0x579   :  { %1519 = vmatprep.subr.bf16.mxu0 %v4731_v55  ;;  %1560 = vmatprep.subr.bf16.mxu1 %v4429_v63  ;;  %v1388_v63 = vunpack.c.l.bf16 %v5677_v62 }
 0x57c   :  { %1520 = vmatpush1.bf16.msra.mxu0 %v4738_v56  ;;  %1561 = vmatpush1.bf16.msra.mxu1 %v4435_v0 }
 0x57d   :  { %1521 = vmatprep.subr.bf16.mxu0 %v4745_v57  ;;  %1562 = vmatprep.subr.bf16.mxu1 %v4442_v2 }
 0x580   :  { %1522 = vmatpush1.bf16.msra.mxu0 %v4752_v58  ;;  %1563 = vmatpush1.bf16.msra.mxu1 %v4448_v3  ;;  %v1387_v3 = vunpack.c.h.bf16 %v4503_v42 }
 0x581   :  { %1523 = vmatprep.subr.bf16.mxu0 %v4759_v59  ;;  %1564 = vmatprep.subr.bf16.mxu1 %v4454_v4  ;;  %v1389_v4 = vunpack.c.h.bf16 %v5677_v62 }
 0x584   :  { %1524 = vmatpush1.bf16.msra.mxu0 %v4766_v49  ;;  %1565 = vmatpush1.bf16.msra.mxu1 %v4460_v7 }
 0x585   :  { %1627 = vmatprep.subr.bf16.mxu0 %v4691_v21  ;;  %1668 = vmatprep.subr.bf16.mxu1 %v4030_v60 }
 0x63a   :  { %v1425_v0 = vpop.f32.mrb[20].mxu0  ;;  %v1466_v2 = vpop.f32.mrb[52].mxu1 }
 0x63b   :  { %v1473_v34 = vadd.f32 %v1425_v0, %v1386_v61  ;;  %v1475_v43 = vadd.f32 %v1466_v2, %v1388_v63  ;;  %v1427_v7 = vpop.f32.mrb[21].mxu0  ;;  %v1468_v37 = vpop.f32.mrb[53].mxu1 }
 0x63c   :  { %v1474_v21 = vadd.f32 %v1427_v7, %v1387_v3  ;;  %v1476_v45 = vadd.f32 %v1468_v37, %v1389_v4  ;;  %v1429_v29 = vpop.f32.mrb[22].mxu0  ;;  %v1470_v1 = vpop.f32.mrb[54].mxu1 }
 0x63d   :  { %v3381_v5 = vmul.f32 -1.442695, %v1473_v34  ;;  %v1430_v51 = vpop.f32.mrb[23].mxu0  ;;  %v1471_v33 = vpop.f32.mrb[55].mxu1 }
 0x63e   :  { %v3382_v20 = vmul.f32 -1.442695, %v1474_v21  ;;  %v3383_v38 = vmul.f32 -1.442695, %v1476_v45 }
 0x63f   :  { %3832 = vpow2.f32 %v3381_v5 }
 0x640   :  { %3834 = vpow2.f32 %v3382_v20 }
 0x641   :  { %3836 = vpow2.f32 %v3383_v38  ;;  %v3646_v38 = vld [vmem:[%s5650_s4 + $0x4] ss:$16 sps:$4 sm:$0xff]  }
 0x642   :  { %3838 = vtanh.f32 %v1475_v43 }
 0x649   :  { %v3833_v53 = vpop.eup %3832 }
 0x64a   :  { %v3835_v47 = vpop.eup %3834  ;;  %v1480_v42 = vadd.f32 1.0, %v3833_v53  ;;  %v3644_v53 = vld [vmem:[%s5650_s4] ss:$16 sps:$4 sm:$0xff]  }
 0x64b   :  { %v1486_v41 = vadd.f32 1.0, %v3835_v47  ;;  %v3837_v44 = vpop.eup %3836  ;;  %v3647_v47 = vld [vmem:[%s5650_s4 + $0x8] ss:$16 sps:$4 sm:$0xff]  }
 0x64c   :  { %3840 = vrcp.f32 %v1480_v42  ;;  %v3839_v24 = vpop.eup %3838  ;;  %v1493_v28 = vadd.f32 1.0, %v3837_v44  ;;  %v3649_v42 = vld [vmem:[%s5650_s4 + $0xc] ss:$16 sps:$4 sm:$0xff]  }
 0x64d   :  { %3842 = vrcp.f32 %v1486_v41  ;;  %v3652_v41 = vld [vmem:[%s5650_s4 + $0x24] ss:$16 sps:$4 sm:$0xff]   ;;  %v3655_v44 = vld [vmem:[%s5650_s4 + $0x2c] ss:$16 sps:$4 sm:$0xff]  }
 0x64e   :  { %3844 = vrcp.f32 %v1493_v28  ;;  %v3656_v28 = vld [vmem:[%s5650_s4 + $0x40] ss:$16 sps:$4 sm:$0xff]  }
 0x656   :  { %v3841_v16 = vpop.eup %3840 }
 0x657   :  { %v3843_v39 = vpop.eup %3842  ;;  %v1497_v10 = vmul.f32 %v3841_v16, %v3839_v24  ;;  %v3650_v24 = vld [vmem:[%s5650_s4 + $0x20] ss:$16 sps:$4 sm:$0xff]   ;;  %v3653_v16 = vld [vmem:[%s5650_s4 + $0x28] ss:$16 sps:$4 sm:$0xff]  }
 0x658   :  { %v1496_v36 = vmul.f32 %v3843_v39, %v4777_v46  ;;  %v3845_v40 = vpop.eup %3844  ;;  %v3658_v39 = vld [vmem:[%s5650_s4 + $0x44] ss:$16 sps:$4 sm:$0xff]  }
 0x65a   :  { %v4851_v18 = vadd.f32 %v1497_v10, %v1496_v36  ;;  %v3661_v10 = vld [vmem:[%s5650_s4 + $0x4c] ss:$16 sps:$4 sm:$0xff]   ;;  %v3659_v36 = vld [vmem:[%s5650_s4 + $0x48] ss:$16 sps:$4 sm:$0xff]  }
 0x65c   :  { %3846 = vtanh.f32 %v4851_v18 }
 0x666   :  { %v3847_v50 = vpop.eup %3846 }
 0x667   :  { %v1500_v22 = vmul.f32 %v3847_v50, %v3845_v40  ;;  %v3667_v40 = vld [vmem:[%s5650_s4 + $0x6c] ss:$16 sps:$4 sm:$0xff]   ;;  %v3662_v50 = vld [vmem:[%s5650_s4 + $0x60] ss:$16 sps:$4 sm:$0xff]  }
 0x669   :  { %v1508_v52 = vpack.c.bf16 %v1500_v22, %v1500_v22  ;;  %v3665_v22 = vld [vmem:[%s5650_s4 + $0x68] ss:$16 sps:$4 sm:$0xff]  }
 0x66b   :  { %1542 = vmatmul.mubr.bf16.vlgmr.msra.gmra.mrb[24].mxu0 %v1508_v52  ;;  %1583 = vmatmul.mubr.bf16.vlgmr.msra.gmra.mrb[56].mxu1 %v1508_v52  ;;  %v3670_v52 = vld [vmem:[%s5650_s4 + $0x84] ss:$16 sps:$4 sm:$0xff]  }
 0x66c   :  { %1628 = vmatpush1.bf16.msra.mxu0 %v4619_v8  ;;  %1669 = vmatpush1.bf16.msra.mxu1 %v4784_v23  ;;  %v4031_v8 = vld [vmem:[%s5647_s2 + $0x68] ss:$16 sps:$4 sm:$0xff]  }
 0x66d   :  { %1629 = vmatprep.subr.bf16.mxu0 %v4626_v48  ;;  %1670 = vmatprep.subr.bf16.mxu1 %v4791_v26  ;;  %v4032_v48 = vld [vmem:[%s5647_s2 + $0x8c] ss:$16 sps:$4 sm:$0xff]  }
 0x66e   :  { %1659 = vmatprep.mubr.bf16.mxu0 %v5676_v11  ;;  %1700 = vmatprep.mubr.bf16.mxu1 %v5676_v11 }
 0x670   :  { %1630 = vmatpush1.bf16.msra.mxu0 %v4635_v9  ;;  %1671 = vmatpush1.bf16.msra.mxu1 %v4800_v25  ;;  %v4033_v9 = vld [vmem:[%s5647_s2 + $0x88] ss:$16 sps:$4 sm:$0xff]  }
 0x671   :  { %1631 = vmatprep.subr.bf16.mxu0 %v4642_v12  ;;  %1672 = vmatprep.subr.bf16.mxu1 %v4807_v27  ;;  %v4034_v12 = vld [vmem:[%s5647_s2 + $0xac] ss:$16 sps:$4 sm:$0xff]  }
 0x674   :  { %1632 = vmatpush1.bf16.msra.mxu0 %v4649_v13  ;;  %1673 = vmatpush1.bf16.msra.mxu1 %v4814_v30  ;;  %v4035_v13 = vld [vmem:[%s5647_s2 + $0xa8] ss:$16 sps:$4 sm:$0xff]  }
 0x675   :  { %1633 = vmatprep.subr.bf16.mxu0 %v4656_v15  ;;  %1674 = vmatprep.subr.bf16.mxu1 %v4821_v31  ;;  %v4036_v15 = vld [vmem:[%s5647_s2 + $0xcc] ss:$16 sps:$4 sm:$0xff]  }
 0x678   :  { %1634 = vmatpush1.bf16.msra.mxu0 %v4663_v17  ;;  %1675 = vmatpush1.bf16.msra.mxu1 %v4031_v8  ;;  %v4037_v17 = vld [vmem:[%s5647_s2 + $0xc8] ss:$16 sps:$4 sm:$0xff]   ;;  %v3673_v8 = vld [vmem:[%s5650_s4 + $0x8c] ss:$16 sps:$4 sm:$0xff]  }
 0x679   :  { %1635 = vmatprep.subr.bf16.mxu0 %v4670_v19  ;;  %1676 = vmatprep.subr.bf16.mxu1 %v4032_v48  ;;  %v4038_v19 = vld [vmem:[%s5647_s2 + $0xec] ss:$16 sps:$4 sm:$0xff]   ;;  %v3668_v48 = vld [vmem:[%s5650_s4 + $0x80] ss:$16 sps:$4 sm:$0xff]  }
 0x67c   :  { %1636 = vmatpush1.bf16.msra.mxu0 %v4724_v54  ;;  %1677 = vmatpush1.bf16.msra.mxu1 %v4033_v9  ;;  %v4039_v54 = vld [vmem:[%s5647_s2 + $0xe8] ss:$16 sps:$4 sm:$0xff]  }
 0x67d   :  { %1637 = vmatprep.subr.bf16.mxu0 %v4731_v55  ;;  %1678 = vmatprep.subr.bf16.mxu1 %v4034_v12  ;;  %v5678_v55 = vld [vmem:[#allocation5_spill] sm:$0xff]  ;;  %v3674_v12 = vld [vmem:[%s5650_s4 + $0xa0] ss:$16 sps:$4 sm:$0xff]  }
 0x67e   :  { %v3671_v9 = vld [vmem:[%s5650_s4 + $0x88] ss:$16 sps:$4 sm:$0xff]  }
 0x680   :  { %1638 = vmatpush1.bf16.msra.mxu0 %v4738_v56  ;;  %1679 = vmatpush1.bf16.msra.mxu1 %v4035_v13  ;;  %v1504_v56 = vunpack.c.l.bf16 %v5678_v55  ;;  %v3676_v13 = vld [vmem:[%s5650_s4 + $0xa4] ss:$16 sps:$4 sm:$0xff]  }
 0x681   :  { %1639 = vmatprep.subr.bf16.mxu0 %v4745_v57  ;;  %1680 = vmatprep.subr.bf16.mxu1 %v4036_v15  ;;  %v5679_v57 = vld [vmem:[#allocation8_spill] sm:$0xff]  ;;  %v3679_v15 = vld [vmem:[%s5650_s4 + $0xac] ss:$16 sps:$4 sm:$0xff]  }
 0x682   :  { %v1507_v35 = vunpack.c.h.bf16 %v5679_v57 }
 0x684   :  { %1640 = vmatpush1.bf16.msra.mxu0 %v4752_v58  ;;  %1681 = vmatpush1.bf16.msra.mxu1 %v4037_v17  ;;  %v1506_v58 = vunpack.c.l.bf16 %v5679_v57  ;;  %v3682_v17 = vld [vmem:[%s5650_s4 + $0xc4] ss:$16 sps:$4 sm:$0xff]  }
 0x685   :  { %1641 = vmatprep.subr.bf16.mxu0 %v4759_v59  ;;  %1682 = vmatprep.subr.bf16.mxu1 %v4038_v19  ;;  %v1505_v59 = vunpack.c.h.bf16 %v5678_v55  ;;  %v3677_v19 = vld [vmem:[%s5650_s4 + $0xa8] ss:$16 sps:$4 sm:$0xff]   ;;  %v3685_v55 = vld [vmem:[%s5650_s4 + $0xcc] ss:$16 sps:$4 sm:$0xff]   ;;  %v3688_v57 = vld [vmem:[%s5650_s4 + $0xe4] ss:$16 sps:$4 sm:$0xff]  }
 0x688   :  { %1642 = vmatpush1.bf16.msra.mxu0 %v4766_v49  ;;  %1683 = vmatpush1.bf16.msra.mxu1 %v4039_v54  ;;  %v3680_v54 = vld [vmem:[%s5650_s4 + $0xc0] ss:$16 sps:$4 sm:$0xff]  }
 0x689   :  { %1953 = vmatprep.subr.bf16.mxu0 %v3646_v38  ;;  %1994 = vmatprep.subr.bf16.mxu1 %v3649_v42 }
 0x73e   :  { %v1543_v46 = vpop.f32.mrb[24].mxu0  ;;  %v1584_v14 = vpop.f32.mrb[56].mxu1 }
 0x73f   :  { %v1591_v32 = vadd.f32 %v1543_v46, %v1504_v56  ;;  %v1593_v6 = vadd.f32 %v1584_v14, %v1506_v58  ;;  %v1545_v23 = vpop.f32.mrb[25].mxu0  ;;  %v1586_v26 = vpop.f32.mrb[57].mxu1  ;;  %v3683_v56 = vld [vmem:[%s5650_s4 + $0xc8] ss:$16 sps:$4 sm:$0xff]   ;;  %v3691_v58 = vld [vmem:[%s5650_s4 + $0xec] ss:$16 sps:$4 sm:$0xff]  }
 0x740   :  { %v1592_v49 = vadd.f32 %v1545_v23, %v1505_v59  ;;  %v1594_v25 = vadd.f32 %v1586_v26, %v1507_v35  ;;  %v1547_v27 = vpop.f32.mrb[26].mxu0  ;;  %v1588_v30 = vpop.f32.mrb[58].mxu1  ;;  %v3686_v46 = vld [vmem:[%s5650_s4 + $0xe0] ss:$16 sps:$4 sm:$0xff]   ;;  %v5010_v14 = vld [vmem:[%s5651_s5 + $0x4] ss:$16 sps:$4 sm:$0xff]  }
 0x741   :  { %v3384_v31 = vmul.f32 -1.442695, %v1591_v32  ;;  %v1548_v60 = vpop.f32.mrb[27].mxu0  ;;  %v1589_v61 = vpop.f32.mrb[59].mxu1  ;;  %v3689_v59 = vld [vmem:[%s5650_s4 + $0xe8] ss:$16 sps:$4 sm:$0xff]  }
 0x742   :  { %v3385_v62 = vmul.f32 -1.442695, %v1592_v49  ;;  %v3386_v63 = vmul.f32 -1.442695, %v1594_v25  ;;  %v5018_v35 = vld [vmem:[%s5651_s5 + $0xc] ss:$16 sps:$4 sm:$0xff]  }
 0x743   :  { %3848 = vpow2.f32 %v3384_v31  ;;  %v5680_v32 = vld [vmem:[#allocation6_spill] sm:$0xff]  ;;  %v5681_v23 = vld [vmem:[#allocation9_spill] sm:$0xff] }
 0x744   :  { %3850 = vpow2.f32 %v3385_v62  ;;  %v1624_v26 = vunpack.c.l.bf16 %v5681_v23  ;;  %v1623_v27 = vunpack.c.h.bf16 %v5680_v32  ;;  %v1625_v30 = vunpack.c.h.bf16 %v5681_v23  ;;  %v5189_v23 = vld [vmem:[%s5651_s5 + $0xe4] ss:$16 sps:$4 sm:$0xff]  }
 0x745   :  { %3852 = vpow2.f32 %v3386_v63 }
 0x746   :  { %3854 = vtanh.f32 %v1593_v6  ;;  %v1622_v6 = vunpack.c.l.bf16 %v5680_v32  ;;  %v5177_v32 = vld [vmem:[%s5651_s5 + $0xc0] ss:$16 sps:$4 sm:$0xff]  }
 0x74d   :  { %v3849_v0 = vpop.eup %3848 }
 0x74e   :  { %v3851_v2 = vpop.eup %3850  ;;  %v1598_v3 = vadd.f32 1.0, %v3849_v0 }
 0x74f   :  { %v1604_v4 = vadd.f32 1.0, %v3851_v2  ;;  %v3853_v34 = vpop.eup %3852 }
 0x750   :  { %3856 = vrcp.f32 %v1598_v3  ;;  %v3855_v43 = vpop.eup %3854  ;;  %v1611_v45 = vadd.f32 1.0, %v3853_v34 }
 0x751   :  { %3858 = vrcp.f32 %v1604_v4 }
 0x752   :  { %3860 = vrcp.f32 %v1611_v45 }
 0x75a   :  { %v3857_v7 = vpop.eup %3856 }
 0x75b   :  { %v3859_v37 = vpop.eup %3858  ;;  %v1615_v21 = vmul.f32 %v3857_v7, %v3855_v43 }
 0x75c   :  { %v1614_v29 = vmul.f32 %v3859_v37, %v4851_v18  ;;  %v3861_v5 = vpop.eup %3860  ;;  %v3664_v18 = vld [vmem:[%s5650_s4 + $0x64] ss:$16 sps:$4 sm:$0xff]  }
 0x75e   :  { %v4909_v1 = vadd.f32 %v1615_v21, %v1614_v29 }
 0x760   :  { %3862 = vtanh.f32 %v4909_v1 }
 0x76a   :  { %v3863_v51 = vpop.eup %3862 }
 0x76b   :  { %v1618_v33 = vmul.f32 %v3863_v51, %v3861_v5 }
 0x76d   :  { %v1626_v20 = vpack.c.bf16 %v1618_v33, %v1618_v33 }
 0x76f   :  { %1660 = vmatmul.mubr.bf16.vlgmr.msra.gmra.mrb[28].mxu0 %v1626_v20  ;;  %1701 = vmatmul.mubr.bf16.vlgmr.msra.gmra.mrb[60].mxu1 %v1626_v20 }
 0x770   :  { %1985 = vmatprep.mubr.bf16.mxu0 %v5676_v11  ;;  %2026 = vmatprep.mubr.bf16.mxu1 %v5676_v11 }
 0x771   :  { %1954 = vmatpush1.bf16.msra.mxu0 %v3644_v53  ;;  %1995 = vmatpush1.bf16.msra.mxu1 %v3647_v47 }
 0x772   :  { %1955 = vmatprep.subr.bf16.mxu0 %v3652_v41  ;;  %1996 = vmatprep.subr.bf16.mxu1 %v3655_v44 }
 0x775   :  { %1956 = vmatpush1.bf16.msra.mxu0 %v3650_v24  ;;  %1997 = vmatpush1.bf16.msra.mxu1 %v3653_v16 }
 0x776   :  { %1957 = vmatprep.subr.bf16.mxu0 %v3658_v39  ;;  %1998 = vmatprep.subr.bf16.mxu1 %v3661_v10  ;;  %v5030_v39 = vld [vmem:[%s5651_s5] ss:$16 sps:$4 sm:$0xff]   ;;  %v5035_v10 = vld [vmem:[%s5651_s5 + $0x8] ss:$16 sps:$4 sm:$0xff]  }
 0x779   :  { %1958 = vmatpush1.bf16.msra.mxu0 %v3656_v28  ;;  %1999 = vmatpush1.bf16.msra.mxu1 %v3659_v36  ;;  %v5043_v28 = vld [vmem:[%s5651_s5 + $0x24] ss:$16 sps:$4 sm:$0xff]   ;;  %v5048_v36 = vld [vmem:[%s5651_s5 + $0x2c] ss:$16 sps:$4 sm:$0xff]  }
 0x77a   :  { %1959 = vmatprep.subr.bf16.mxu0 %v3664_v18  ;;  %2000 = vmatprep.subr.bf16.mxu1 %v3667_v40  ;;  %v5055_v18 = vld [vmem:[%s5651_s5 + $0x20] ss:$16 sps:$4 sm:$0xff]   ;;  %v5060_v40 = vld [vmem:[%s5651_s5 + $0x28] ss:$16 sps:$4 sm:$0xff]  }
 0x77d   :  { %1960 = vmatpush1.bf16.msra.mxu0 %v3662_v50  ;;  %2001 = vmatpush1.bf16.msra.mxu1 %v3665_v22  ;;  %v5067_v50 = vld [vmem:[%s5651_s5 + $0x44] ss:$16 sps:$4 sm:$0xff]   ;;  %v5072_v22 = vld [vmem:[%s5651_s5 + $0x4c] ss:$16 sps:$4 sm:$0xff]  }
 0x77e   :  { %1961 = vmatprep.subr.bf16.mxu0 %v3670_v52  ;;  %2002 = vmatprep.subr.bf16.mxu1 %v3673_v8  ;;  %v5081_v52 = vld [vmem:[%s5651_s5 + $0x40] ss:$16 sps:$4 sm:$0xff]   ;;  %v5086_v8 = vld [vmem:[%s5651_s5 + $0x48] ss:$16 sps:$4 sm:$0xff]  }
 0x781   :  { %1962 = vmatpush1.bf16.msra.mxu0 %v3668_v48  ;;  %2003 = vmatpush1.bf16.msra.mxu1 %v3671_v9  ;;  %v5093_v48 = vld [vmem:[%s5651_s5 + $0x64] ss:$16 sps:$4 sm:$0xff]   ;;  %v5098_v9 = vld [vmem:[%s5651_s5 + $0x6c] ss:$16 sps:$4 sm:$0xff]  }
 0x782   :  { %1963 = vmatprep.subr.bf16.mxu0 %v3676_v13  ;;  %2004 = vmatprep.subr.bf16.mxu1 %v3679_v15  ;;  %v5110_v13 = vld [vmem:[%s5651_s5 + $0x68] ss:$16 sps:$4 sm:$0xff]   ;;  %v5117_v15 = vld [vmem:[%s5651_s5 + $0x84] ss:$16 sps:$4 sm:$0xff]  }
 0x785   :  { %1964 = vmatpush1.bf16.msra.mxu0 %v3674_v12  ;;  %2005 = vmatpush1.bf16.msra.mxu1 %v3677_v19  ;;  %v5105_v12 = vld [vmem:[%s5651_s5 + $0x60] ss:$16 sps:$4 sm:$0xff]  }
 0x786   :  { %1965 = vmatprep.subr.bf16.mxu0 %v3682_v17  ;;  %2006 = vmatprep.subr.bf16.mxu1 %v3685_v55  ;;  %v5122_v17 = vld [vmem:[%s5651_s5 + $0x8c] ss:$16 sps:$4 sm:$0xff]   ;;  %v5129_v19 = vld [vmem:[%s5651_s5 + $0x80] ss:$16 sps:$4 sm:$0xff]   ;;  %v5141_v55 = vld [vmem:[%s5651_s5 + $0xa4] ss:$16 sps:$4 sm:$0xff]  }
 0x789   :  { %1966 = vmatpush1.bf16.msra.mxu0 %v3680_v54  ;;  %2007 = vmatpush1.bf16.msra.mxu1 %v3683_v56  ;;  %v5134_v54 = vld [vmem:[%s5651_s5 + $0x88] ss:$16 sps:$4 sm:$0xff]   ;;  %v5146_v56 = vld [vmem:[%s5651_s5 + $0xac] ss:$16 sps:$4 sm:$0xff]  }
 0x78a   :  { %1967 = vmatprep.subr.bf16.mxu0 %v3688_v57  ;;  %2008 = vmatprep.subr.bf16.mxu1 %v3691_v58  ;;  %v5153_v57 = vld [vmem:[%s5651_s5 + $0xa0] ss:$16 sps:$4 sm:$0xff]   ;;  %v5158_v58 = vld [vmem:[%s5651_s5 + $0xa8] ss:$16 sps:$4 sm:$0xff]  }
 0x78d   :  { %1968 = vmatpush1.bf16.msra.mxu0 %v3686_v46  ;;  %2009 = vmatpush1.bf16.msra.mxu1 %v3689_v59  ;;  %v5165_v46 = vld [vmem:[%s5651_s5 + $0xc4] ss:$16 sps:$4 sm:$0xff]   ;;  %v5170_v59 = vld [vmem:[%s5651_s5 + $0xcc] ss:$16 sps:$4 sm:$0xff]  }
 0x78e   :  { %2195 = vmatprep.subr.bf16.mxu0 %v5010_v14  ;;  %2236 = vmatprep.subr.bf16.mxu1 %v5018_v35 }
 0x842   :  { %v1661_v49 = vpop.f32.mrb[28].mxu0  ;;  %v1702_v25 = vpop.f32.mrb[60].mxu1 }
 0x843   :  { %v1709_v31 = vadd.f32 %v1661_v49, %v1622_v6  ;;  %v1711_v60 = vadd.f32 %v1702_v25, %v1624_v26  ;;  %v1663_v61 = vpop.f32.mrb[29].mxu0  ;;  %v1704_v62 = vpop.f32.mrb[61].mxu1  ;;  %v5182_v6 = vld [vmem:[%s5651_s5 + $0xc8] ss:$16 sps:$4 sm:$0xff]   ;;  %v5194_v26 = vld [vmem:[%s5651_s5 + $0xec] ss:$16 sps:$4 sm:$0xff]  }
 0x844   :  { %v1710_v63 = vadd.f32 %v1663_v61, %v1623_v27  ;;  %v1712_v0 = vadd.f32 %v1704_v62, %v1625_v30  ;;  %v1665_v2 = vpop.f32.mrb[30].mxu0  ;;  %v1706_v3 = vpop.f32.mrb[62].mxu1  ;;  %v5201_v49 = vld [vmem:[%s5651_s5 + $0xe0] ss:$16 sps:$4 sm:$0xff]   ;;  %v5206_v25 = vld [vmem:[%s5651_s5 + $0xe8] ss:$16 sps:$4 sm:$0xff]  }
 0x845   :  { %v3387_v4 = vmul.f32 -1.442695, %v1709_v31  ;;  %v1666_v34 = vpop.f32.mrb[31].mxu0  ;;  %v1707_v43 = vpop.f32.mrb[63].mxu1  ;;  %v1771_v2 = vld [vmem:[%s5653_s6] sm:$0xf] }
 0x846   :  { %v3388_v7 = vmul.f32 -1.442695, %v1710_v63  ;;  %v3389_v37 = vmul.f32 -1.442695, %v1712_v0  ;;  %v5682_v3 = vld [vmem:[#allocation4_spill] sm:$0xff] }
 0x847   :  { %3864 = vpow2.f32 %v3387_v4  ;;  %v5683_v4 = vsub.s32 0, %v5682_v3  ;;  %v5684_v43 = vsub.s32 1, %v5682_v3 }
 0x848   :  { %3866 = vpow2.f32 %v3388_v7 }
 0x849   :  { %3868 = vpow2.f32 %v3389_v37  ;;  %v1776_v34 = vrot.slane %v1771_v2, %v5683_v4  ;;  %v1780_v7 = vrot.slane %v1771_v2, %v5684_v43 }
 0x84a   :  { %3870 = vtanh.f32 %v1711_v60 }
 0x851   :  { %v3865_v21 = vpop.eup %3864 }
 0x852   :  { %v3867_v45 = vpop.eup %3866  ;;  %v1716_v29 = vadd.f32 1.0, %v3865_v21 }
 0x853   :  { %v1722_v5 = vadd.f32 1.0, %v3867_v45  ;;  %v3869_v51 = vpop.eup %3868 }
 0x854   :  { %3872 = vrcp.f32 %v1716_v29  ;;  %v3871_v33 = vpop.eup %3870  ;;  %v1729_v47 = vadd.f32 1.0, %v3869_v51 }
 0x855   :  { %3874 = vrcp.f32 %v1722_v5 }
 0x856   :  { %3876 = vrcp.f32 %v1729_v47 }
 0x85e   :  { %v3873_v20 = vpop.eup %3872 }
 0x85f   :  { %v3875_v38 = vpop.eup %3874  ;;  %v1733_v53 = vmul.f32 %v3873_v20, %v3871_v33  ;;  %v5685_v20 = vsub.s32 3, %v5682_v3 }
 0x860   :  { %v1732_v42 = vmul.f32 %v3875_v38, %v4909_v1  ;;  %v3877_v44 = vpop.eup %3876 }
 0x861   :  { %v1788_v38 = vrot.slane %v1771_v2, %v5685_v20 }
 0x862   :  { %v1734_v41 = vadd.f32 %v1733_v53, %v1732_v42 }
 0x864   :  { %3878 = vtanh.f32 %v1734_v41 }
 0x86e   :  { %v3879_v24 = vpop.eup %3878 }
 0x86f   :  { %v1736_v16 = vmul.f32 %v3879_v24, %v3877_v44 }
 0x871   :  { %1737 = vst [vmem:[%s5652_s10] sm:$0xff] %v1736_v16  ;;  %v1738_v1 = vpack.c.bf16 %v1736_v16, %v1736_v16 }
 0x873   :  { %1986 = vmatmul.mubr.bf16.vlgmr.msra.gmra.mrb[32].mxu0 %v1738_v1  ;;  %2027 = vmatmul.mubr.bf16.vlgmr.msra.gmra.mrb[64].mxu1 %v1738_v1 }
 0x874   :  { %2196 = vmatpush1.bf16.msra.mxu0 %v5030_v39  ;;  %2237 = vmatpush1.bf16.msra.mxu1 %v5035_v10 }
 0x875   :  { %2197 = vmatprep.subr.bf16.mxu0 %v5043_v28  ;;  %2238 = vmatprep.subr.bf16.mxu1 %v5048_v36 }
 0x876   :  { %2227 = vmatprep.mubr.bf16.mxu0 %v5676_v11  ;;  %2268 = vmatprep.mubr.bf16.mxu1 %v5676_v11 }
 0x878   :  { %2198 = vmatpush1.bf16.msra.mxu0 %v5055_v18  ;;  %2239 = vmatpush1.bf16.msra.mxu1 %v5060_v40 }
 0x879   :  { %2199 = vmatprep.subr.bf16.mxu0 %v5067_v50  ;;  %2240 = vmatprep.subr.bf16.mxu1 %v5072_v22 }
 0x87c   :  { %2200 = vmatpush1.bf16.msra.mxu0 %v5081_v52  ;;  %2241 = vmatpush1.bf16.msra.mxu1 %v5086_v8 }
 0x87d   :  { %2201 = vmatprep.subr.bf16.mxu0 %v5093_v48  ;;  %2242 = vmatprep.subr.bf16.mxu1 %v5098_v9 }
 0x880   :  { %2202 = vmatpush1.bf16.msra.mxu0 %v5105_v12  ;;  %2243 = vmatpush1.bf16.msra.mxu1 %v5110_v13 }
 0x881   :  { %2203 = vmatprep.subr.bf16.mxu0 %v5117_v15  ;;  %2244 = vmatprep.subr.bf16.mxu1 %v5122_v17 }
 0x884   :  { %2204 = vmatpush1.bf16.msra.mxu0 %v5129_v19  ;;  %2245 = vmatpush1.bf16.msra.mxu1 %v5134_v54 }
 0x885   :  { %2205 = vmatprep.subr.bf16.mxu0 %v5141_v55  ;;  %2246 = vmatprep.subr.bf16.mxu1 %v5146_v56 }
 0x888   :  { %2206 = vmatpush1.bf16.msra.mxu0 %v5153_v57  ;;  %2247 = vmatpush1.bf16.msra.mxu1 %v5158_v58 }
 0x889   :  { %2207 = vmatprep.subr.bf16.mxu0 %v5165_v46  ;;  %2248 = vmatprep.subr.bf16.mxu1 %v5170_v59 }
 0x88c   :  { %2208 = vmatpush1.bf16.msra.mxu0 %v5177_v32  ;;  %2249 = vmatpush1.bf16.msra.mxu1 %v5182_v6 }
 0x88d   :  { %2209 = vmatprep.subr.bf16.mxu0 %v5189_v23  ;;  %2250 = vmatprep.subr.bf16.mxu1 %v5194_v26 }
 0x890   :  { %2210 = vmatpush1.bf16.msra.mxu0 %v5201_v49  ;;  %2251 = vmatpush1.bf16.msra.mxu1 %v5206_v25 }
 0x891   :  { %2307 = vmatprep.subr.bf16.mxu0 %v5010_v14  ;;  %2348 = vmatprep.subr.bf16.mxu1 %v5018_v35 }
 0x893   :  { %2228 = vmatmul.mubr.bf16.vlgmr.msra.gmra.mrb[36].mxu0 %v5676_v11  ;;  %2269 = vmatmul.mubr.bf16.vlgmr.msra.gmra.mrb[68].mxu1 %v5676_v11 }
 0x894   :  { %2308 = vmatpush1.bf16.msra.mxu0 %v5030_v39  ;;  %2349 = vmatpush1.bf16.msra.mxu1 %v5035_v10 }
 0x895   :  { %2309 = vmatprep.subr.bf16.mxu0 %v5043_v28  ;;  %2350 = vmatprep.subr.bf16.mxu1 %v5048_v36 }
 0x896   :  { %2339 = vmatprep.mubr.bf16.mxu0 %v5676_v11  ;;  %2380 = vmatprep.mubr.bf16.mxu1 %v5676_v11 }
 0x898   :  { %2310 = vmatpush1.bf16.msra.mxu0 %v5055_v18  ;;  %2351 = vmatpush1.bf16.msra.mxu1 %v5060_v40 }
 0x899   :  { %2311 = vmatprep.subr.bf16.mxu0 %v5067_v50  ;;  %2352 = vmatprep.subr.bf16.mxu1 %v5072_v22 }
 0x89c   :  { %2312 = vmatpush1.bf16.msra.mxu0 %v5081_v52  ;;  %2353 = vmatpush1.bf16.msra.mxu1 %v5086_v8 }
 0x89d   :  { %2313 = vmatprep.subr.bf16.mxu0 %v5093_v48  ;;  %2354 = vmatprep.subr.bf16.mxu1 %v5098_v9 }
 0x8a0   :  { %2314 = vmatpush1.bf16.msra.mxu0 %v5105_v12  ;;  %2355 = vmatpush1.bf16.msra.mxu1 %v5110_v13 }
 0x8a1   :  { %2315 = vmatprep.subr.bf16.mxu0 %v5117_v15  ;;  %2356 = vmatprep.subr.bf16.mxu1 %v5122_v17 }
 0x8a4   :  { %2316 = vmatpush1.bf16.msra.mxu0 %v5129_v19  ;;  %2357 = vmatpush1.bf16.msra.mxu1 %v5134_v54 }
 0x8a5   :  { %2317 = vmatprep.subr.bf16.mxu0 %v5141_v55  ;;  %2358 = vmatprep.subr.bf16.mxu1 %v5146_v56 }
 0x8a8   :  { %2318 = vmatpush1.bf16.msra.mxu0 %v5153_v57  ;;  %2359 = vmatpush1.bf16.msra.mxu1 %v5158_v58 }
 0x8a9   :  { %2319 = vmatprep.subr.bf16.mxu0 %v5165_v46  ;;  %2360 = vmatprep.subr.bf16.mxu1 %v5170_v59 }
 0x8ac   :  { %2320 = vmatpush1.bf16.msra.mxu0 %v5177_v32  ;;  %2361 = vmatpush1.bf16.msra.mxu1 %v5182_v6 }
 0x8ad   :  { %2321 = vmatprep.subr.bf16.mxu0 %v5189_v23  ;;  %2362 = vmatprep.subr.bf16.mxu1 %v5194_v26 }
 0x8b0   :  { %2322 = vmatpush1.bf16.msra.mxu0 %v5201_v49  ;;  %2363 = vmatpush1.bf16.msra.mxu1 %v5206_v25 }
 0x8b1   :  { %2420 = vmatprep.subr.bf16.mxu0 %v5010_v14  ;;  %2461 = vmatprep.subr.bf16.mxu1 %v5018_v35 }
 0x946   :  { %v1987_v27 = vpop.f32.mrb[32].mxu0  ;;  %v2028_v30 = vpop.f32.mrb[64].mxu1 }
 0x947   :  { %v1989_v31 = vpop.f32.mrb[33].mxu0  ;;  %v2030_v60 = vpop.f32.mrb[65].mxu1  ;;  %v5257_v37 = vadd.f32 %v1987_v27, %v1776_v34  ;;  %v5686_v27 = vsub.s32 2, %v5682_v3 }
 0x948   :  { %v1991_v61 = vpop.f32.mrb[34].mxu0  ;;  %v2032_v62 = vpop.f32.mrb[66].mxu1  ;;  %v5259_v21 = vadd.f32 %v1989_v31, %v1780_v7  ;;  %v5265_v1 = vadd.f32 %v2030_v60, %v1788_v38 }
 0x949   :  { %v1992_v63 = vpop.f32.mrb[35].mxu0  ;;  %v2033_v0 = vpop.f32.mrb[67].mxu1  ;;  %v1784_v31 = vrot.slane %v1771_v2, %v5686_v27 }
 0x94b   :  { %v5270_v62 = vadd.f32 %v2028_v30, %v1784_v31 }
 0x966   :  { %v2229_v45 = vpop.f32.mrb[36].mxu0  ;;  %v2270_v29 = vpop.f32.mrb[68].mxu1 }
 0x967   :  { %v2277_v5 = vadd.f32 %v2229_v45, %v5257_v37  ;;  %v2231_v51 = vpop.f32.mrb[37].mxu0  ;;  %v2272_v33 = vpop.f32.mrb[69].mxu1  ;;  %v2279_v0 = vadd.f32 %v2270_v29, %v5270_v62 }
 0x968   :  { %v2278_v53 = vadd.f32 %v2231_v51, %v5259_v21  ;;  %v2233_v47 = vpop.f32.mrb[38].mxu0  ;;  %v2274_v42 = vpop.f32.mrb[70].mxu1  ;;  %v2280_v61 = vadd.f32 %v2272_v33, %v5265_v1 }
 0x969   :  { %v3454_v41 = vmul.f32 -1.442695, %v2277_v5  ;;  %v2234_v44 = vpop.f32.mrb[39].mxu0  ;;  %v2275_v24 = vpop.f32.mrb[71].mxu1 }
 0x96a   :  { %v3455_v16 = vmul.f32 -1.442695, %v2278_v53  ;;  %v3456_v63 = vmul.f32 -1.442695, %v2280_v61 }
 0x96b   :  { %3880 = vpow2.f32 %v3454_v41 }
 0x96c   :  { %3882 = vpow2.f32 %v3455_v16 }
 0x96d   :  { %3884 = vpow2.f32 %v3456_v63 }
 0x96e   :  { %3886 = vtanh.f32 %v2279_v0 }
 0x975   :  { %v3881_v4 = vpop.eup %3880 }
 0x976   :  { %v3883_v34 = vpop.eup %3882  ;;  %v2284_v43 = vadd.f32 1.0, %v3881_v4 }
 0x977   :  { %v2290_v7 = vadd.f32 1.0, %v3883_v34  ;;  %v3885_v60 = vpop.eup %3884 }
 0x978   :  { %3888 = vrcp.f32 %v2284_v43  ;;  %v3887_v45 = vpop.eup %3886  ;;  %v2297_v51 = vadd.f32 1.0, %v3885_v60 }
 0x979   :  { %3890 = vrcp.f32 %v2290_v7 }
 0x97a   :  { %3892 = vrcp.f32 %v2297_v51 }
 0x982   :  { %v3889_v5 = vpop.eup %3888 }
 0x983   :  { %v3891_v3 = vpop.eup %3890  ;;  %v2301_v2 = vmul.f32 %v3889_v5, %v3887_v45 }
 0x984   :  { %v2300_v33 = vmul.f32 0.0, %v3891_v3  ;;  %v3893_v29 = vpop.eup %3892 }
 0x986   :  { %v5273_v30 = vadd.f32 %v2301_v2, %v2300_v33 }
 0x988   :  { %3894 = vtanh.f32 %v5273_v30 }
 0x992   :  { %v3895_v20 = vpop.eup %3894 }
 0x993   :  { %v2304_v38 = vmul.f32 %v3895_v20, %v3893_v29 }
 0x995   :  { %v2305_v53 = vpack.c.bf16 %v2304_v38, %v2304_v38 }
 0x997   :  { %2306 = vst [vmem:[#allocation3] sm:$0xf] %v2305_v53  ;;  %2340 = vmatmul.mubr.bf16.vlgmr.msra.gmra.mrb[40].mxu0 %v2305_v53  ;;  %2381 = vmatmul.mubr.bf16.vlgmr.msra.gmra.mrb[72].mxu1 %v2305_v53 }
 0x998   :  { %2421 = vmatpush1.bf16.msra.mxu0 %v5030_v39  ;;  %2462 = vmatpush1.bf16.msra.mxu1 %v5035_v10 }
 0x999   :  { %2422 = vmatprep.subr.bf16.mxu0 %v5043_v28  ;;  %2463 = vmatprep.subr.bf16.mxu1 %v5048_v36 }
 0x99a   :  { %2452 = vmatprep.mubr.bf16.mxu0 %v5676_v11  ;;  %2493 = vmatprep.mubr.bf16.mxu1 %v5676_v11 }
 0x99c   :  { %2423 = vmatpush1.bf16.msra.mxu0 %v5055_v18  ;;  %2464 = vmatpush1.bf16.msra.mxu1 %v5060_v40 }
 0x99d   :  { %2424 = vmatprep.subr.bf16.mxu0 %v5067_v50  ;;  %2465 = vmatprep.subr.bf16.mxu1 %v5072_v22 }
 0x9a0   :  { %2425 = vmatpush1.bf16.msra.mxu0 %v5081_v52  ;;  %2466 = vmatpush1.bf16.msra.mxu1 %v5086_v8 }
 0x9a1   :  { %2426 = vmatprep.subr.bf16.mxu0 %v5093_v48  ;;  %2467 = vmatprep.subr.bf16.mxu1 %v5098_v9 }
 0x9a4   :  { %2427 = vmatpush1.bf16.msra.mxu0 %v5105_v12  ;;  %2468 = vmatpush1.bf16.msra.mxu1 %v5110_v13 }
 0x9a5   :  { %2428 = vmatprep.subr.bf16.mxu0 %v5117_v15  ;;  %2469 = vmatprep.subr.bf16.mxu1 %v5122_v17 }
 0x9a8   :  { %2429 = vmatpush1.bf16.msra.mxu0 %v5129_v19  ;;  %2470 = vmatpush1.bf16.msra.mxu1 %v5134_v54 }
 0x9a9   :  { %2430 = vmatprep.subr.bf16.mxu0 %v5141_v55  ;;  %2471 = vmatprep.subr.bf16.mxu1 %v5146_v56 }
 0x9ac   :  { %2431 = vmatpush1.bf16.msra.mxu0 %v5153_v57  ;;  %2472 = vmatpush1.bf16.msra.mxu1 %v5158_v58 }
 0x9ad   :  { %2432 = vmatprep.subr.bf16.mxu0 %v5165_v46  ;;  %2473 = vmatprep.subr.bf16.mxu1 %v5170_v59 }
 0x9b0   :  { %2433 = vmatpush1.bf16.msra.mxu0 %v5177_v32  ;;  %2474 = vmatpush1.bf16.msra.mxu1 %v5182_v6 }
 0x9b1   :  { %2434 = vmatprep.subr.bf16.mxu0 %v5189_v23  ;;  %2475 = vmatprep.subr.bf16.mxu1 %v5194_v26 }
 0x9b4   :  { %2435 = vmatpush1.bf16.msra.mxu0 %v5201_v49  ;;  %2476 = vmatpush1.bf16.msra.mxu1 %v5206_v25 }
 0x9b5   :  { %2533 = vmatprep.subr.bf16.mxu0 %v5010_v14  ;;  %2574 = vmatprep.subr.bf16.mxu1 %v5018_v35 }
 0xa6a   :  { %v2341_v47 = vpop.f32.mrb[40].mxu0  ;;  %v2382_v42 = vpop.f32.mrb[72].mxu1 }
 0xa6b   :  { %v2389_v41 = vadd.f32 %v2341_v47, %v5257_v37  ;;  %v2343_v44 = vpop.f32.mrb[41].mxu0  ;;  %v2384_v24 = vpop.f32.mrb[73].mxu1  ;;  %v2391_v7 = vadd.f32 %v2382_v42, %v5270_v62 }
 0xa6c   :  { %v2390_v16 = vadd.f32 %v2343_v44, %v5259_v21  ;;  %v2345_v27 = vpop.f32.mrb[42].mxu0  ;;  %v2386_v31 = vpop.f32.mrb[74].mxu1  ;;  %v2392_v34 = vadd.f32 %v2384_v24, %v5265_v1 }
 0xa6d   :  { %v3457_v61 = vmul.f32 -1.442695, %v2389_v41  ;;  %v2346_v63 = vpop.f32.mrb[43].mxu0  ;;  %v2387_v0 = vpop.f32.mrb[75].mxu1 }
 0xa6e   :  { %v3458_v4 = vmul.f32 -1.442695, %v2390_v16  ;;  %v3459_v43 = vmul.f32 -1.442695, %v2392_v34 }
 0xa6f   :  { %3896 = vpow2.f32 %v3457_v61 }
 0xa70   :  { %3898 = vpow2.f32 %v3458_v4 }
 0xa71   :  { %3900 = vpow2.f32 %v3459_v43 }
 0xa72   :  { %3902 = vtanh.f32 %v2391_v7 }
 0xa79   :  { %v3897_v60 = vpop.eup %3896 }
 0xa7a   :  { %v3899_v45 = vpop.eup %3898  ;;  %v2396_v5 = vadd.f32 1.0, %v3897_v60 }
 0xa7b   :  { %v2402_v3 = vadd.f32 1.0, %v3899_v45  ;;  %v3901_v2 = vpop.eup %3900 }
 0xa7c   :  { %3904 = vrcp.f32 %v2396_v5  ;;  %v3903_v51 = vpop.eup %3902  ;;  %v2409_v38 = vadd.f32 1.0, %v3901_v2 }
 0xa7d   :  { %3906 = vrcp.f32 %v2402_v3 }
 0xa7e   :  { %3908 = vrcp.f32 %v2409_v38 }
 0xa86   :  { %v3905_v33 = vpop.eup %3904 }
 0xa87   :  { %v3907_v29 = vpop.eup %3906  ;;  %v2413_v20 = vmul.f32 %v3905_v33, %v3903_v51 }
 0xa88   :  { %v2412_v53 = vmul.f32 %v3907_v29, %v5273_v30  ;;  %v3909_v42 = vpop.eup %3908 }
 0xa8a   :  { %v5315_v47 = vadd.f32 %v2413_v20, %v2412_v53 }
 0xa8c   :  { %3910 = vtanh.f32 %v5315_v47 }
 0xa96   :  { %v3911_v41 = vpop.eup %3910 }
 0xa97   :  { %v2416_v44 = vmul.f32 %v3911_v41, %v3909_v42 }
 0xa99   :  { %v2417_v24 = vpack.c.bf16 %v2416_v44, %v2416_v44 }
 0xa9b   :  { %2419 = vst [vmem:[#allocation3 + $0x4] sm:$0xf] %v2417_v24  ;;  %2453 = vmatmul.mubr.bf16.vlgmr.msra.gmra.mrb[44].mxu0 %v2417_v24  ;;  %2494 = vmatmul.mubr.bf16.vlgmr.msra.gmra.mrb[76].mxu1 %v2417_v24 }
 0xa9c   :  { %2534 = vmatpush1.bf16.msra.mxu0 %v5030_v39  ;;  %2575 = vmatpush1.bf16.msra.mxu1 %v5035_v10 }
 0xa9d   :  { %2535 = vmatprep.subr.bf16.mxu0 %v5043_v28  ;;  %2576 = vmatprep.subr.bf16.mxu1 %v5048_v36 }
 0xa9e   :  { %2565 = vmatprep.mubr.bf16.mxu0 %v5676_v11  ;;  %2606 = vmatprep.mubr.bf16.mxu1 %v5676_v11 }
 0xaa0   :  { %2536 = vmatpush1.bf16.msra.mxu0 %v5055_v18  ;;  %2577 = vmatpush1.bf16.msra.mxu1 %v5060_v40 }
 0xaa1   :  { %2537 = vmatprep.subr.bf16.mxu0 %v5067_v50  ;;  %2578 = vmatprep.subr.bf16.mxu1 %v5072_v22 }
 0xaa4   :  { %2538 = vmatpush1.bf16.msra.mxu0 %v5081_v52  ;;  %2579 = vmatpush1.bf16.msra.mxu1 %v5086_v8 }
 0xaa5   :  { %2539 = vmatprep.subr.bf16.mxu0 %v5093_v48  ;;  %2580 = vmatprep.subr.bf16.mxu1 %v5098_v9 }
 0xaa8   :  { %2540 = vmatpush1.bf16.msra.mxu0 %v5105_v12  ;;  %2581 = vmatpush1.bf16.msra.mxu1 %v5110_v13 }
 0xaa9   :  { %2541 = vmatprep.subr.bf16.mxu0 %v5117_v15  ;;  %2582 = vmatprep.subr.bf16.mxu1 %v5122_v17 }
 0xaac   :  { %2542 = vmatpush1.bf16.msra.mxu0 %v5129_v19  ;;  %2583 = vmatpush1.bf16.msra.mxu1 %v5134_v54 }
 0xaad   :  { %2543 = vmatprep.subr.bf16.mxu0 %v5141_v55  ;;  %2584 = vmatprep.subr.bf16.mxu1 %v5146_v56 }
 0xab0   :  { %2544 = vmatpush1.bf16.msra.mxu0 %v5153_v57  ;;  %2585 = vmatpush1.bf16.msra.mxu1 %v5158_v58 }
 0xab1   :  { %2545 = vmatprep.subr.bf16.mxu0 %v5165_v46  ;;  %2586 = vmatprep.subr.bf16.mxu1 %v5170_v59 }
 0xab4   :  { %2546 = vmatpush1.bf16.msra.mxu0 %v5177_v32  ;;  %2587 = vmatpush1.bf16.msra.mxu1 %v5182_v6 }
 0xab5   :  { %2547 = vmatprep.subr.bf16.mxu0 %v5189_v23  ;;  %2588 = vmatprep.subr.bf16.mxu1 %v5194_v26 }
 0xab8   :  { %2548 = vmatpush1.bf16.msra.mxu0 %v5201_v49  ;;  %2589 = vmatpush1.bf16.msra.mxu1 %v5206_v25 }
 0xab9   :  { %2646 = vmatprep.subr.bf16.mxu0 %v5010_v14  ;;  %2687 = vmatprep.subr.bf16.mxu1 %v5018_v35 }
 0xb6e   :  { %v2454_v30 = vpop.f32.mrb[44].mxu0  ;;  %v2495_v16 = vpop.f32.mrb[76].mxu1 }
 0xb6f   :  { %v2502_v27 = vadd.f32 %v2454_v30, %v5257_v37  ;;  %v2456_v31 = vpop.f32.mrb[45].mxu0  ;;  %v2497_v61 = vpop.f32.mrb[77].mxu1  ;;  %v2504_v3 = vadd.f32 %v2495_v16, %v5270_v62 }
 0xb70   :  { %v2503_v63 = vadd.f32 %v2456_v31, %v5259_v21  ;;  %v2458_v0 = vpop.f32.mrb[46].mxu0  ;;  %v2499_v4 = vpop.f32.mrb[78].mxu1  ;;  %v2505_v45 = vadd.f32 %v2497_v61, %v5265_v1 }
 0xb71   :  { %v3460_v34 = vmul.f32 -1.442695, %v2502_v27  ;;  %v2459_v43 = vpop.f32.mrb[47].mxu0  ;;  %v2500_v7 = vpop.f32.mrb[79].mxu1 }
 0xb72   :  { %v3461_v60 = vmul.f32 -1.442695, %v2503_v63  ;;  %v3462_v5 = vmul.f32 -1.442695, %v2505_v45 }
 0xb73   :  { %3912 = vpow2.f32 %v3460_v34 }
 0xb74   :  { %3914 = vpow2.f32 %v3461_v60 }
 0xb75   :  { %3916 = vpow2.f32 %v3462_v5 }
 0xb76   :  { %3918 = vtanh.f32 %v2504_v3 }
 0xb7d   :  { %v3913_v2 = vpop.eup %3912 }
 0xb7e   :  { %v3915_v51 = vpop.eup %3914  ;;  %v2509_v33 = vadd.f32 1.0, %v3913_v2 }
 0xb7f   :  { %v2515_v29 = vadd.f32 1.0, %v3915_v51  ;;  %v3917_v20 = vpop.eup %3916 }
 0xb80   :  { %3920 = vrcp.f32 %v2509_v33  ;;  %v3919_v38 = vpop.eup %3918  ;;  %v2522_v44 = vadd.f32 1.0, %v3917_v20 }
 0xb81   :  { %3922 = vrcp.f32 %v2515_v29 }
 0xb82   :  { %3924 = vrcp.f32 %v2522_v44 }
 0xb8a   :  { %v3921_v53 = vpop.eup %3920 }
 0xb8b   :  { %v3923_v42 = vpop.eup %3922  ;;  %v2526_v41 = vmul.f32 %v3921_v53, %v3919_v38 }
 0xb8c   :  { %v2525_v24 = vmul.f32 %v3923_v42, %v5315_v47  ;;  %v3925_v16 = vpop.eup %3924 }
 0xb8e   :  { %v5357_v30 = vadd.f32 %v2526_v41, %v2525_v24 }
 0xb90   :  { %3926 = vtanh.f32 %v5357_v30 }
 0xb9a   :  { %v3927_v27 = vpop.eup %3926 }
 0xb9b   :  { %v2529_v31 = vmul.f32 %v3927_v27, %v3925_v16 }
 0xb9d   :  { %v2530_v61 = vpack.c.bf16 %v2529_v31, %v2529_v31 }
 0xb9f   :  { %2532 = vst [vmem:[#allocation3 + $0x8] sm:$0xf] %v2530_v61  ;;  %2566 = vmatmul.mubr.bf16.vlgmr.msra.gmra.mrb[48].mxu0 %v2530_v61  ;;  %2607 = vmatmul.mubr.bf16.vlgmr.msra.gmra.mrb[80].mxu1 %v2530_v61 }
 0xba0   :  { %2647 = vmatpush1.bf16.msra.mxu0 %v5030_v39  ;;  %2688 = vmatpush1.bf16.msra.mxu1 %v5035_v10 }
 0xba1   :  { %2648 = vmatprep.subr.bf16.mxu0 %v5043_v28  ;;  %2689 = vmatprep.subr.bf16.mxu1 %v5048_v36 }
 0xba2   :  { %2678 = vmatprep.mubr.bf16.mxu0 %v5676_v11  ;;  %2719 = vmatprep.mubr.bf16.mxu1 %v5676_v11 }
 0xba4   :  { %2649 = vmatpush1.bf16.msra.mxu0 %v5055_v18  ;;  %2690 = vmatpush1.bf16.msra.mxu1 %v5060_v40 }
 0xba5   :  { %2650 = vmatprep.subr.bf16.mxu0 %v5067_v50  ;;  %2691 = vmatprep.subr.bf16.mxu1 %v5072_v22 }
 0xba8   :  { %2651 = vmatpush1.bf16.msra.mxu0 %v5081_v52  ;;  %2692 = vmatpush1.bf16.msra.mxu1 %v5086_v8 }
 0xba9   :  { %2652 = vmatprep.subr.bf16.mxu0 %v5093_v48  ;;  %2693 = vmatprep.subr.bf16.mxu1 %v5098_v9 }
 0xbac   :  { %2653 = vmatpush1.bf16.msra.mxu0 %v5105_v12  ;;  %2694 = vmatpush1.bf16.msra.mxu1 %v5110_v13 }
 0xbad   :  { %2654 = vmatprep.subr.bf16.mxu0 %v5117_v15  ;;  %2695 = vmatprep.subr.bf16.mxu1 %v5122_v17 }
 0xbb0   :  { %2655 = vmatpush1.bf16.msra.mxu0 %v5129_v19  ;;  %2696 = vmatpush1.bf16.msra.mxu1 %v5134_v54 }
 0xbb1   :  { %2656 = vmatprep.subr.bf16.mxu0 %v5141_v55  ;;  %2697 = vmatprep.subr.bf16.mxu1 %v5146_v56 }
 0xbb4   :  { %2657 = vmatpush1.bf16.msra.mxu0 %v5153_v57  ;;  %2698 = vmatpush1.bf16.msra.mxu1 %v5158_v58 }
 0xbb5   :  { %2658 = vmatprep.subr.bf16.mxu0 %v5165_v46  ;;  %2699 = vmatprep.subr.bf16.mxu1 %v5170_v59 }
 0xbb8   :  { %2659 = vmatpush1.bf16.msra.mxu0 %v5177_v32  ;;  %2700 = vmatpush1.bf16.msra.mxu1 %v5182_v6 }
 0xbb9   :  { %2660 = vmatprep.subr.bf16.mxu0 %v5189_v23  ;;  %2701 = vmatprep.subr.bf16.mxu1 %v5194_v26 }
 0xbbc   :  { %2661 = vmatpush1.bf16.msra.mxu0 %v5201_v49  ;;  %2702 = vmatpush1.bf16.msra.mxu1 %v5206_v25 }
 0xbbd   :  { %2759 = vmatprep.subr.bf16.mxu0 %v5010_v14  ;;  %2800 = vmatprep.subr.bf16.mxu1 %v5018_v35 }
 0xc72   :  { %v2567_v47 = vpop.f32.mrb[48].mxu0  ;;  %v2608_v63 = vpop.f32.mrb[80].mxu1 }
 0xc73   :  { %v2615_v0 = vadd.f32 %v2567_v47, %v5257_v37  ;;  %v2569_v4 = vpop.f32.mrb[49].mxu0  ;;  %v2610_v34 = vpop.f32.mrb[81].mxu1  ;;  %v2617_v29 = vadd.f32 %v2608_v63, %v5270_v62 }
 0xc74   :  { %v2616_v43 = vadd.f32 %v2569_v4, %v5259_v21  ;;  %v2571_v7 = vpop.f32.mrb[50].mxu0  ;;  %v2612_v60 = vpop.f32.mrb[82].mxu1  ;;  %v2618_v51 = vadd.f32 %v2610_v34, %v5265_v1 }
 0xc75   :  { %v3463_v45 = vmul.f32 -1.442695, %v2615_v0  ;;  %v2572_v5 = vpop.f32.mrb[51].mxu0  ;;  %v2613_v3 = vpop.f32.mrb[83].mxu1 }
 0xc76   :  { %v3464_v2 = vmul.f32 -1.442695, %v2616_v43  ;;  %v3465_v33 = vmul.f32 -1.442695, %v2618_v51 }
 0xc77   :  { %3928 = vpow2.f32 %v3463_v45 }
 0xc78   :  { %3930 = vpow2.f32 %v3464_v2 }
 0xc79   :  { %3932 = vpow2.f32 %v3465_v33 }
 0xc7a   :  { %3934 = vtanh.f32 %v2617_v29 }
 0xc81   :  { %v3929_v20 = vpop.eup %3928 }
 0xc82   :  { %v3931_v38 = vpop.eup %3930  ;;  %v2622_v53 = vadd.f32 1.0, %v3929_v20 }
 0xc83   :  { %v2628_v42 = vadd.f32 1.0, %v3931_v38  ;;  %v3933_v41 = vpop.eup %3932 }
 0xc84   :  { %3936 = vrcp.f32 %v2622_v53  ;;  %v3935_v44 = vpop.eup %3934  ;;  %v2635_v31 = vadd.f32 1.0, %v3933_v41 }
 0xc85   :  { %3938 = vrcp.f32 %v2628_v42 }
 0xc86   :  { %3940 = vrcp.f32 %v2635_v31 }
 0xc8e   :  { %v3937_v24 = vpop.eup %3936 }
 0xc8f   :  { %v3939_v16 = vpop.eup %3938  ;;  %v2639_v27 = vmul.f32 %v3937_v24, %v3935_v44 }
 0xc90   :  { %v2638_v61 = vmul.f32 %v3939_v16, %v5357_v30  ;;  %v3941_v63 = vpop.eup %3940 }
 0xc92   :  { %v5399_v47 = vadd.f32 %v2639_v27, %v2638_v61 }
 0xc94   :  { %3942 = vtanh.f32 %v5399_v47 }
 0xc9e   :  { %v3943_v0 = vpop.eup %3942 }
 0xc9f   :  { %v2642_v4 = vmul.f32 %v3943_v0, %v3941_v63 }
 0xca1   :  { %v2643_v34 = vpack.c.bf16 %v2642_v4, %v2642_v4 }
 0xca3   :  { %2645 = vst [vmem:[#allocation3 + $0xc] sm:$0xf] %v2643_v34  ;;  %2679 = vmatmul.mubr.bf16.vlgmr.msra.gmra.mrb[52].mxu0 %v2643_v34  ;;  %2720 = vmatmul.mubr.bf16.vlgmr.msra.gmra.mrb[84].mxu1 %v2643_v34 }
 0xca4   :  { %2760 = vmatpush1.bf16.msra.mxu0 %v5030_v39  ;;  %2801 = vmatpush1.bf16.msra.mxu1 %v5035_v10 }
 0xca5   :  { %2761 = vmatprep.subr.bf16.mxu0 %v5043_v28  ;;  %2802 = vmatprep.subr.bf16.mxu1 %v5048_v36 }
 0xca6   :  { %2791 = vmatprep.mubr.bf16.mxu0 %v5676_v11  ;;  %2832 = vmatprep.mubr.bf16.mxu1 %v5676_v11 }
 0xca8   :  { %2762 = vmatpush1.bf16.msra.mxu0 %v5055_v18  ;;  %2803 = vmatpush1.bf16.msra.mxu1 %v5060_v40 }
 0xca9   :  { %2763 = vmatprep.subr.bf16.mxu0 %v5067_v50  ;;  %2804 = vmatprep.subr.bf16.mxu1 %v5072_v22 }
 0xcac   :  { %2764 = vmatpush1.bf16.msra.mxu0 %v5081_v52  ;;  %2805 = vmatpush1.bf16.msra.mxu1 %v5086_v8 }
 0xcad   :  { %2765 = vmatprep.subr.bf16.mxu0 %v5093_v48  ;;  %2806 = vmatprep.subr.bf16.mxu1 %v5098_v9 }
 0xcb0   :  { %2766 = vmatpush1.bf16.msra.mxu0 %v5105_v12  ;;  %2807 = vmatpush1.bf16.msra.mxu1 %v5110_v13 }
 0xcb1   :  { %2767 = vmatprep.subr.bf16.mxu0 %v5117_v15  ;;  %2808 = vmatprep.subr.bf16.mxu1 %v5122_v17 }
 0xcb4   :  { %2768 = vmatpush1.bf16.msra.mxu0 %v5129_v19  ;;  %2809 = vmatpush1.bf16.msra.mxu1 %v5134_v54 }
 0xcb5   :  { %2769 = vmatprep.subr.bf16.mxu0 %v5141_v55  ;;  %2810 = vmatprep.subr.bf16.mxu1 %v5146_v56 }
 0xcb8   :  { %2770 = vmatpush1.bf16.msra.mxu0 %v5153_v57  ;;  %2811 = vmatpush1.bf16.msra.mxu1 %v5158_v58 }
 0xcb9   :  { %2771 = vmatprep.subr.bf16.mxu0 %v5165_v46  ;;  %2812 = vmatprep.subr.bf16.mxu1 %v5170_v59 }
 0xcbc   :  { %2772 = vmatpush1.bf16.msra.mxu0 %v5177_v32  ;;  %2813 = vmatpush1.bf16.msra.mxu1 %v5182_v6 }
 0xcbd   :  { %2773 = vmatprep.subr.bf16.mxu0 %v5189_v23  ;;  %2814 = vmatprep.subr.bf16.mxu1 %v5194_v26 }
 0xcc0   :  { %2774 = vmatpush1.bf16.msra.mxu0 %v5201_v49  ;;  %2815 = vmatpush1.bf16.msra.mxu1 %v5206_v25 }
 0xcc1   :  { %2872 = vmatprep.subr.bf16.mxu0 %v5010_v14  ;;  %2913 = vmatprep.subr.bf16.mxu1 %v5018_v35 }
 0xd76   :  { %v2680_v30 = vpop.f32.mrb[52].mxu0  ;;  %v2721_v43 = vpop.f32.mrb[84].mxu1 }
 0xd77   :  { %v2728_v7 = vadd.f32 %v2680_v30, %v5257_v37  ;;  %v2682_v60 = vpop.f32.mrb[53].mxu0  ;;  %v2723_v45 = vpop.f32.mrb[85].mxu1  ;;  %v2730_v35 = vadd.f32 %v2721_v43, %v5270_v62 }
 0xd78   :  { %v2729_v5 = vadd.f32 %v2682_v60, %v5259_v21  ;;  %v2684_v3 = vpop.f32.mrb[54].mxu0  ;;  %v2725_v2 = vpop.f32.mrb[86].mxu1  ;;  %v2731_v14 = vadd.f32 %v2723_v45, %v5265_v1 }
 0xd79   :  { %v3466_v51 = vmul.f32 -1.442695, %v2728_v7  ;;  %v2685_v33 = vpop.f32.mrb[55].mxu0  ;;  %v2726_v29 = vpop.f32.mrb[87].mxu1  ;;  %v4043_v3 = vld [vmem:[%s5651_s5 + $0x8] ss:$16 sps:$4 sm:$0xff]  }
 0xd7a   :  { %v3467_v20 = vmul.f32 -1.442695, %v2729_v5  ;;  %v3468_v38 = vmul.f32 -1.442695, %v2731_v14  ;;  %v4042_v5 = vld [vmem:[%s5651_s5] ss:$16 sps:$4 sm:$0xff]  }
 0xd7b   :  { %3944 = vpow2.f32 %v3466_v51  ;;  %v4044_v2 = vld [vmem:[%s5651_s5 + $0x24] ss:$16 sps:$4 sm:$0xff]   ;;  %v4045_v51 = vld [vmem:[%s5651_s5 + $0x2c] ss:$16 sps:$4 sm:$0xff]   ;;  %v4046_v33 = vld [vmem:[%s5651_s5 + $0x20] ss:$16 sps:$4 sm:$0xff]  }
 0xd7c   :  { %3946 = vpow2.f32 %v3467_v20  ;;  %v4047_v29 = vld [vmem:[%s5651_s5 + $0x28] ss:$16 sps:$4 sm:$0xff]   ;;  %v4048_v20 = vld [vmem:[%s5651_s5 + $0x44] ss:$16 sps:$4 sm:$0xff]   ;;  %v4049_v14 = vld [vmem:[%s5651_s5 + $0x4c] ss:$16 sps:$4 sm:$0xff]  }
 0xd7d   :  { %3948 = vpow2.f32 %v3468_v38  ;;  %v4051_v38 = vld [vmem:[%s5651_s5 + $0x48] ss:$16 sps:$4 sm:$0xff]  }
 0xd7e   :  { %3950 = vtanh.f32 %v2730_v35  ;;  %v4052_v35 = vld [vmem:[%s5651_s5 + $0x64] ss:$16 sps:$4 sm:$0xff]  }
 0xd85   :  { %v3945_v53 = vpop.eup %3944 }
 0xd86   :  { %v3947_v42 = vpop.eup %3946  ;;  %v2735_v41 = vadd.f32 1.0, %v3945_v53  ;;  %v4053_v53 = vld [vmem:[%s5651_s5 + $0x6c] ss:$16 sps:$4 sm:$0xff]  }
 0xd87   :  { %v2741_v44 = vadd.f32 1.0, %v3947_v42  ;;  %v3949_v24 = vpop.eup %3948  ;;  %v4054_v42 = vld [vmem:[%s5651_s5 + $0x60] ss:$16 sps:$4 sm:$0xff]  }
 0xd88   :  { %3952 = vrcp.f32 %v2735_v41  ;;  %v3951_v16 = vpop.eup %3950  ;;  %v2748_v63 = vadd.f32 1.0, %v3949_v24  ;;  %v4055_v41 = vld [vmem:[%s5651_s5 + $0x68] ss:$16 sps:$4 sm:$0xff]   ;;  %v4057_v24 = vld [vmem:[%s5651_s5 + $0x8c] ss:$16 sps:$4 sm:$0xff]  }
 0xd89   :  { %3954 = vrcp.f32 %v2741_v44  ;;  %v4056_v44 = vld [vmem:[%s5651_s5 + $0x84] ss:$16 sps:$4 sm:$0xff]  }
 0xd8a   :  { %3956 = vrcp.f32 %v2748_v63  ;;  %v4062_v63 = vld [vmem:[%s5651_s5 + $0xa0] ss:$16 sps:$4 sm:$0xff]  }
 0xd92   :  { %v3953_v27 = vpop.eup %3952 }
 0xd93   :  { %v3955_v31 = vpop.eup %3954  ;;  %v2752_v61 = vmul.f32 %v3953_v27, %v3951_v16  ;;  %v4058_v16 = vld [vmem:[%s5651_s5 + $0x80] ss:$16 sps:$4 sm:$0xff]   ;;  %v4059_v27 = vld [vmem:[%s5651_s5 + $0x88] ss:$16 sps:$4 sm:$0xff]  }
 0xd94   :  { %v2751_v0 = vmul.f32 %v3955_v31, %v5399_v47  ;;  %v3957_v34 = vpop.eup %3956  ;;  %v4060_v31 = vld [vmem:[%s5651_s5 + $0xa4] ss:$16 sps:$4 sm:$0xff]  }
 0xd96   :  { %v5441_v4 = vadd.f32 %v2752_v61, %v2751_v0  ;;  %v4061_v61 = vld [vmem:[%s5651_s5 + $0xac] ss:$16 sps:$4 sm:$0xff]   ;;  %v4063_v0 = vld [vmem:[%s5651_s5 + $0xa8] ss:$16 sps:$4 sm:$0xff]  }
 0xd98   :  { %3958 = vtanh.f32 %v5441_v4 }
 0xda2   :  { %v3959_v30 = vpop.eup %3958 }
 0xda3   :  { %v2755_v43 = vmul.f32 %v3959_v30, %v3957_v34  ;;  %v4065_v34 = vld [vmem:[%s5651_s5 + $0xcc] ss:$16 sps:$4 sm:$0xff]   ;;  %v4066_v30 = vld [vmem:[%s5651_s5 + $0xc0] ss:$16 sps:$4 sm:$0xff]  }
 0xda5   :  { %v2756_v7 = vpack.c.bf16 %v2755_v43, %v2755_v43  ;;  %v4067_v43 = vld [vmem:[%s5651_s5 + $0xc8] ss:$16 sps:$4 sm:$0xff]  }
 0xda7   :  { %2758 = vst [vmem:[#allocation3 + $0x10] sm:$0xf] %v2756_v7  ;;  %2792 = vmatmul.mubr.bf16.vlgmr.msra.gmra.mrb[56].mxu0 %v2756_v7  ;;  %2833 = vmatmul.mubr.bf16.vlgmr.msra.gmra.mrb[88].mxu1 %v2756_v7  ;;  %v4068_v7 = vld [vmem:[%s5651_s5 + $0xe4] ss:$16 sps:$4 sm:$0xff]  }
 0xda8   :  { %2873 = vmatpush1.bf16.msra.mxu0 %v5030_v39  ;;  %2914 = vmatpush1.bf16.msra.mxu1 %v5035_v10  ;;  %v4040_v39 = vld [vmem:[%s5651_s5 + $0x4] ss:$16 sps:$4 sm:$0xff]   ;;  %v4041_v10 = vld [vmem:[%s5651_s5 + $0xc] ss:$16 sps:$4 sm:$0xff]  }
 0xda9   :  { %2874 = vmatprep.subr.bf16.mxu0 %v5043_v28  ;;  %2915 = vmatprep.subr.bf16.mxu1 %v5048_v36 }
 0xdaa   :  { %2904 = vmatprep.mubr.bf16.mxu0 %v5676_v11  ;;  %2945 = vmatprep.mubr.bf16.mxu1 %v5676_v11 }
 0xdac   :  { %2875 = vmatpush1.bf16.msra.mxu0 %v5055_v18  ;;  %2916 = vmatpush1.bf16.msra.mxu1 %v5060_v40 }
 0xdad   :  { %2876 = vmatprep.subr.bf16.mxu0 %v5067_v50  ;;  %2917 = vmatprep.subr.bf16.mxu1 %v5072_v22 }
 0xdb0   :  { %2877 = vmatpush1.bf16.msra.mxu0 %v5081_v52  ;;  %2918 = vmatpush1.bf16.msra.mxu1 %v5086_v8 }
 0xdb1   :  { %2878 = vmatprep.subr.bf16.mxu0 %v5093_v48  ;;  %2919 = vmatprep.subr.bf16.mxu1 %v5098_v9 }
 0xdb4   :  { %2879 = vmatpush1.bf16.msra.mxu0 %v5105_v12  ;;  %2920 = vmatpush1.bf16.msra.mxu1 %v5110_v13 }
 0xdb5   :  { %2880 = vmatprep.subr.bf16.mxu0 %v5117_v15  ;;  %2921 = vmatprep.subr.bf16.mxu1 %v5122_v17 }
 0xdb8   :  { %2881 = vmatpush1.bf16.msra.mxu0 %v5129_v19  ;;  %2922 = vmatpush1.bf16.msra.mxu1 %v5134_v54 }
 0xdb9   :  { %2882 = vmatprep.subr.bf16.mxu0 %v5141_v55  ;;  %2923 = vmatprep.subr.bf16.mxu1 %v5146_v56 }
 0xdbc   :  { %2883 = vmatpush1.bf16.msra.mxu0 %v5153_v57  ;;  %2924 = vmatpush1.bf16.msra.mxu1 %v5158_v58 }
 0xdbd   :  { %2884 = vmatprep.subr.bf16.mxu0 %v5165_v46  ;;  %2925 = vmatprep.subr.bf16.mxu1 %v5170_v59 }
 0xdc0   :  { %2885 = vmatpush1.bf16.msra.mxu0 %v5177_v32  ;;  %2926 = vmatpush1.bf16.msra.mxu1 %v5182_v6 }
 0xdc1   :  { %2886 = vmatprep.subr.bf16.mxu0 %v5189_v23  ;;  %2927 = vmatprep.subr.bf16.mxu1 %v5194_v26 }
 0xdc4   :  { %2887 = vmatpush1.bf16.msra.mxu0 %v5201_v49  ;;  %2928 = vmatpush1.bf16.msra.mxu1 %v5206_v25 }
 0xdc5   :  { %2985 = vmatprep.subr.bf16.mxu0 %v4040_v39  ;;  %3026 = vmatprep.subr.bf16.mxu1 %v4041_v10  ;;  %v4069_v39 = vld [vmem:[%s5651_s5 + $0xec] ss:$16 sps:$4 sm:$0xff]   ;;  %v4070_v10 = vld [vmem:[%s5651_s5 + $0xe0] ss:$16 sps:$4 sm:$0xff]  }
 0xe7a   :  { %v2793_v28 = vpop.f32.mrb[56].mxu0  ;;  %v2834_v36 = vpop.f32.mrb[88].mxu1 }
 0xe7b   :  { %v2841_v18 = vadd.f32 %v2793_v28, %v5257_v37  ;;  %v2795_v40 = vpop.f32.mrb[57].mxu0  ;;  %v2836_v50 = vpop.f32.mrb[89].mxu1  ;;  %v2843_v19 = vadd.f32 %v2834_v36, %v5270_v62  ;;  %v4071_v28 = vld [vmem:[%s5651_s5 + $0xe8] ss:$16 sps:$4 sm:$0xff]   ;;  %v3740_v36 = vld [vmem:[%s5654_s7] sm:$0xff]  }
 0xe7c   :  { %v2842_v22 = vadd.f32 %v2795_v40, %v5259_v21  ;;  %v2797_v52 = vpop.f32.mrb[58].mxu0  ;;  %v2838_v8 = vpop.f32.mrb[90].mxu1  ;;  %v2844_v15 = vadd.f32 %v2836_v50, %v5265_v1 }
 0xe7d   :  { %v3469_v48 = vmul.f32 -1.442695, %v2841_v18  ;;  %v2798_v9 = vpop.f32.mrb[59].mxu0  ;;  %v2839_v12 = vpop.f32.mrb[91].mxu1 }
 0xe7e   :  { %v3470_v13 = vmul.f32 -1.442695, %v2842_v22  ;;  %v3471_v17 = vmul.f32 -1.442695, %v2844_v15 }
 0xe7f   :  { %3960 = vpow2.f32 %v3469_v48 }
 0xe80   :  { %3962 = vpow2.f32 %v3470_v13 }
 0xe81   :  { %3964 = vpow2.f32 %v3471_v17 }
 0xe82   :  { %3966 = vtanh.f32 %v2843_v19 }
 0xe89   :  { %v3961_v54 = vpop.eup %3960 }
 0xe8a   :  { %v3963_v55 = vpop.eup %3962  ;;  %v2848_v56 = vadd.f32 1.0, %v3961_v54 }
 0xe8b   :  { %v2854_v57 = vadd.f32 1.0, %v3963_v55  ;;  %v3965_v58 = vpop.eup %3964 }
 0xe8c   :  { %3968 = vrcp.f32 %v2848_v56  ;;  %v3967_v46 = vpop.eup %3966  ;;  %v2861_v23 = vadd.f32 1.0, %v3965_v58 }
 0xe8d   :  { %3970 = vrcp.f32 %v2854_v57 }
 0xe8e   :  { %3972 = vrcp.f32 %v2861_v23 }
 0xe96   :  { %v3969_v59 = vpop.eup %3968 }
 0xe97   :  { %v3971_v32 = vpop.eup %3970  ;;  %v2865_v6 = vmul.f32 %v3969_v59, %v3967_v46 }
 0xe98   :  { %v2864_v26 = vmul.f32 %v3971_v32, %v5441_v4  ;;  %v3973_v25 = vpop.eup %3972  ;;  %v4064_v4 = vld [vmem:[%s5651_s5 + $0xc4] ss:$16 sps:$4 sm:$0xff]  }
 0xe9a   :  { %v5487_v49 = vadd.f32 %v2865_v6, %v2864_v26 }
 0xe9c   :  { %3974 = vtanh.f32 %v5487_v49 }
 0xea6   :  { %v3975_v47 = vpop.eup %3974 }
 0xea7   :  { %v2868_v60 = vmul.f32 %v3975_v47, %v3973_v25 }
 0xea9   :  { %v2869_v45 = vpack.c.bf16 %v2868_v60, %v2868_v60 }
 0xeab   :  { %2871 = vst [vmem:[#allocation3 + $0x14] sm:$0xf] %v2869_v45  ;;  %2905 = vmatmul.mubr.bf16.vlgmr.msra.gmra.mrb[60].mxu0 %v2869_v45  ;;  %2946 = vmatmul.mubr.bf16.vlgmr.msra.gmra.mrb[92].mxu1 %v2869_v45 }
 0xeac   :  { %2986 = vmatpush1.bf16.msra.mxu0 %v4042_v5  ;;  %3027 = vmatpush1.bf16.msra.mxu1 %v4043_v3 }
 0xead   :  { %2987 = vmatprep.subr.bf16.mxu0 %v4044_v2  ;;  %3028 = vmatprep.subr.bf16.mxu1 %v4045_v51  ;;  %v3742_v51 = vld [vmem:[%s5654_s7 + $0x8] sm:$0xff]  }
 0xeae   :  { %3017 = vmatprep.mubr.bf16.mxu0 %v5676_v11  ;;  %3058 = vmatprep.mubr.bf16.mxu1 %v5676_v11  ;;  %v4050_v11 = vld [vmem:[%s5651_s5 + $0x40] ss:$16 sps:$4 sm:$0xff]  }
 0xeb0   :  { %2988 = vmatpush1.bf16.msra.mxu0 %v4046_v33  ;;  %3029 = vmatpush1.bf16.msra.mxu1 %v4047_v29  ;;  %v3741_v33 = vld [vmem:[#allocation3] sm:$0xff]   ;;  %v3744_v29 = vld [vmem:[%s5654_s7 + $0x18] sm:$0xff]  }
 0xeb1   :  { %2989 = vmatprep.subr.bf16.mxu0 %v4048_v20  ;;  %3030 = vmatprep.subr.bf16.mxu1 %v4049_v14  ;;  %v3745_v20 = vld [vmem:[%s5654_s7 + $0x20] sm:$0xff]   ;;  %v3746_v14 = vld [vmem:[%s5654_s7 + $0x28] sm:$0xff]  }
 0xeb4   :  { %2990 = vmatpush1.bf16.msra.mxu0 %v4050_v11  ;;  %3031 = vmatpush1.bf16.msra.mxu1 %v4051_v38  ;;  %v3747_v11 = vld [vmem:[%s5654_s7 + $0x30] sm:$0xff]   ;;  %v3748_v38 = vld [vmem:[%s5654_s7 + $0x38] sm:$0xff]  }
 0xeb5   :  { %2991 = vmatprep.subr.bf16.mxu0 %v4052_v35  ;;  %3032 = vmatprep.subr.bf16.mxu1 %v4053_v53  ;;  %v3749_v35 = vld [vmem:[#allocation3 + $0x8] sm:$0xff]   ;;  %v3750_v53 = vld [vmem:[#allocation3 + $0x10] sm:$0xff]  }
 0xeb8   :  { %2992 = vmatpush1.bf16.msra.mxu0 %v4054_v42  ;;  %3033 = vmatpush1.bf16.msra.mxu1 %v4055_v41 }
 0xeb9   :  { %2993 = vmatprep.subr.bf16.mxu0 %v4056_v44  ;;  %3034 = vmatprep.subr.bf16.mxu1 %v4057_v24 }
 0xebc   :  { %2994 = vmatpush1.bf16.msra.mxu0 %v4058_v16  ;;  %3035 = vmatpush1.bf16.msra.mxu1 %v4059_v27 }
 0xebd   :  { %2995 = vmatprep.subr.bf16.mxu0 %v4060_v31  ;;  %3036 = vmatprep.subr.bf16.mxu1 %v4061_v61 }
 0xec0   :  { %2996 = vmatpush1.bf16.msra.mxu0 %v4062_v63  ;;  %3037 = vmatpush1.bf16.msra.mxu1 %v4063_v0 }
 0xec1   :  { %2997 = vmatprep.subr.bf16.mxu0 %v4064_v4  ;;  %3038 = vmatprep.subr.bf16.mxu1 %v4065_v34 }
 0xec4   :  { %2998 = vmatpush1.bf16.msra.mxu0 %v4066_v30  ;;  %3039 = vmatpush1.bf16.msra.mxu1 %v4067_v43 }
 0xec5   :  { %2999 = vmatprep.subr.bf16.mxu0 %v4068_v7  ;;  %3040 = vmatprep.subr.bf16.mxu1 %v4069_v39 }
 0xec8   :  { %3000 = vmatpush1.bf16.msra.mxu0 %v4070_v10  ;;  %3041 = vmatpush1.bf16.msra.mxu1 %v4071_v28 }
 0xec9   :  { %3519 = vmatprep.subr.bf16.mxu0 %v3740_v36 }
 0xf7e   :  { %v2906_v18 = vpop.f32.mrb[60].mxu0  ;;  %v2947_v40 = vpop.f32.mrb[92].mxu1 }
 0xf7f   :  { %v2954_v50 = vadd.f32 %v2906_v18, %v5257_v37  ;;  %v2908_v22 = vpop.f32.mrb[61].mxu0  ;;  %v2949_v52 = vpop.f32.mrb[93].mxu1  ;;  %v2956_v55 = vadd.f32 %v2947_v40, %v5270_v62 }
 0xf80   :  { %v2955_v8 = vadd.f32 %v2908_v22, %v5259_v21  ;;  %v2910_v48 = vpop.f32.mrb[62].mxu0  ;;  %v2951_v9 = vpop.f32.mrb[94].mxu1  ;;  %v2957_v19 = vadd.f32 %v2949_v52, %v5265_v1 }
 0xf81   :  { %v3472_v12 = vmul.f32 -1.442695, %v2954_v50  ;;  %v2911_v13 = vpop.f32.mrb[63].mxu0  ;;  %v2952_v15 = vpop.f32.mrb[95].mxu1 }
 0xf82   :  { %v3473_v17 = vmul.f32 -1.442695, %v2955_v8  ;;  %v3474_v54 = vmul.f32 -1.442695, %v2957_v19 }
 0xf83   :  { %3976 = vpow2.f32 %v3472_v12 }
 0xf84   :  { %3978 = vpow2.f32 %v3473_v17 }
 0xf85   :  { %3980 = vpow2.f32 %v3474_v54 }
 0xf86   :  { %3982 = vtanh.f32 %v2956_v55 }
 0xf8d   :  { %v3977_v56 = vpop.eup %3976 }
 0xf8e   :  { %v3979_v57 = vpop.eup %3978  ;;  %v2961_v58 = vadd.f32 1.0, %v3977_v56 }
 0xf8f   :  { %v2967_v46 = vadd.f32 1.0, %v3979_v57  ;;  %v3981_v59 = vpop.eup %3980 }
 0xf90   :  { %3984 = vrcp.f32 %v2961_v58  ;;  %v3983_v32 = vpop.eup %3982  ;;  %v2974_v25 = vadd.f32 1.0, %v3981_v59 }
 0xf91   :  { %3986 = vrcp.f32 %v2967_v46 }
 0xf92   :  { %3988 = vrcp.f32 %v2974_v25 }
 0xf9a   :  { %v3985_v6 = vpop.eup %3984 }
 0xf9b   :  { %v3987_v23 = vpop.eup %3986  ;;  %v2978_v26 = vmul.f32 %v3985_v6, %v3983_v32 }
 0xf9c   :  { %v2977_v47 = vmul.f32 %v3987_v23, %v5487_v49  ;;  %v3989_v45 = vpop.eup %3988  ;;  %v3743_v49 = vld [vmem:[%s5654_s7 + $0x10] sm:$0xff]  }
 0xf9e   :  { %v5590_v60 = vadd.f32 %v2978_v26, %v2977_v47 }
 0xfa0   :  { %3990 = vtanh.f32 %v5590_v60 }
 0xfaa   :  { %v3991_v5 = vpop.eup %3990 }
 0xfab   :  { %v2981_v3 = vmul.f32 %v3991_v5, %v3989_v45 }
 0xfad   :  { %v2982_v2 = vpack.c.bf16 %v2981_v3, %v2981_v3 }
 0xfaf   :  { %2984 = vst [vmem:[#allocation3 + $0x18] sm:$0xf] %v2982_v2  ;;  %3018 = vmatmul.mubr.bf16.vlgmr.msra.gmra.mrb[64].mxu0 %v2982_v2  ;;  %3059 = vmatmul.mubr.bf16.vlgmr.msra.gmra.mrb[96].mxu1 %v2982_v2 }
 0xfb0   :  { %3520 = vmatpush3.bf16.msra.mxu0 %v3740_v36  ;;  %3535 = vmatprep.mubr.bf16.mxu0 %v3741_v33 }
 0xfb1   :  { %3521 = vmatprep.subr.bf16.mxu0 %v3742_v51 }
 0xfb4   :  { %3522 = vmatpush3.bf16.msra.mxu0 %v3742_v51 }
 0xfb5   :  { %3523 = vmatprep.subr.bf16.mxu0 %v3743_v49 }
 0xfb8   :  { %3524 = vmatpush3.bf16.msra.mxu0 %v3743_v49 }
 0xfb9   :  { %3525 = vmatprep.subr.bf16.mxu0 %v3744_v29 }
 0xfbc   :  { %3526 = vmatpush3.bf16.msra.mxu0 %v3744_v29 }
 0xfbd   :  { %3527 = vmatprep.subr.bf16.mxu0 %v3745_v20 }
 0xfc0   :  { %3528 = vmatpush3.bf16.msra.mxu0 %v3745_v20 }
 0xfc1   :  { %3529 = vmatprep.subr.bf16.mxu0 %v3746_v14 }
 0xfc4   :  { %3530 = vmatpush3.bf16.msra.mxu0 %v3746_v14 }
 0xfc5   :  { %3531 = vmatprep.subr.bf16.mxu0 %v3747_v11 }
 0xfc8   :  { %3532 = vmatpush3.bf16.msra.mxu0 %v3747_v11 }
 0xfc9   :  { %3533 = vmatprep.subr.bf16.mxu0 %v3748_v38 }
 0xfcc   :  { %3534 = vmatpush3.bf16.msra.mxu0 %v3748_v38 }
 0xfcf   :  { %3536 = vmatmul.mubr.bf16.vlgmr.msra.gmra.mrb[68].mxu0 %v3749_v35 }
 0xfd0   :  { %3539 = vmatprep.mubr.bf16.mxu0 %v3750_v53 }
0x1082   :  { %v3019_v42 = vpop.f32.mrb[64].mxu0  ;;  %v3060_v41 = vpop.f32.mrb[96].mxu1 }
0x1083   :  { %v3067_v44 = vadd.f32 %v3019_v42, %v5257_v37  ;;  %v3021_v24 = vpop.f32.mrb[65].mxu0  ;;  %v3062_v16 = vpop.f32.mrb[97].mxu1  ;;  %v3069_v7 = vadd.f32 %v3060_v41, %v5270_v62 }
0x1084   :  { %v3068_v27 = vadd.f32 %v3021_v24, %v5259_v21  ;;  %v3023_v31 = vpop.f32.mrb[66].mxu0  ;;  %v3064_v61 = vpop.f32.mrb[98].mxu1  ;;  %v3070_v30 = vadd.f32 %v3062_v16, %v5265_v1  ;;  %v3478_v1 = vld [vmem:[%s5655_s8] ss:$0 sm:$0xff] }
0x1085   :  { %v3475_v63 = vmul.f32 -1.442695, %v3067_v44  ;;  %v3024_v0 = vpop.f32.mrb[67].mxu0  ;;  %v3065_v4 = vpop.f32.mrb[99].mxu1 }
0x1086   :  { %v3476_v34 = vmul.f32 -1.442695, %v3068_v27  ;;  %v3477_v43 = vmul.f32 -1.442695, %v3070_v30 }
0x1087   :  { %3992 = vpow2.f32 %v3475_v63 }
0x1088   :  { %3994 = vpow2.f32 %v3476_v34 }
0x1089   :  { %3996 = vpow2.f32 %v3477_v43 }
0x108a   :  { %3998 = vtanh.f32 %v3069_v7 }
0x1091   :  { %v3993_v39 = vpop.eup %3992 }
0x1092   :  { %v3995_v10 = vpop.eup %3994  ;;  %v3074_v37 = vadd.f32 1.0, %v3993_v39 }
0x1093   :  { %v3080_v28 = vadd.f32 1.0, %v3995_v10  ;;  %v3997_v21 = vpop.eup %3996 }
0x1094   :  { %4000 = vrcp.f32 %v3074_v37  ;;  %v3999_v36 = vpop.eup %3998  ;;  %v3087_v22 = vadd.f32 1.0, %v3997_v21 }
0x1095   :  { %4002 = vrcp.f32 %v3080_v28 }
0x1096   :  { %4004 = vrcp.f32 %v3087_v22 }
0x109e   :  { %v4001_v18 = vpop.eup %4000 }
0x109f   :  { %v4003_v40 = vpop.eup %4002  ;;  %v3091_v50 = vmul.f32 %v4001_v18, %v3999_v36 }
0x10a0   :  { %v3090_v52 = vmul.f32 %v4003_v40, %v5590_v60  ;;  %v4005_v54 = vpop.eup %4004 }
0x10a2   :  { %v3092_v62 = vadd.f32 %v3091_v50, %v3090_v52  ;;  %v3537_v8 = vpop.f32.mrb[68].mxu0 }
0x10a3   :  { %v3244_v48 = vadd.f32 %v3537_v8, %v3478_v1  ;;  %v3235_v9 = vpop.f32.mrb[69].mxu0 }
0x10a4   :  { %4006 = vtanh.f32 %v3092_v62  ;;  %v3236_v12 = vadd.f32 %v3478_v1, %v3235_v9  ;;  %v3538_v13 = vpop.f32.mrb[70].mxu0 }
0x10a5   :  { %3268 = vst [vmem:[%s5656_s9 + $0x10] sm:$0xff] %v3244_v48  ;;  %v3247_v15 = vadd.f32 %v3538_v13, %v3478_v1  ;;  %v3238_v17 = vpop.f32.mrb[71].mxu0 }
0x10a6   :  { %3266 = vst [vmem:[%s5656_s9] sm:$0xff] %v3236_v12  ;;  %v3239_v19 = vadd.f32 %v3478_v1, %v3238_v17 }
0x10a7   :  { %3269 = vst [vmem:[%s5656_s9 + $0x18] sm:$0xff] %v3247_v15 }
0x10a8   :  { %3267 = vst [vmem:[%s5656_s9 + $0x8] sm:$0xff] %v3239_v19 }
0x10ae   :  { %v4007_v55 = vpop.eup %4006 }
0x10af   :  { %v3094_v56 = vmul.f32 %v4007_v55, %v4005_v54 }
0x10b1   :  { %v3095_v57 = vpack.c.bf16 %v3094_v56, %v3094_v56 }
0x10b3   :  { %3097 = vst [vmem:[#allocation3 + $0x1c] sm:$0xf] %v3095_v57 }
0x10ba   :  { %v3751_v58 = vld [vmem:[#allocation3 + $0x18] sm:$0xff]  }
0x10bb   :  { %3540 = vmatmul.mubr.bf16.gmra.mrb[72].mxu0 %v3751_v58 }
0x118e   :  { %v3541_v46 = vpop.f32.mrb[72].mxu0 }
0x118f   :  { %v3260_v59 = vadd.f32 %v3541_v46, %v3478_v1  ;;  %v3251_v32 = vpop.f32.mrb[73].mxu0 }
0x1190   :  { %v3252_v6 = vadd.f32 %v3478_v1, %v3251_v32  ;;  %v3542_v23 = vpop.f32.mrb[74].mxu0 }
0x1191   :  { %3272 = vst [vmem:[%s5656_s9 + $0x30] sm:$0xff] %v3260_v59  ;;  %v3263_v26 = vadd.f32 %v3542_v23, %v3478_v1  ;;  %v3254_v25 = vpop.f32.mrb[75].mxu0 }
0x1192   :  { %3270 = vst [vmem:[%s5656_s9 + $0x20] sm:$0xff] %v3252_v6  ;;  %v3255_v47 = vadd.f32 %v3478_v1, %v3254_v25 }
0x1193   :  { %3273 = vst [vmem:[%s5656_s9 + $0x38] sm:$0xff] %v3263_v26 }
0x1194   :  { %3271 = vst [vmem:[%s5656_s9 + $0x28] sm:$0xff] %v3255_v47 }

</bundles_post_ra>
